<compile_context>
chip_gen: v5e
topology: v5e:2x2
jax: 0.10.0
libtpu: 0.0.40
codegen_flags: <defaults>
</compile_context>

<pallas_src>
import functools

import jax
import jax.numpy as jnp
from jax.experimental import pallas as pl
from jax.experimental.pallas import tpu as pltpu


def autopad(k, p=None):
    if p is None:
        p = k // 2 if isinstance(k, int) else [x // 2 for x in k]
    return p


def _round_up(x, m):
    return ((x + m - 1) // m) * m


def _make_kernel(shifts, tm, halo_pad):
    """Kernel for one (batch, c2-tile, row-tile) grid step.

    Computes out[r, :] = SiLU( sum_t X[i*tm + r + shifts[t]] @ W[t] + bias )
    for r in [0, tm).  X rows come from the current row block (xa) plus, when
    a halo is needed, the first `halo_pad` rows of the next block (xb).
    """
    n_taps = len(shifts)
    use_halo = halo_pad > 0

    if use_halo:
        def kernel(xa_ref, xb_ref, w_ref, b_ref, o_ref, xwin_ref, acc_ref):
            # Stage a contiguous (tm + halo_pad, C1) window of input rows.
            xwin_ref[0:tm, :] = xa_ref[0]
            xwin_ref[tm:tm + halo_pad, :] = xb_ref[0, 0:halo_pad, :]
            acc_ref[...] = jnp.zeros_like(acc_ref)
            for t in range(n_taps):
                sh = shifts[t]
                acc_ref[...] += jnp.dot(xwin_ref[sh:sh + tm, :], w_ref[t],
                                        preferred_element_type=jnp.float32)
            y = acc_ref[...] + b_ref[...]
            o_ref[0] = (y * jax.nn.sigmoid(y)).astype(o_ref.dtype)
        return kernel

    def kernel(xa_ref, w_ref, b_ref, o_ref, acc_ref):
        acc_ref[...] = jnp.zeros_like(acc_ref)
        for t in range(n_taps):
            sh = shifts[t]   # all zero when there is no halo
            acc_ref[...] += jnp.dot(xa_ref[0, sh:sh + tm, :], w_ref[t],
                                    preferred_element_type=jnp.float32)
        y = acc_ref[...] + b_ref[...]
        o_ref[0] = (y * jax.nn.sigmoid(y)).astype(o_ref.dtype)
    return kernel


def _shifted_matmul(x_flat, w_taps, bias2d, shifts, q, out_dtype, tm_target):
    """out[n, r, :] = SiLU(sum_t x_flat[n, r + shifts[t], :] @ w_taps[t] + bias).

    x_flat : (N, R0, C1) bf16 flattened rows (zero rows appended here as needed)
    w_taps : (T, C1, C2p) bf16, BN scale folded in, C2p a multiple of 128
    bias2d : (1, C2p) f32
    q      : number of output rows per batch element
    returns (N, q, C2p) in out_dtype.
    """
    n, r0, c1 = x_flat.shape
    n_taps, _, c2p = w_taps.shape
    assert c2p % 128 == 0

    halo = max(shifts)
    halo_pad = _round_up(halo, 8) if halo > 0 else 0
    use_halo = halo_pad > 0

    # C2 tile: 256-wide fills the v6e/v7x MXU, provided the fully-resident tap
    # weights (double-buffered by the pipeline) stay within a modest budget.
    tn = 256 if (c2p % 256 == 0 and n_taps * c1 * 256 * 2 <= 6 * 2**20) else 128
    grid_n = c2p // tn

    # Row tile: large (amortize per-step overhead), clamped to the available
    # work, halved when the grid would otherwise be a single step (keeps both
    # v7x TensorCores busy), at least the halo, and bounded so the streamed
    # input blocks stay small in VMEM.
    tm = tm_target
    if n * grid_n == 1:
        tm = min(tm, _round_up(pl.cdiv(q, 2), 8))
    else:
        tm = min(tm, _round_up(q, 8))
    while tm > 64 and (2 if use_halo else 1) * 2 * tm * c1 * 2 > 12 * 2**20:
        tm //= 2
    tm = _round_up(max(tm, halo_pad, 8), 8)

    grid_m = pl.cdiv(q, tm)
    q_pad = grid_m * tm
    rows_needed = q_pad + (tm if use_halo else 0)   # halo ref reads block i+1
    if rows_needed > r0:
        x_flat = jnp.pad(x_flat, ((0, 0), (0, rows_needed - r0), (0, 0)))

    grid = (n, grid_n, grid_m)
    kernel = _make_kernel(tuple(int(s) for s in shifts), tm, halo_pad)

    in_specs = [pl.BlockSpec((1, tm, c1), lambda b, j, i: (b, i, 0))]
    operands = [x_flat]
    if use_halo:
        in_specs.append(pl.BlockSpec((1, tm, c1), lambda b, j, i: (b, i + 1, 0)))
        operands.append(x_flat)
    in_specs += [
        pl.BlockSpec((n_taps, c1, tn), lambda b, j, i: (0, 0, j)),  # resident taps
        pl.BlockSpec((1, tn), lambda b, j, i: (0, j)),              # folded-BN bias
    ]
    operands += [w_taps, bias2d]

    scratch = []
    if use_halo:
        scratch.append(pltpu.VMEM((tm + halo_pad, c1), x_flat.dtype))
    scratch.append(pltpu.VMEM((tm, tn), jnp.float32))

    out_bytes = jnp.dtype(out_dtype).itemsize
    cost = pl.CostEstimate(
        flops=2 * n * q_pad * c1 * c2p * n_taps,
        transcendentals=n * q_pad * c2p,
        bytes_accessed=(n * rows_needed * c1 * 2 * (2 if use_halo else 1)
                        + n_taps * c1 * c2p * 2
                        + n * q_pad * c2p * out_bytes),
    )

    out = pl.pallas_call(
        kernel,
        out_shape=jax.ShapeDtypeStruct((n, q_pad, c2p), out_dtype),
        grid_spec=pltpu.PrefetchScalarGridSpec(
            num_scalar_prefetch=0,
            grid=grid,
            in_specs=in_specs,
            out_specs=pl.BlockSpec((1, tm, tn), lambda b, j, i: (b, i, j)),
            scratch_shapes=scratch,
        ),
        compiler_params=pltpu.CompilerParams(
            dimension_semantics=("parallel", "parallel", "parallel")),
        cost_estimate=cost,
    )(*operands)

    return out[:, :q, :]


@functools.partial(jax.jit, static_argnames=("k", "s", "p", "eps", "tm"))
def conv_bn_silu(x, w, gamma, beta, running_mean, running_var,
                 *, k, s=1, p=None, eps=1e-5, tm=1024):
    """Equivalent of Conv(c1, c2, k, s, p).forward(x) with BN in eval mode.

    x: (N, C1, H, W)   w: (C2, C1, k, k)   bn params: (C2,)
    returns: (N, C2, Ho, Wo)
    """
    p = autopad(k, p)
    n, c1, h, w_in = x.shape
    c2 = w.shape[0]
    ho = (h + 2 * p - k) // s + 1
    wo = (w_in + 2 * p - k) // s + 1
    hp, wp = h + 2 * p, w_in + 2 * p

    # Fold eval-mode BN: scale into the weights, bias into the kernel epilogue.
    scale = (gamma / jnp.sqrt(running_var + eps)).astype(jnp.float32)
    bias = (beta - running_mean * scale).astype(jnp.float32)

    c2p = _round_up(c2, 128)
    bias2d = jnp.pad(bias, (0, c2p - c2)).reshape(1, c2p)  # zero bias -> SiLU(0)=0

    # (C2, C1, kh, kw) -> (kh, kw, C1, C2) -> (k*k, C1, C2p), BN scale folded.
    w_taps = jnp.transpose(w, (2, 3, 1, 0)).astype(jnp.float32) * scale
    w_taps = w_taps.reshape(k * k, c1, c2)
    w_taps = jnp.pad(w_taps, ((0, 0), (0, 0), (0, c2p - c2))).astype(jnp.bfloat16)

    # bf16 before any padding/reshaping (halves wrapper-side HBM traffic).
    x_nhwc = jnp.transpose(x, (0, 2, 3, 1)).astype(jnp.bfloat16)
    xpad = jnp.pad(x_nhwc, ((0, 0), (p, p), (p, p), (0, 0)))

    if s == 1:
        # Implicit im2col: flatten the padded image to (Hp*Wp, C1) rows; each
        # kernel tap is a constant row shift  kh*Wp + kw .  Output rows are
        # "wide" (Wp columns per row); the k-1 extra columns are discarded.
        x_flat = xpad.reshape(n, hp * wp, c1)
        shifts = tuple(kh * wp + kw for kh in range(k) for kw in range(k))
        q = ho * wp
        out = _shifted_matmul(x_flat, w_taps, bias2d, shifts, q, x.dtype, tm)
        y = out[:, :, :c2].reshape(n, ho, wp, c2)[:, :, :wo, :]
    else:
        # Strided conv: bf16 im2col in the wrapper, run through the same
        # kernel as a single-tap conv (shift 0, no halo).
        cols = [xpad[:, ki:ki + s * ho:s, kj:kj + s * wo:s, :]
                for ki in range(k) for kj in range(k)]
        patches = cols[0] if len(cols) == 1 else jnp.concatenate(cols, axis=-1)
        kdim = k * k * c1
        x_flat = patches.reshape(1, n * ho * wo, kdim)
        w_flat = w_taps.reshape(1, kdim, c2p)
        out = _shifted_matmul(x_flat, w_flat, bias2d, (0,), n * ho * wo,
                              x.dtype, tm)
        y = out[0, :, :c2].reshape(n, ho, wo, c2)

    # NHWC -> NCHW to preserve the module's output layout.
    return jnp.transpose(y, (0, 3, 1, 2))


if __name__ == "__main__":
    key = jax.random.PRNGKey(0)
    k_x, k_w, k_g, k_b, k_m, k_v = jax.random.split(key, 6)

    # Conv(c1=4, c2=8, k=3) on a (2, 4, 16, 16) NCHW input.
    N, C1, H, W = 2, 4, 16, 16
    C2, K = 8, 3
    EPS = 1e-5

    x = jax.random.normal(k_x, (N, C1, H, W), dtype=jnp.float32)
    w = jax.random.normal(k_w, (C2, C1, K, K), dtype=jnp.float32) * 0.1

    # Deterministic BatchNorm parameters (eval-mode running stats).
    gamma = 1.0 + 0.1 * jax.random.normal(k_g, (C2,), dtype=jnp.float32)
    beta = 0.1 * jax.random.normal(k_b, (C2,), dtype=jnp.float32)
    running_mean = 0.1 * jax.random.normal(k_m, (C2,), dtype=jnp.float32)
    running_var = 1.0 + 0.1 * jax.random.uniform(k_v, (C2,), dtype=jnp.float32)

    def reference(s):
        p = autopad(K, None)
        y_conv = jax.lax.conv_general_dilated(
            x, w, window_strides=(s, s), padding=[(p, p), (p, p)],
            dimension_numbers=("NCHW", "OIHW", "NCHW"))
        y_bn = ((y_conv - running_mean[None, :, None, None])
                / jnp.sqrt(running_var + EPS)[None, :, None, None]
                * gamma[None, :, None, None] + beta[None, :, None, None])
        return y_bn * jax.nn.sigmoid(y_bn)

    # 1) Default module config: k=3, s=1 (implicit-im2col kernel, single row tile).
    y1 = conv_bn_silu(x, w, gamma, beta, running_mean, running_var, k=K, s=1)
    jax.block_until_ready(y1)
    assert y1.shape == (N, C2, H, W), y1.shape
    err1 = float(jnp.max(jnp.abs(y1 - reference(1))))
    assert err1 < 5e-2, f"k=3 s=1 max abs error {err1}"

    # 2) Same conv with a small row tile -> multi-tile grid, halo block carries
    #    real data (exercises the tile-boundary path).
    y2 = conv_bn_silu(x, w, gamma, beta, running_mean, running_var,
                      k=K, s=1, tm=128)
    jax.block_until_ready(y2)
    err2 = float(jnp.max(jnp.abs(y2 - reference(1))))
    assert err2 < 5e-2, f"k=3 s=1 (tm=128) max abs error {err2}"

    # 3) Strided conv (k=3, s=2): im2col fallback through the same kernel.
    y3 = conv_bn_silu(x, w, gamma, beta, running_mean, running_var, k=K, s=2)
    jax.block_until_ready(y3)
    assert y3.shape == (N, C2, H // 2, W // 2), y3.shape
    err3 = float(jnp.max(jnp.abs(y3 - reference(2))))
    assert err3 < 5e-2, f"k=3 s=2 max abs error {err3}"

    print("KERNEL_OK")
</pallas_src>

<mosaic_0001>
module attributes {stable_mosaic.version = 11 : i64} {
  func.func @kernel(%arg0: i32, %arg1: i32, %arg2: i32, %arg3: memref<1x288x4xbf16, #tpu.memory_space<vmem>>, %arg4: memref<1x288x4xbf16, #tpu.memory_space<vmem>>, %arg5: memref<9x4x128xbf16, #tpu.memory_space<vmem>>, %arg6: memref<1x128xf32, #tpu.memory_space<vmem>>, %arg7: memref<1x288x128xf32, #tpu.memory_space<vmem>>, %arg8: memref<328x4xbf16, #tpu.memory_space<vmem>>, %arg9: memref<288x128xf32, #tpu.memory_space<vmem>>) attributes {dimension_semantics = [#tpu.dimension_semantics<parallel>, #tpu.dimension_semantics<parallel>, #tpu.dimension_semantics<parallel>], iteration_bounds = array<i64: 2, 1, 1>, scalar_prefetch = 0 : i64, scratch_operands = 2 : i64, tpu.core_type = #tpu.core_type<tc>, window_params = [{transform_indices = @transform_0, window_bounds = array<i64: 1, 288, 4>}, {transform_indices = @transform_1, window_bounds = array<i64: 1, 288, 4>}, {transform_indices = @transform_2, window_bounds = array<i64: 9, 4, 128>}, {transform_indices = @transform_3, window_bounds = array<i64: 1, 128>}, {transform_indices = @transform_4, window_bounds = array<i64: 1, 288, 128>}]} {
    %c0 = arith.constant 0 : index
    %c0_0 = arith.constant 0 : index
    %c0_1 = arith.constant 0 : index
    %0 = vector.load %arg3[%c0, %c0_0, %c0_1] : memref<1x288x4xbf16, #tpu.memory_space<vmem>>, vector<1x288x4xbf16>
    %1 = vector.shape_cast %0 : vector<1x288x4xbf16> to vector<288x4xbf16>
    %c0_2 = arith.constant 0 : index
    %c0_3 = arith.constant 0 : index
    %2 = vector.load %arg8[%c0_2, %c0_3] : memref<328x4xbf16, #tpu.memory_space<vmem>>, vector<288x4xbf16>
    tpu.vector_store %arg8[%c0_2, %c0_3], %1 {strides = array<i32>} : memref<328x4xbf16, #tpu.memory_space<vmem>>, vector<288x4xbf16>,
    %c0_4 = arith.constant 0 : index
    %c0_5 = arith.constant 0 : index
    %c0_6 = arith.constant 0 : index
    %3 = vector.load %arg4[%c0_4, %c0_5, %c0_6] : memref<1x288x4xbf16, #tpu.memory_space<vmem>>, vector<1x40x4xbf16>
    %4 = vector.shape_cast %3 : vector<1x40x4xbf16> to vector<40x4xbf16>
    %c288 = arith.constant 288 : index
    %c0_7 = arith.constant 0 : index
    %5 = vector.load %arg8[%c288, %c0_7] : memref<328x4xbf16, #tpu.memory_space<vmem>>, vector<40x4xbf16>
    tpu.vector_store %arg8[%c288, %c0_7], %4 {strides = array<i32>} : memref<328x4xbf16, #tpu.memory_space<vmem>>, vector<40x4xbf16>,
    %cst = arith.constant 0.000000e+00 : f32
    %6 = vector.broadcast %cst : f32 to vector<288x128xf32>
    %c0_8 = arith.constant 0 : index
    %c0_9 = arith.constant 0 : index
    %7 = vector.load %arg9[%c0_8, %c0_9] : memref<288x128xf32, #tpu.memory_space<vmem>>, vector<288x128xf32>
    tpu.vector_store %arg9[%c0_8, %c0_9], %6 {strides = array<i32>} : memref<288x128xf32, #tpu.memory_space<vmem>>, vector<288x128xf32>,
    %c0_10 = arith.constant 0 : index
    %c0_11 = arith.constant 0 : index
    %8 = vector.load %arg9[%c0_10, %c0_11] : memref<288x128xf32, #tpu.memory_space<vmem>>, vector<288x128xf32>
    %c0_12 = arith.constant 0 : index
    %c0_13 = arith.constant 0 : index
    %9 = vector.load %arg8[%c0_12, %c0_13] : memref<328x4xbf16, #tpu.memory_space<vmem>>, vector<288x4xbf16>
    %c0_14 = arith.constant 0 : index
    %c0_15 = arith.constant 0 : index
    %c0_16 = arith.constant 0 : index
    %10 = vector.load %arg5[%c0_14, %c0_15, %c0_16] : memref<9x4x128xbf16, #tpu.memory_space<vmem>>, vector<1x4x128xbf16>
    %11 = vector.shape_cast %10 : vector<1x4x128xbf16> to vector<4x128xbf16>
    %cst_17 = arith.constant dense<0.000000e+00> : vector<288x128xf32>
    %12 = tpu.matmul %9, %11, %cst_17 {dimension_numbers = #tpu.dot_dimension_numbers<[1], [0], [0], [1], [0, 0, 1, 1], [], []>} : vector<288x4xbf16>, vector<4x128xbf16>, vector<288x128xf32> -> vector<288x128xf32>
    %13 = arith.addf %8, %12 : vector<288x128xf32>
    %c0_18 = arith.constant 0 : index
    %c0_19 = arith.constant 0 : index
    %14 = vector.load %arg9[%c0_18, %c0_19] : memref<288x128xf32, #tpu.memory_space<vmem>>, vector<288x128xf32>
    tpu.vector_store %arg9[%c0_18, %c0_19], %13 {strides = array<i32>} : memref<288x128xf32, #tpu.memory_space<vmem>>, vector<288x128xf32>,
    %c0_20 = arith.constant 0 : index
    %c0_21 = arith.constant 0 : index
    %15 = vector.load %arg9[%c0_20, %c0_21] : memref<288x128xf32, #tpu.memory_space<vmem>>, vector<288x128xf32>
    %c1 = arith.constant 1 : index
    %c0_22 = arith.constant 0 : index
    %16 = vector.load %arg8[%c1, %c0_22] : memref<328x4xbf16, #tpu.memory_space<vmem>>, vector<288x4xbf16>
    %c1_23 = arith.constant 1 : index
    %c0_24 = arith.constant 0 : index
    %c0_25 = arith.constant 0 : index
    %17 = vector.load %arg5[%c1_23, %c0_24, %c0_25] : memref<9x4x128xbf16, #tpu.memory_space<vmem>>, vector<1x4x128xbf16>
    %18 = vector.shape_cast %17 : vector<1x4x128xbf16> to vector<4x128xbf16>
    %cst_26 = arith.constant dense<0.000000e+00> : vector<288x128xf32>
    %19 = tpu.matmul %16, %18, %cst_26 {dimension_numbers = #tpu.dot_dimension_numbers<[1], [0], [0], [1], [0, 0, 1, 1], [], []>} : vector<288x4xbf16>, vector<4x128xbf16>, vector<288x128xf32> -> vector<288x128xf32>
    %20 = arith.addf %15, %19 : vector<288x128xf32>
    %c0_27 = arith.constant 0 : index
    %c0_28 = arith.constant 0 : index
    %21 = vector.load %arg9[%c0_27, %c0_28] : memref<288x128xf32, #tpu.memory_space<vmem>>, vector<288x128xf32>
    tpu.vector_store %arg9[%c0_27, %c0_28], %20 {strides = array<i32>} : memref<288x128xf32, #tpu.memory_space<vmem>>, vector<288x128xf32>,
    %c0_29 = arith.constant 0 : index
    %c0_30 = arith.constant 0 : index
    %22 = vector.load %arg9[%c0_29, %c0_30] : memref<288x128xf32, #tpu.memory_space<vmem>>, vector<288x128xf32>
    %c2 = arith.constant 2 : index
    %c0_31 = arith.constant 0 : index
    %23 = vector.load %arg8[%c2, %c0_31] : memref<328x4xbf16, #tpu.memory_space<vmem>>, vector<288x4xbf16>
    %c2_32 = arith.constant 2 : index
    %c0_33 = arith.constant 0 : index
    %c0_34 = arith.constant 0 : index
    %24 = vector.load %arg5[%c2_32, %c0_33, %c0_34] : memref<9x4x128xbf16, #tpu.memory_space<vmem>>, vector<1x4x128xbf16>
    %25 = vector.shape_cast %24 : vector<1x4x128xbf16> to vector<4x128xbf16>
    %cst_35 = arith.constant dense<0.000000e+00> : vector<288x128xf32>
    %26 = tpu.matmul %23, %25, %cst_35 {dimension_numbers = #tpu.dot_dimension_numbers<[1], [0], [0], [1], [0, 0, 1, 1], [], []>} : vector<288x4xbf16>, vector<4x128xbf16>, vector<288x128xf32> -> vector<288x128xf32>
    %27 = arith.addf %22, %26 : vector<288x128xf32>
    %c0_36 = arith.constant 0 : index
    %c0_37 = arith.constant 0 : index
    %28 = vector.load %arg9[%c0_36, %c0_37] : memref<288x128xf32, #tpu.memory_space<vmem>>, vector<288x128xf32>
    tpu.vector_store %arg9[%c0_36, %c0_37], %27 {strides = array<i32>} : memref<288x128xf32, #tpu.memory_space<vmem>>, vector<288x128xf32>,
    %c0_38 = arith.constant 0 : index
    %c0_39 = arith.constant 0 : index
    %29 = vector.load %arg9[%c0_38, %c0_39] : memref<288x128xf32, #tpu.memory_space<vmem>>, vector<288x128xf32>
    %c18 = arith.constant 18 : index
    %c0_40 = arith.constant 0 : index
    %30 = vector.load %arg8[%c18, %c0_40] : memref<328x4xbf16, #tpu.memory_space<vmem>>, vector<288x4xbf16>
    %c3 = arith.constant 3 : index
    %c0_41 = arith.constant 0 : index
    %c0_42 = arith.constant 0 : index
    %31 = vector.load %arg5[%c3, %c0_41, %c0_42] : memref<9x4x128xbf16, #tpu.memory_space<vmem>>, vector<1x4x128xbf16>
    %32 = vector.shape_cast %31 : vector<1x4x128xbf16> to vector<4x128xbf16>
    %cst_43 = arith.constant dense<0.000000e+00> : vector<288x128xf32>
    %33 = tpu.matmul %30, %32, %cst_43 {dimension_numbers = #tpu.dot_dimension_numbers<[1], [0], [0], [1], [0, 0, 1, 1], [], []>} : vector<288x4xbf16>, vector<4x128xbf16>, vector<288x128xf32> -> vector<288x128xf32>
    %34 = arith.addf %29, %33 : vector<288x128xf32>
    %c0_44 = arith.constant 0 : index
    %c0_45 = arith.constant 0 : index
    %35 = vector.load %arg9[%c0_44, %c0_45] : memref<288x128xf32, #tpu.memory_space<vmem>>, vector<288x128xf32>
    tpu.vector_store %arg9[%c0_44, %c0_45], %34 {strides = array<i32>} : memref<288x128xf32, #tpu.memory_space<vmem>>, vector<288x128xf32>,
    %c0_46 = arith.constant 0 : index
    %c0_47 = arith.constant 0 : index
    %36 = vector.load %arg9[%c0_46, %c0_47] : memref<288x128xf32, #tpu.memory_space<vmem>>, vector<288x128xf32>
    %c19 = arith.constant 19 : index
    %c0_48 = arith.constant 0 : index
    %37 = vector.load %arg8[%c19, %c0_48] : memref<328x4xbf16, #tpu.memory_space<vmem>>, vector<288x4xbf16>
    %c4 = arith.constant 4 : index
    %c0_49 = arith.constant 0 : index
    %c0_50 = arith.constant 0 : index
    %38 = vector.load %arg5[%c4, %c0_49, %c0_50] : memref<9x4x128xbf16, #tpu.memory_space<vmem>>, vector<1x4x128xbf16>
    %39 = vector.shape_cast %38 : vector<1x4x128xbf16> to vector<4x128xbf16>
    %cst_51 = arith.constant dense<0.000000e+00> : vector<288x128xf32>
    %40 = tpu.matmul %37, %39, %cst_51 {dimension_numbers = #tpu.dot_dimension_numbers<[1], [0], [0], [1], [0, 0, 1, 1], [], []>} : vector<288x4xbf16>, vector<4x128xbf16>, vector<288x128xf32> -> vector<288x128xf32>
    %41 = arith.addf %36, %40 : vector<288x128xf32>
    %c0_52 = arith.constant 0 : index
    %c0_53 = arith.constant 0 : index
    %42 = vector.load %arg9[%c0_52, %c0_53] : memref<288x128xf32, #tpu.memory_space<vmem>>, vector<288x128xf32>
    tpu.vector_store %arg9[%c0_52, %c0_53], %41 {strides = array<i32>} : memref<288x128xf32, #tpu.memory_space<vmem>>, vector<288x128xf32>,
    %c0_54 = arith.constant 0 : index
    %c0_55 = arith.constant 0 : index
    %43 = vector.load %arg9[%c0_54, %c0_55] : memref<288x128xf32, #tpu.memory_space<vmem>>, vector<288x128xf32>
    %c20 = arith.constant 20 : index
    %c0_56 = arith.constant 0 : index
    %44 = vector.load %arg8[%c20, %c0_56] : memref<328x4xbf16, #tpu.memory_space<vmem>>, vector<288x4xbf16>
    %c5 = arith.constant 5 : index
    %c0_57 = arith.constant 0 : index
    %c0_58 = arith.constant 0 : index
    %45 = vector.load %arg5[%c5, %c0_57, %c0_58] : memref<9x4x128xbf16, #tpu.memory_space<vmem>>, vector<1x4x128xbf16>
    %46 = vector.shape_cast %45 : vector<1x4x128xbf16> to vector<4x128xbf16>
    %cst_59 = arith.constant dense<0.000000e+00> : vector<288x128xf32>
    %47 = tpu.matmul %44, %46, %cst_59 {dimension_numbers = #tpu.dot_dimension_numbers<[1], [0], [0], [1], [0, 0, 1, 1], [], []>} : vector<288x4xbf16>, vector<4x128xbf16>, vector<288x128xf32> -> vector<288x128xf32>
    %48 = arith.addf %43, %47 : vector<288x128xf32>
    %c0_60 = arith.constant 0 : index
    %c0_61 = arith.constant 0 : index
    %49 = vector.load %arg9[%c0_60, %c0_61] : memref<288x128xf32, #tpu.memory_space<vmem>>, vector<288x128xf32>
    tpu.vector_store %arg9[%c0_60, %c0_61], %48 {strides = array<i32>} : memref<288x128xf32, #tpu.memory_space<vmem>>, vector<288x128xf32>,
    %c0_62 = arith.constant 0 : index
    %c0_63 = arith.constant 0 : index
    %50 = vector.load %arg9[%c0_62, %c0_63] : memref<288x128xf32, #tpu.memory_space<vmem>>, vector<288x128xf32>
    %c36 = arith.constant 36 : index
    %c0_64 = arith.constant 0 : index
    %51 = vector.load %arg8[%c36, %c0_64] : memref<328x4xbf16, #tpu.memory_space<vmem>>, vector<288x4xbf16>
    %c6 = arith.constant 6 : index
    %c0_65 = arith.constant 0 : index
    %c0_66 = arith.constant 0 : index
    %52 = vector.load %arg5[%c6, %c0_65, %c0_66] : memref<9x4x128xbf16, #tpu.memory_space<vmem>>, vector<1x4x128xbf16>
    %53 = vector.shape_cast %52 : vector<1x4x128xbf16> to vector<4x128xbf16>
    %cst_67 = arith.constant dense<0.000000e+00> : vector<288x128xf32>
    %54 = tpu.matmul %51, %53, %cst_67 {dimension_numbers = #tpu.dot_dimension_numbers<[1], [0], [0], [1], [0, 0, 1, 1], [], []>} : vector<288x4xbf16>, vector<4x128xbf16>, vector<288x128xf32> -> vector<288x128xf32>
    %55 = arith.addf %50, %54 : vector<288x128xf32>
    %c0_68 = arith.constant 0 : index
    %c0_69 = arith.constant 0 : index
    %56 = vector.load %arg9[%c0_68, %c0_69] : memref<288x128xf32, #tpu.memory_space<vmem>>, vector<288x128xf32>
    tpu.vector_store %arg9[%c0_68, %c0_69], %55 {strides = array<i32>} : memref<288x128xf32, #tpu.memory_space<vmem>>, vector<288x128xf32>,
    %c0_70 = arith.constant 0 : index
    %c0_71 = arith.constant 0 : index
    %57 = vector.load %arg9[%c0_70, %c0_71] : memref<288x128xf32, #tpu.memory_space<vmem>>, vector<288x128xf32>
    %c37 = arith.constant 37 : index
    %c0_72 = arith.constant 0 : index
    %58 = vector.load %arg8[%c37, %c0_72] : memref<328x4xbf16, #tpu.memory_space<vmem>>, vector<288x4xbf16>
    %c7 = arith.constant 7 : index
    %c0_73 = arith.constant 0 : index
    %c0_74 = arith.constant 0 : index
    %59 = vector.load %arg5[%c7, %c0_73, %c0_74] : memref<9x4x128xbf16, #tpu.memory_space<vmem>>, vector<1x4x128xbf16>
    %60 = vector.shape_cast %59 : vector<1x4x128xbf16> to vector<4x128xbf16>
    %cst_75 = arith.constant dense<0.000000e+00> : vector<288x128xf32>
    %61 = tpu.matmul %58, %60, %cst_75 {dimension_numbers = #tpu.dot_dimension_numbers<[1], [0], [0], [1], [0, 0, 1, 1], [], []>} : vector<288x4xbf16>, vector<4x128xbf16>, vector<288x128xf32> -> vector<288x128xf32>
    %62 = arith.addf %57, %61 : vector<288x128xf32>
    %c0_76 = arith.constant 0 : index
    %c0_77 = arith.constant 0 : index
    %63 = vector.load %arg9[%c0_76, %c0_77] : memref<288x128xf32, #tpu.memory_space<vmem>>, vector<288x128xf32>
    tpu.vector_store %arg9[%c0_76, %c0_77], %62 {strides = array<i32>} : memref<288x128xf32, #tpu.memory_space<vmem>>, vector<288x128xf32>,
    %c0_78 = arith.constant 0 : index
    %c0_79 = arith.constant 0 : index
    %64 = vector.load %arg9[%c0_78, %c0_79] : memref<288x128xf32, #tpu.memory_space<vmem>>, vector<288x128xf32>
    %c38 = arith.constant 38 : index
    %c0_80 = arith.constant 0 : index
    %65 = vector.load %arg8[%c38, %c0_80] : memref<328x4xbf16, #tpu.memory_space<vmem>>, vector<288x4xbf16>
    %c8 = arith.constant 8 : index
    %c0_81 = arith.constant 0 : index
    %c0_82 = arith.constant 0 : index
    %66 = vector.load %arg5[%c8, %c0_81, %c0_82] : memref<9x4x128xbf16, #tpu.memory_space<vmem>>, vector<1x4x128xbf16>
    %67 = vector.shape_cast %66 : vector<1x4x128xbf16> to vector<4x128xbf16>
    %cst_83 = arith.constant dense<0.000000e+00> : vector<288x128xf32>
    %68 = tpu.matmul %65, %67, %cst_83 {dimension_numbers = #tpu.dot_dimension_numbers<[1], [0], [0], [1], [0, 0, 1, 1], [], []>} : vector<288x4xbf16>, vector<4x128xbf16>, vector<288x128xf32> -> vector<288x128xf32>
    %69 = arith.addf %64, %68 : vector<288x128xf32>
    %c0_84 = arith.constant 0 : index
    %c0_85 = arith.constant 0 : index
    %70 = vector.load %arg9[%c0_84, %c0_85] : memref<288x128xf32, #tpu.memory_space<vmem>>, vector<288x128xf32>
    tpu.vector_store %arg9[%c0_84, %c0_85], %69 {strides = array<i32>} : memref<288x128xf32, #tpu.memory_space<vmem>>, vector<288x128xf32>,
    %c0_86 = arith.constant 0 : index
    %c0_87 = arith.constant 0 : index
    %71 = vector.load %arg9[%c0_86, %c0_87] : memref<288x128xf32, #tpu.memory_space<vmem>>, vector<288x128xf32>
    %c0_88 = arith.constant 0 : index
    %c0_89 = arith.constant 0 : index
    %72 = vector.load %arg6[%c0_88, %c0_89] : memref<1x128xf32, #tpu.memory_space<vmem>>, vector<1x128xf32>
    %73 = vector.broadcast %72 : vector<1x128xf32> to vector<288x128xf32>
    %74 = arith.addf %71, %73 : vector<288x128xf32>
    %75 = arith.negf %74 : vector<288x128xf32>
    %76 = math.exp %75 : vector<288x128xf32>
    %cst_90 = arith.constant 1.000000e+00 : f32
    %77 = vector.broadcast %cst_90 : f32 to vector<288x128xf32>
    %78 = arith.addf %77, %76 : vector<288x128xf32>
    %79 = arith.divf %77, %78 : vector<288x128xf32>
    %80 = arith.mulf %74, %79 : vector<288x128xf32>
    %c0_91 = arith.constant 0 : index
    %c0_92 = arith.constant 0 : index
    %c0_93 = arith.constant 0 : index
    %81 = vector.load %arg7[%c0_91, %c0_92, %c0_93] : memref<1x288x128xf32, #tpu.memory_space<vmem>>, vector<1x288x128xf32>
    %82 = vector.shape_cast %81 : vector<1x288x128xf32> to vector<288x128xf32>
    %83 = vector.shape_cast %80 : vector<288x128xf32> to vector<1x288x128xf32>
    tpu.vector_store %arg7[%c0_91, %c0_92, %c0_93], %83 {strides = array<i32>} : memref<1x288x128xf32, #tpu.memory_space<vmem>>, vector<1x288x128xf32>,
    return
  }
  func.func @transform_0(%arg0: i32, %arg1: i32, %arg2: i32) -> (i32, i32, i32) {
    %c0_i32 = arith.constant 0 : i32
    %c0_i32_0 = arith.constant 0 : i32
    return %arg0, %arg2, %c0_i32 : i32, i32, i32
  }
  func.func @transform_1(%arg0: i32, %arg1: i32, %arg2: i32) -> (i32, i32, i32) {
    %c1_i32 = arith.constant 1 : i32
    %0 = arith.addi %arg2, %c1_i32 : i32
    %c0_i32 = arith.constant 0 : i32
    %c0_i32_0 = arith.constant 0 : i32
    return %arg0, %0, %c0_i32 : i32, i32, i32
  }
  func.func @transform_2(%arg0: i32, %arg1: i32, %arg2: i32) -> (i32, i32, i32) {
    %c0_i32 = arith.constant 0 : i32
    %c0_i32_0 = arith.constant 0 : i32
    %c0_i32_1 = arith.constant 0 : i32
    return %c0_i32, %c0_i32_0, %arg1 : i32, i32, i32
  }
  func.func @transform_3(%arg0: i32, %arg1: i32, %arg2: i32) -> (i32, i32) {
    %c0_i32 = arith.constant 0 : i32
    %c0_i32_0 = arith.constant 0 : i32
    return %c0_i32, %arg1 : i32, i32
  }
  func.func @transform_4(%arg0: i32, %arg1: i32, %arg2: i32) -> (i32, i32, i32) {
    %c0_i32 = arith.constant 0 : i32
    return %arg0, %arg2, %arg1 : i32, i32, i32
  }
}

</mosaic_0001>

<bundles_post_ra>
// kernel: conv_bn_silu.1
= control target key start
LH: loop header
LB: loop body
LE: loop exit
PB: predicated region body
PF: predicated region fallthrough
CT: control target
= control target key end

     0   :  { %s6919_s15 = smov 0   ;;  %s6921_s16 = smov 0   ;;  %s8358_s0 = inlined_call_operand.vmem [shape: bf16[2,576,4], index: 0, kind: input, shape index: {}, may-alias: {0,1}]   ;;  %s8359_s1 = inlined_call_operand.vmem [shape: bf16[2,576,4], index: 1, kind: input, shape index: {}, may-alias: {0,1}]   ;;  %s8360_s2 = inlined_call_operand.vmem [shape: bf16[9,4,128], index: 2, kind: input, shape index: {}]   ;;  %s8361_s3 = inlined_call_operand.vmem [shape: f32[1,128], index: 3, kind: input, shape index: {}]   ;;  %s8362_s4 = inlined_call_operand.vmem [shape: f32[2,288,128], index: 4, kind: output, shape index: {}]  }
   0x1   :  { %s6923_s17 = smov 0  }
   0x2 LB: > { %s33_s18 = sadd.s32 1, %s6888_s16  ;;  %p5669_p0 = scmp.ge.s32.totalorder %s6892_s17, 1  ;;  %s6892_s17 = sphi %s6923_s17, %s14_s17   ;;  %s6888_s16 = sphi %s6921_s16, %s8394_s16   ;;  %s6884_s15 = sphi %s6919_s15, %s8393_s15  }
   0x3   : > { %p35_p1 = scmp.ge.s32.totalorder %s33_s18, 2  ;;  %p230_p2 = scmp.lt.s32.totalorder %s6892_s17, 3 }
   0x5   : > { %s8396_s18 = smov (%p35_p1, %s33_s18), 0  ;;  %p231_p3 = pnand %p5669_p0, %p230_p2 }
   0x7   : > { %234 = sbr.rel (%p231_p3) target bundleno = 853 (0x355), region = 36 }
   0xc   : > { %v518_v0 = vld [vmem:[%s8360_s2] sm:$0x3]  ;;  %vm664_vm0 = vcmask 1041408   ;;  %p285_p4 = scmp.lt.s32.totalorder %s6884_s15, 1  ;;  %v5854_v2 = vld [vmem:[%s8360_s2 + $0x4] sm:$0x3] }
   0xd   : > { %v666_v1 = vsel %vm664_vm0, %v518_v0, 0  ;;  %v5763_v3 = vld [vmem:[%s8360_s2 + $0x2] sm:$0x3]  ;;  %v1645_v4 = vsel %vm664_vm0, %v5854_v2, 0  ;;  %v6036_v6 = vld [vmem:[%s8360_s2 + $0x8] sm:$0x3] }
   0xe   : > { %6693 = vmatpush.bf16.msra.mxu1 %v666_v1  ;;  %6694 = vmatpush.bf16.msra.mxu2 %v666_v1  ;;  %s8398_s15 = smov (!%p285_p4, %s6884_s15), 1  ;;  %v1211_v5 = vsel %vm664_vm0, %v5763_v3, 0  ;;  %v2645_v7 = vsel %vm664_vm0, %v6036_v6, 0  ;;  %vm363_vm1 = vcmask 27648   ;;  %vm609_vm2 = vcmask 31744  }
   0xf   : > { %675 = vmatpush.bf16.msra.mxu0 %v666_v1  ;;  %s6953_s27 = smul.u32 288, %s8398_s15  ;;  %6695 = vmatpush.bf16.msra.mxu3 %v666_v1  ;;  %v5945_v29 = vld [vmem:[%s8360_s2 + $0x6] sm:$0x3]  ;;  %v6218_v1 = vld [vmem:[%s8360_s2 + $0xc] sm:$0x3]  ;;  %vm1552_vm3 = vcmask 1046528  }
  0x10   : > { %v2078_v31 = vsel %vm664_vm0, %v5945_v29, 0  ;;  %v3512_v2 = vsel %vm664_vm0, %v6218_v1, 0  ;;  %v6309_v3 = vld [vmem:[%s8360_s2 + $0xe] sm:$0x3]  ;;  %vm1007_vm4 = vsmask.f32 7424 }
  0x11   : > { %s6959_s30 = scalar_lea.vmem %s8358_s0, %s6953_s27  ;;  %vm2419_vm5 = vsmask.f32 6400  ;;  %s6530_s15 = sadd.s32 144, %s6953_s27  ;;  %vm3853_vm6 = vsmask.f32 5376  ;;  %vm2986_vm7 = vcmask 1045504  }
  0x12   : > { %1654 = vmatpush.bf16.msrb.mxu2 %v1645_v4  ;;  %1220 = vmatpush.bf16.msrb.mxu1 %v1211_v5  ;;  %v337_v8 = vld [vmem:[%s6959_s30 + $0x28] sm:$0xf]  ;;  %v338_v9 = vld [vmem:[%s6959_s30 + $0x2c] sm:$0xf]  ;;  %v347_v10 = vld [vmem:[%s6959_s30 + $0x50] sm:$0xf]  ;;  %s7296_s21 = scalar_lea.vmem %s8359_s1, %s6530_s15  ;;  %s7666_s26 = scalar_lea.vmem %s8362_s4, %s6953_s27 }
  0x13   : > { %2654 = vmatpush.bf16.msrb.mxu0 %v2645_v7  ;;  %374 = vst.msk [vmem:[#allocation2 + $0x28] sm:$0xf] %vm363_vm1, %v337_v8  ;;  %v348_v11 = vld [vmem:[%s6959_s30 + $0x54] sm:$0xf]  ;;  %v327_v12 = vld [vmem:[%s6959_s30] sm:$0xf]  ;;  %2087 = vmatpush.bf16.msrb.mxu3 %v2078_v31 }
  0x14   : > { %375 = vst.msk [vmem:[#allocation2 + $0x2c] sm:$0xf] %vm363_vm1, %v338_v9  ;;  %v328_v13 = vld [vmem:[%s6959_s30 + $0x4] sm:$0xf]  ;;  %v339_v14 = vld [vmem:[%s6959_s30 + $0x30] sm:$0xf] }
  0x15   : > { %384 = vst.msk [vmem:[#allocation2 + $0x50] sm:$0xf] %vm363_vm1, %v347_v10  ;;  %v340_v15 = vld [vmem:[%s6959_s30 + $0x34] sm:$0xf]  ;;  %v349_v16 = vld [vmem:[%s6959_s30 + $0x58] sm:$0xf] }
  0x16   : > { %385 = vst.msk [vmem:[#allocation2 + $0x54] sm:$0xf] %vm363_vm1, %v348_v11  ;;  %v350_v17 = vld [vmem:[%s6959_s30 + $0x5c] sm:$0xf]  ;;  %v329_v18 = vld [vmem:[%s6959_s30 + $0x8] sm:$0xf] }
  0x17   : > { %364 = vst.msk [vmem:[#allocation2] sm:$0xf] %vm363_vm1, %v327_v12  ;;  %v330_v20 = vld [vmem:[%s6959_s30 + $0xc] sm:$0xf]  ;;  %v357_v21 = vld [vmem:[%s6959_s30 + $0x78] sm:$0xf] }
  0x18   : > { %365 = vst.msk [vmem:[#allocation2 + $0x4] sm:$0xf] %vm363_vm1, %v328_v13  ;;  %v358_v23 = vld [vmem:[%s6959_s30 + $0x7c] sm:$0xf]  ;;  %v341_v24 = vld [vmem:[%s6959_s30 + $0x38] sm:$0xf] }
  0x19   : > { %376 = vst.msk [vmem:[#allocation2 + $0x30] sm:$0xf] %vm363_vm1, %v339_v14  ;;  %v342_v26 = vld [vmem:[%s6959_s30 + $0x3c] sm:$0xf]  ;;  %v351_v27 = vld [vmem:[%s6959_s30 + $0x60] sm:$0xf] }
  0x1a   : > { %377 = vst.msk [vmem:[#allocation2 + $0x34] sm:$0xf] %vm363_vm1, %v340_v15  ;;  %v352_v28 = vld [vmem:[%s6959_s30 + $0x64] sm:$0xf]  ;;  %v331_v30 = vld [vmem:[%s6959_s30 + $0x10] sm:$0xf] }
  0x1b   : > { %v6536_v19 = vld [vmem:[#allocation2 + $0x28] sm:$0xff]  ;;  %386 = vst.msk [vmem:[#allocation2 + $0x58] sm:$0xf] %vm363_vm1, %v349_v16  ;;  %v332_v32 = vld [vmem:[%s6959_s30 + $0x14] sm:$0xf]  ;;  %v4079_v7 = vsel %vm664_vm0, %v6309_v3, 0 }
  0x1c   : > { %387 = vst.msk [vmem:[#allocation2 + $0x5c] sm:$0xf] %vm363_vm1, %v350_v17  ;;  %5750 = vmatmul.msk.bf16.vlgmr.msra.gmra.mxu1 %vm609_vm2, %v6536_v19  ;;  %v359_v33 = vld [vmem:[%s6959_s30 + $0x80] sm:$0xf]  ;;  %v360_v34 = vld [vmem:[%s6959_s30 + $0x84] sm:$0xf] }
  0x1d   : > { %v6541_v22 = vld [vmem:[#allocation2 + $0x50] sm:$0xff]  ;;  %366 = vst.msk [vmem:[#allocation2 + $0x8] sm:$0xf] %vm363_vm1, %v329_v18  ;;  %v343_v35 = vld [vmem:[%s6959_s30 + $0x40] sm:$0xf]  ;;  %vm4420_vm8 = vcmask 1044480  }
  0x1e   : > { %367 = vst.msk [vmem:[#allocation2 + $0xc] sm:$0xf] %vm363_vm1, %v330_v20  ;;  %5755 = vmatmul.msk.bf16.vlgmr.msra.gmra.mxu2 %vm609_vm2, %v6541_v22  ;;  %v344_v37 = vld [vmem:[%s6959_s30 + $0x44] sm:$0xf]  ;;  %v353_v38 = vld [vmem:[%s6959_s30 + $0x68] sm:$0xf] }
  0x1f   : > { %v6531_v25 = vld [vmem:[#allocation2] sm:$0xff]  ;;  %394 = vst.msk [vmem:[#allocation2 + $0x78] sm:$0xf] %vm363_vm1, %v357_v21  ;;  %v354_v40 = vld [vmem:[%s6959_s30 + $0x6c] sm:$0xf]  ;;  %3521 = vmatpush.bf16.msra.mxu2 %v3512_v2 }
  0x20   : > { %395 = vst.msk [vmem:[#allocation2 + $0x7c] sm:$0xf] %vm363_vm1, %v358_v23  ;;  %5745 = vmatmul.msk.bf16.vlgmr.msra.gmra.mxu0 %vm609_vm2, %v6531_v25  ;;  %v333_v41 = vld [vmem:[%s6959_s30 + $0x18] sm:$0xf]  ;;  %v334_v43 = vld [vmem:[%s6959_s30 + $0x1c] sm:$0xf] }
  0x21   : > { %378 = vst.msk [vmem:[#allocation2 + $0x38] sm:$0xf] %vm363_vm1, %v341_v24  ;;  %v6537_v39 = vld [vmem:[#allocation2 + $0x30] sm:$0xff]  ;;  %v361_v45 = vld [vmem:[%s6959_s30 + $0x88] sm:$0xf]  ;;  %v6549_v13 = vld [vmem:[#allocation2] sm:$0xff] }
  0x22   : > { %379 = vst.msk [vmem:[#allocation2 + $0x3c] sm:$0xf] %vm363_vm1, %v342_v26  ;;  %v362_v46 = vld [vmem:[%s6959_s30 + $0x8c] sm:$0xf]  ;;  %v345_v47 = vld [vmem:[%s6959_s30 + $0x48] sm:$0xf] }
  0x23   : > { %388 = vst.msk [vmem:[#allocation2 + $0x60] sm:$0xf] %vm363_vm1, %v351_v27  ;;  %v6542_v42 = vld [vmem:[#allocation2 + $0x58] sm:$0xff]  ;;  %v346_v48 = vld [vmem:[%s6959_s30 + $0x4c] sm:$0xf]  ;;  %v1011_v19 = vshll.u32 %v6549_v13, 16 }
  0x24   : > { %389 = vst.msk [vmem:[#allocation2 + $0x64] sm:$0xf] %vm363_vm1, %v352_v28  ;;  %v355_v50 = vld [vmem:[%s6959_s30 + $0x70] sm:$0xf]  ;;  %v356_v51 = vld [vmem:[%s6959_s30 + $0x74] sm:$0xf] }
  0x25   : > { %368 = vst.msk [vmem:[#allocation2 + $0x10] sm:$0xf] %vm363_vm1, %v331_v30  ;;  %v6532_v44 = vld [vmem:[#allocation2 + $0x8] sm:$0xff]  ;;  %v335_v52 = vld [vmem:[%s6959_s30 + $0x20] sm:$0xf]  ;;  %v1009_v23 = vshrl.u32 %v6549_v13, 16 }
  0x26   : > { %369 = vst.msk [vmem:[#allocation2 + $0x14] sm:$0xf] %vm363_vm1, %v332_v32  ;;  %v336_v53 = vld [vmem:[%s6959_s30 + $0x24] sm:$0xf]  ;;  %v5948_v60 = vld [vmem:[#allocation2 + $0x8] sm:$0xe] }
  0x27   : > { %v6546_v36 = vld [vmem:[#allocation2 + $0x78] sm:$0xff]  ;;  %396 = vst.msk [vmem:[#allocation2 + $0x80] sm:$0xf] %vm363_vm1, %v359_v33  ;;  %v6585_v61 = vld [vmem:[#allocation2 + $0x8] sm:$0xf0]  ;;  %v1013_v25 = vrot.slane %v1011_v19, 1 }
  0x28   : > { %397 = vst.msk [vmem:[#allocation2 + $0x84] sm:$0xf] %vm363_vm1, %v360_v34  ;;  %5760 = vmatmul.msk.bf16.vlgmr.msra.gmra.mxu3 %vm609_vm2, %v6546_v36  ;;  %v5949_v0 = vor.u32 %v6585_v61, %v5948_v60  ;;  %v6127_v4 = vld [vmem:[%s8360_s2 + $0xa] sm:$0x3]  ;;  %v6400_v9 = vld [vmem:[%s8360_s2 + $0x10] sm:$0x3] }
  0x29   : > { %380 = vst.msk [vmem:[#allocation2 + $0x40] sm:$0xf] %vm363_vm1, %v343_v35  ;;  %v6538_v54 = vld [vmem:[#allocation2 + $0x38] sm:$0xff]  ;;  %v3079_v8 = vsel %vm664_vm0, %v6127_v4, 0  ;;  %4088 = vmatpush.bf16.msra.mxu3 %v4079_v7  ;;  %v4513_v10 = vsel %vm664_vm0, %v6400_v9, 0  ;;  %v6550_v17 = vld [vmem:[#allocation2 + $0x8] sm:$0xff]  ;;  %v1014_v35 = vor.u32 %v1013_v25, %v1009_v23 }
  0x2a   : > { %381 = vst.msk [vmem:[#allocation2 + $0x44] sm:$0xf] %vm363_vm1, %v344_v37  ;;  %v1986_v5 = vrot.slane %v5949_v0, 1  ;;  %3088 = vmatpush.bf16.msra.mxu1 %v3079_v8  ;;  %4522 = vmatpush.bf16.msra.mxu0 %v4513_v10  ;;  %v6039_v14 = vld [vmem:[#allocation2 + $0x8] sm:$0xe]  ;;  %v1016_v24 = vshll.u32 %v6550_v17, 16 }
  0x2b   : > { %390 = vst.msk [vmem:[#allocation2 + $0x68] sm:$0xf] %vm363_vm1, %v353_v38  ;;  %v6543_v55 = vld [vmem:[#allocation2 + $0x60] sm:$0xff]  ;;  %v6603_v15 = vld [vmem:[#allocation2 + $0x8] sm:$0xf0]  ;;  %v6590_v25 = vld [vmem:[#allocation2 + $0x30] sm:$0xff] }
  0x2c   : > { %391 = vst.msk [vmem:[#allocation2 + $0x6c] sm:$0xf] %vm363_vm1, %v354_v40  ;;  %5751 = vmatmul.msk.bf16.gmra.mxu1 %vm609_vm2, %v6537_v39  ;;  %v6040_v20 = vor.u32 %v6603_v15, %v6039_v14  ;;  %v5857_v26 = vld [vmem:[#allocation2] sm:$0xe]  ;;  %v6567_v27 = vld [vmem:[#allocation2] sm:$0xf0] }
  0x2d   : > { %370 = vst.msk [vmem:[#allocation2 + $0x18] sm:$0xf] %vm363_vm1, %v333_v41  ;;  %v6533_v56 = vld [vmem:[#allocation2 + $0x10] sm:$0xff]  ;;  %v6568_v33 = vld [vmem:[#allocation2 + $0x8] sm:$0xff]  ;;  %v5858_v34 = vor.u32 %v6567_v27, %v5857_v26  ;;  %v1018_v36 = vrot.slane %v1016_v24, 1 }
  0x2e   : > { %371 = vst.msk [vmem:[#allocation2 + $0x1c] sm:$0xf] %vm363_vm1, %v334_v43  ;;  %5756 = vmatmul.msk.bf16.gmra.mxu2 %vm609_vm2, %v6542_v42  ;;  %v6586_v63 = vld [vmem:[#allocation2 + $0x10] sm:$0xff]  ;;  %v2421_v28 = vshrl.u32 %v6040_v20, 16  ;;  %v2424_v29 = vshll.u32 %v6040_v20, 16  ;;  %v1554_v43 = vrot.slane %v6568_v33, 1 }
  0x2f   : > { %398 = vst.msk [vmem:[#allocation2 + $0x88] sm:$0xf] %vm363_vm1, %v361_v45  ;;  %v6547_v49 = vld [vmem:[#allocation2 + $0x80] sm:$0xff]  ;;  %v1987_v6 = vrot.slane %v6586_v63, 1  ;;  %v6604_v21 = vld [vmem:[#allocation2 + $0x10] sm:$0xff]  ;;  %v1553_v42 = vrot.slane %v5858_v34, 1 }
  0x30   : > { %5746 = vmatmul.msk.bf16.gmra.mxu0 %vm609_vm2, %v6532_v44  ;;  %399 = vst.msk [vmem:[#allocation2 + $0x8c] sm:$0xf] %vm363_vm1, %v362_v46  ;;  %v2429_v30 = vshrl.u32 %v6604_v21, 16  ;;  %v2432_v31 = vshll.u32 %v6604_v21, 16  ;;  %v2423_v37 = vrot.slane %v2421_v28, 1  ;;  %v2426_v38 = vrot.slane %v2424_v29, 2 }
  0x31   : > { %382 = vst.msk [vmem:[#allocation2 + $0x48] sm:$0xf] %vm363_vm1, %v345_v47  ;;  %v6539_v58 = vld [vmem:[#allocation2 + $0x40] sm:$0xff]  ;;  %v1988_v11 = vsel %vm1552_vm3, %v1986_v5, %v1987_v6  ;;  %v1019_v44 = vsel %vm1007_vm4, %v1014_v35, %v1018_v36  ;;  %v1555_v47 = vsel %vm1552_vm3, %v1553_v42, %v1554_v43  ;;  %v6607_v24 = vld [vmem:[#allocation2 + $0x28] sm:$0xff] }
  0x32   : > { %383 = vst.msk [vmem:[#allocation2 + $0x4c] sm:$0xf] %vm363_vm1, %v346_v48  ;;  %v2431_v39 = vrot.slane %v2429_v30, 1  ;;  %v2434_v40 = vrot.slane %v2432_v31, 2  ;;  %v2427_v45 = vor.u32 %v2426_v38, %v2423_v37  ;;  %v2456_v28 = vshrl.u32 %v6607_v24, 16 }
  0x33   : > { %392 = vst.msk [vmem:[#allocation2 + $0x70] sm:$0xf] %vm363_vm1, %v355_v50  ;;  %v6544_v59 = vld [vmem:[#allocation2 + $0x68] sm:$0xff]  ;;  %v2459_v29 = vshll.u32 %v6607_v24, 16  ;;  %v1995_v30 = vrot.slane %v6590_v25, 1 }
  0x34   : > { %393 = vst.msk [vmem:[#allocation2 + $0x74] sm:$0xf] %vm363_vm1, %v356_v51  ;;  %v2435_v46 = vor.u32 %v2434_v40, %v2431_v39  ;;  %v2458_v34 = vrot.slane %v2456_v28, 1 }
  0x35   : > { %372 = vst.msk [vmem:[#allocation2 + $0x20] sm:$0xf] %vm363_vm1, %v335_v52  ;;  %v6534_v62 = vld [vmem:[#allocation2 + $0x18] sm:$0xff]  ;;  %v1020_v52 = vshrl.u32 %v6550_v17, 16  ;;  %v2461_v35 = vrot.slane %v2459_v29, 2 }
  0x36   : > { %373 = vst.msk [vmem:[#allocation2 + $0x24] sm:$0xf] %vm363_vm1, %v336_v53  ;;  %v6587_v22 = vld [vmem:[#allocation2 + $0x18] sm:$0xff]  ;;  %v2436_v48 = vsel %vm2419_vm5, %v2427_v45, %v2435_v46  ;;  %v6608_v45 = vld [vmem:[#allocation2 + $0x30] sm:$0xff] }
  0x37   : > { %v6548_v57 = vld [vmem:[#allocation2 + $0x88] sm:$0xff]  ;;  %v1989_v32 = vrot.slane %v6587_v22, 1  ;;  %v6605_v50 = vld [vmem:[#allocation2 + $0x18] sm:$0xff]  ;;  %v2462_v40 = vor.u32 %v2461_v35, %v2458_v34  ;;  %v6610_v34 = vld [vmem:[#allocation2 + $0x40] sm:$0xff] }
  0x38   : > { %5761 = vmatmul.msk.bf16.gmra.mxu3 %vm609_vm2, %v6547_v49  ;;  %v6551_v49 = vld [vmem:[#allocation2 + $0x10] sm:$0xff]  ;;  %v6552_v4 = vld [vmem:[#allocation2 + $0x18] sm:$0xff] }
  0x39   : > { %v6540_v12 = vld [vmem:[#allocation2 + $0x48] sm:$0xff]  ;;  %v1990_v41 = vsel %vm1552_vm3, %v1987_v6, %v1989_v32  ;;  %v1024_v53 = vshll.u32 %v6551_v49, 16  ;;  %v1028_v7 = vshrl.u32 %v6551_v49, 16  ;;  %v1032_v8 = vshll.u32 %v6552_v4, 16 }
  0x3a   : > { %v6589_v6 = vld [vmem:[#allocation2 + $0x28] sm:$0xff]  ;;  %v1036_v26 = vshrl.u32 %v6552_v4, 16 }
  0x3b   : > { %v6545_v16 = vld [vmem:[#allocation2 + $0x70] sm:$0xff]  ;;  %v1034_v14 = vrot.slane %v1032_v8, 1  ;;  %v6592_v8 = vld [vmem:[#allocation2 + $0x40] sm:$0xff]  ;;  %v6593_v35 = vld [vmem:[#allocation2 + $0x48] sm:$0xff] }
  0x3c   : > { %5752 = vmatmul.msk.bf16.gmra.mxu1 %vm609_vm2, %v6538_v54  ;;  %v2438_v54 = vshrl.u32 %v6605_v50, 16 }
  0x3d   : > { %v6535_v18 = vld [vmem:[#allocation2 + $0x20] sm:$0xff] }
  0x3e   : > { %5757 = vmatmul.msk.bf16.gmra.mxu2 %vm609_vm2, %v6543_v55  ;;  %v6588_v51 = vld [vmem:[#allocation2 + $0x20] sm:$0xff]  ;;  %v2441_v55 = vshll.u32 %v6605_v50, 16  ;;  %v2440_v60 = vrot.slane %v2438_v54, 1  ;;  %v6572_v54 = vld [vmem:[#allocation2 + $0x28] sm:$0xff] }
  0x3f   : > { %v6606_v5 = vld [vmem:[#allocation2 + $0x20] sm:$0xff] }
  0x40   : > { %5747 = vmatmul.msk.bf16.gmra.mxu0 %vm609_vm2, %v6533_v56  ;;  %v1991_v56 = vrot.slane %v6588_v51, 1  ;;  %v2443_v61 = vrot.slane %v2441_v55, 2  ;;  %v2447_v9 = vshrl.u32 %v6606_v5, 16  ;;  %v2450_v10 = vshll.u32 %v6606_v5, 16  ;;  %v6553_v23 = vld [vmem:[#allocation2 + $0x20] sm:$0xff] }
  0x41   : > { %v1040_v27 = vshll.u32 %v6553_v23, 16  ;;  %v6571_v31 = vld [vmem:[#allocation2 + $0x20] sm:$0xff]  ;;  %v2465_v51 = vshrl.u32 %v6608_v45, 16 }
  0x42   : > { %v2444_v1 = vor.u32 %v2443_v61, %v2440_v60  ;;  %v2449_v15 = vrot.slane %v2447_v9, 1  ;;  %v1560_v37 = vrot.slane %v6571_v31, 1  ;;  %v1562_v61 = vrot.slane %v6572_v54, 1 }
  0x43   : > { %v1042_v33 = vrot.slane %v1040_v27, 1 }
  0x44   : > { %v2445_v3 = vsel %vm2419_vm5, %v2435_v46, %v2444_v1  ;;  %v6591_v46 = vld [vmem:[#allocation2 + $0x38] sm:$0xff] }
  0x48   : > { %5762 = vmatmul.msk.bf16.gmra.mxu3 %vm609_vm2, %v6548_v57  ;;  %v6569_v57 = vld [vmem:[#allocation2 + $0x10] sm:$0xff] }
  0x49   : > { %v1556_v63 = vrot.slane %v6569_v57, 1 }
  0x4b   : > { %v1557_v2 = vsel %vm1552_vm3, %v1554_v43, %v1556_v63 }
  0x4c   : > { %5753 = vmatmul.msk.bf16.gmra.mxu1 %vm609_vm2, %v6539_v58  ;;  %v1022_v58 = vor.u32 %v1020_v52, %v1018_v36  ;;  %v2468_v52 = vshll.u32 %v6608_v45, 16  ;;  %v6574_v45 = vld [vmem:[#allocation2 + $0x38] sm:$0xff] }
  0x4e   : > { %5758 = vmatmul.msk.bf16.gmra.mxu2 %vm609_vm2, %v6544_v59  ;;  %v1026_v59 = vrot.slane %v1024_v53, 1  ;;  %v1997_v53 = vrot.slane %v6591_v46, 1 }
  0x50   : > { %5748 = vmatmul.msk.bf16.gmra.mxu0 %vm609_vm2, %v6534_v62  ;;  %v1992_v62 = vsel %vm1552_vm3, %v1989_v32, %v1991_v56  ;;  %v1027_v0 = vsel %vm1007_vm4, %v1022_v58, %v1026_v59  ;;  %v1030_v13 = vor.u32 %v1028_v7, %v1026_v59  ;;  %v1038_v32 = vor.u32 %v1036_v26, %v1034_v14  ;;  %v6609_v7 = vld [vmem:[#allocation2 + $0x38] sm:$0xff] }
  0x51   : > { %v2467_v58 = vrot.slane %v2465_v51, 1  ;;  %v2470_v59 = vrot.slane %v2468_v52, 2  ;;  %v1998_v60 = vsel %vm1552_vm3, %v1995_v30, %v1997_v53 }
  0x52   : > { %v1035_v19 = vsel %vm1007_vm4, %v1030_v13, %v1034_v14  ;;  %v1043_v39 = vsel %vm1007_vm4, %v1038_v32, %v1042_v33  ;;  %v2474_v13 = vshrl.u32 %v6609_v7, 16  ;;  %v2477_v14 = vshll.u32 %v6609_v7, 16  ;;  %v6594_v7 = vld [vmem:[#allocation2 + $0x50] sm:$0xff] }
  0x58   : > { %6018 = vmatmul.msk.bf16.vlgmr.msrb.gmra.mxu3 %vm609_vm2, %v1988_v11  ;;  %v1993_v11 = vrot.slane %v6589_v6, 1  ;;  %v6555_v6 = vld [vmem:[#allocation2 + $0x30] sm:$0xff] }
  0x5a   : > { %v1994_v17 = vsel %vm1552_vm3, %v1991_v56, %v1993_v11  ;;  %v1996_v36 = vsel %vm1552_vm3, %v1993_v11, %v1995_v30 }
  0x5c   : > { %5754 = vmatmul.msk.bf16.gmra.mxu1 %vm609_vm2, %v6540_v12  ;;  %v6570_v12 = vld [vmem:[#allocation2 + $0x18] sm:$0xff] }
  0x5e   : > { %5759 = vmatmul.msk.bf16.gmra.mxu2 %vm609_vm2, %v6545_v16  ;;  %v2452_v16 = vrot.slane %v2450_v10, 2 }
  0x60   : > { %5749 = vmatmul.msk.bf16.gmra.mxu0 %vm609_vm2, %v6535_v18  ;;  %v1558_v18 = vrot.slane %v6570_v12, 1  ;;  %v2453_v20 = vor.u32 %v2452_v16, %v2449_v15  ;;  %v1056_v12 = vshll.u32 %v6555_v6, 16  ;;  %v1999_v15 = vrot.slane %v6592_v8, 1  ;;  %v6573_v16 = vld [vmem:[#allocation2 + $0x30] sm:$0xff] }
  0x61   : > { %v1564_v24 = vrot.slane %v6573_v16, 1  ;;  %v2003_v16 = vrot.slane %v6594_v7, 1 }
  0x62   : > { %v1559_v21 = vsel %vm1552_vm3, %v1556_v63, %v1558_v18  ;;  %v2454_v22 = vsel %vm2419_vm5, %v2444_v1, %v2453_v20  ;;  %v2463_v43 = vsel %vm2419_vm5, %v2453_v20, %v2462_v40  ;;  %v2471_v1 = vor.u32 %v2470_v59, %v2467_v58 }
  0x63   : > { %v1058_v20 = vrot.slane %v1056_v12, 1  ;;  %v1565_v29 = vsel %vm1552_vm3, %v1562_v61, %v1564_v24 }
  0x64   : > { %v2472_v5 = vsel %vm2419_vm5, %v2462_v40, %v2471_v1 }
  0x68   : > { %6019 = vmatmul.msk.bf16.gmra.mxu3 %vm609_vm2, %v1990_v41  ;;  %v1561_v41 = vsel %vm1552_vm3, %v1558_v18, %v1560_v37 }
  0x6c   : > { %5836 = vmatmul.msk.bf16.vlgmr.msrb.gmra.mxu1 %vm609_vm2, %v1019_v44  ;;  %v6554_v44 = vld [vmem:[#allocation2 + $0x28] sm:$0xff] }
  0x6d   : > { %v1048_v50 = vshll.u32 %v6554_v44, 16  ;;  %v1052_v9 = vshrl.u32 %v6554_v44, 16  ;;  %v2001_v44 = vrot.slane %v6593_v35, 1 }
  0x6e   : > { %5927 = vmatmul.msk.bf16.vlgmr.msrb.gmra.mxu2 %vm609_vm2, %v1555_v47  ;;  %v1044_v47 = vshrl.u32 %v6553_v23, 16  ;;  %v2000_v23 = vsel %vm1552_vm3, %v1997_v53, %v1999_v15 }
  0x6f   : > { %v1050_v57 = vrot.slane %v1048_v50, 1  ;;  %v2002_v54 = vsel %vm1552_vm3, %v1999_v15, %v2001_v44 }
  0x70   : > { %6109 = vmatmul.msk.bf16.vlgmr.msrb.gmra.mxu0 %vm609_vm2, %v2436_v48  ;;  %v1046_v55 = vor.u32 %v1044_v47, %v1042_v33  ;;  %v6556_v33 = vld [vmem:[#allocation2 + $0x38] sm:$0xff] }
  0x71   : > { %v1054_v18 = vor.u32 %v1052_v9, %v1050_v57  ;;  %v1064_v40 = vshll.u32 %v6556_v33, 16  ;;  %v1068_v8 = vshrl.u32 %v6556_v33, 16 }
  0x73   : > { %v1059_v27 = vsel %vm1007_vm4, %v1054_v18, %v1058_v20  ;;  %v1066_v51 = vrot.slane %v1064_v40, 1  ;;  %v6575_v18 = vld [vmem:[#allocation2 + $0x40] sm:$0xff] }
  0x78   : > { %6020 = vmatmul.msk.bf16.gmra.mxu3 %vm609_vm2, %v1992_v62 }
  0x7c   : > { %5837 = vmatmul.msk.bf16.gmra.mxu1 %vm609_vm2, %v1027_v0  ;;  %v1051_v0 = vsel %vm1007_vm4, %v1046_v55, %v1050_v57  ;;  %v1566_v55 = vrot.slane %v6574_v45, 1  ;;  %v6612_v45 = vld [vmem:[#allocation2 + $0x50] sm:$0xff] }
  0x7e   : > { %5928 = vmatmul.msk.bf16.gmra.mxu2 %vm609_vm2, %v1557_v2  ;;  %v1563_v2 = vsel %vm1552_vm3, %v1560_v37, %v1562_v61  ;;  %v1567_v61 = vsel %vm1552_vm3, %v1564_v24, %v1566_v55 }
  0x80   : > { %6110 = vmatmul.msk.bf16.gmra.mxu0 %vm609_vm2, %v2445_v3 }
  0x88   : > { %6021 = vmatmul.msk.bf16.gmra.mxu3 %vm609_vm2, %v1994_v17 }
  0x8c   : > { %5838 = vmatmul.msk.bf16.gmra.mxu1 %vm609_vm2, %v1035_v19 }
  0x8e   : > { %5929 = vmatmul.msk.bf16.gmra.mxu2 %vm609_vm2, %v1559_v21  ;;  %v2476_v21 = vrot.slane %v2474_v13, 1 }
  0x90   : > { %6111 = vmatmul.msk.bf16.gmra.mxu0 %vm609_vm2, %v2454_v22  ;;  %v2479_v22 = vrot.slane %v2477_v14, 2 }
  0x92   : > { %v2480_v28 = vor.u32 %v2479_v22, %v2476_v21  ;;  %v1070_v21 = vor.u32 %v1068_v8, %v1066_v51 }
  0x94   : > { %v2481_v32 = vsel %vm2419_vm5, %v2471_v1, %v2480_v28 }
  0x98   : > { %6022 = vmatmul.msk.bf16.gmra.mxu3 %vm609_vm2, %v1996_v36  ;;  %v1060_v36 = vshrl.u32 %v6555_v6, 16  ;;  %v6611_v6 = vld [vmem:[#allocation2 + $0x48] sm:$0xff] }
  0x99   : > { %v7099_v38 = vpop.f32.mrf.mxu1  ;;  %v2492_v14 = vshrl.u32 %v6611_v6, 16  ;;  %v2495_v15 = vshll.u32 %v6611_v6, 16 }
  0x9a   : > { %v1062_v47 = vor.u32 %v1060_v36, %v1058_v20 }
  0x9b   : > { %v2494_v24 = vrot.slane %v2492_v14, 1 }
  0x9c   : > { %5839 = vmatmul.msk.bf16.gmra.mxu1 %vm609_vm2, %v1043_v39  ;;  %v1067_v59 = vsel %vm1007_vm4, %v1062_v47, %v1066_v51  ;;  %v6595_v47 = vld [vmem:[#allocation2 + $0x58] sm:$0xff] }
  0x9d   : > { %v7104_v42 = vpop.f32.mrf.mxu0 }
  0x9e   : > { %5930 = vmatmul.msk.bf16.gmra.mxu2 %vm609_vm2, %v1561_v41  ;;  %v2483_v41 = vshrl.u32 %v6610_v34, 16 }
  0xa0   : > { %6112 = vmatmul.msk.bf16.gmra.mxu0 %vm609_vm2, %v2463_v43  ;;  %v2486_v43 = vshll.u32 %v6610_v34, 16  ;;  %v2485_v52 = vrot.slane %v2483_v41, 1 }
  0xa1   : > { %v7109_v48 = vpop.f32.mrf.mxu2  ;;  %v7111_v49 = vpop.f32.mrf.mxu1 }
  0xa2   : > { %v2488_v53 = vrot.slane %v2486_v43, 2 }
  0xa5   : > { %v7113_v56 = vpop.f32.mrf.mxu0 }
  0xa8   : > { %6023 = vmatmul.msk.bf16.gmra.mxu3 %vm609_vm2, %v1998_v60  ;;  %v2489_v60 = vor.u32 %v2488_v53, %v2485_v52 }
  0xa9   : > { %v7117_v62 = vpop.f32.mrf.mxu2  ;;  %v7119_v63 = vpop.f32.mrf.mxu1 }
  0xab   : > { %v7123_v3 = vpop.f32.mrf.mxu3 }
  0xac   : > { %5840 = vmatmul.msk.bf16.gmra.mxu1 %vm609_vm2, %v1051_v0 }
  0xad   : > { %v7126_v4 = vpop.f32.mrf.mxu0 }
  0xae   : > { %5931 = vmatmul.msk.bf16.gmra.mxu2 %vm609_vm2, %v1563_v2  ;;  %v2490_v2 = vsel %vm2419_vm5, %v2480_v28, %v2489_v60  ;;  %v2004_v28 = vsel %vm1552_vm3, %v2001_v44, %v2003_v16  ;;  %v6558_v44 = vld [vmem:[#allocation2 + $0x48] sm:$0xff] }
  0xb0   : > { %6113 = vmatmul.msk.bf16.gmra.mxu0 %vm609_vm2, %v2472_v5  ;;  %v6557_v5 = vld [vmem:[#allocation2 + $0x40] sm:$0xff] }
  0xb1   : > { %v7131_v10 = vpop.f32.mrf.mxu2  ;;  %v7133_v11 = vpop.f32.mrf.mxu1  ;;  %v1072_v13 = vshll.u32 %v6557_v5, 16  ;;  %v1076_v51 = vshrl.u32 %v6557_v5, 16 }
  0xb3   : > { %v7135_v17 = vpop.f32.mrf.mxu3 }
  0xb5   : > { %v7137_v19 = vpop.f32.mrf.mxu0 }
  0xb8   : > { %6024 = vmatmul.msk.bf16.gmra.mxu3 %vm609_vm2, %v2000_v23  ;;  %v1074_v23 = vrot.slane %v1072_v13, 1 }
  0xb9   : > { %v7141_v25 = vpop.f32.mrf.mxu2  ;;  %v7143_v26 = vpop.f32.mrf.mxu1 }
  0xba   : > { %v1075_v34 = vsel %vm1007_vm4, %v1070_v21, %v1074_v23  ;;  %v1078_v7 = vor.u32 %v1076_v51, %v1074_v23  ;;  %v1084_v51 = vshrl.u32 %v6558_v44, 16 }
  0xbb   : > { %v7147_v30 = vpop.f32.mrf.mxu3 }
  0xbc   : > { %5841 = vmatmul.msk.bf16.gmra.mxu1 %vm609_vm2, %v1059_v27  ;;  %v2497_v27 = vrot.slane %v2495_v15, 2 }
  0xbd   : > { %v7150_v31 = vpop.f32.mrf.mxu0 }
  0xbe   : > { %5932 = vmatmul.msk.bf16.gmra.mxu2 %vm609_vm2, %v1565_v29  ;;  %v1568_v29 = vrot.slane %v6575_v18, 1  ;;  %v2498_v35 = vor.u32 %v2497_v27, %v2494_v24 }
  0xc0   : > { %6114 = vmatmul.msk.bf16.gmra.mxu0 %vm609_vm2, %v2481_v32  ;;  %v1569_v36 = vsel %vm1552_vm3, %v1566_v55, %v1568_v29  ;;  %v2499_v43 = vsel %vm2419_vm5, %v2489_v60, %v2498_v35  ;;  %v2501_v55 = vshrl.u32 %v6612_v45, 16 }
  0xc1   : > { %v7155_v37 = vpop.f32.mrf.mxu2  ;;  %v7157_v39 = vpop.f32.mrf.mxu1 }
  0xc2   : > { %v2503_v13 = vrot.slane %v2501_v55, 1 }
  0xc3   : > { %v7159_v46 = vpop.f32.mrf.mxu3 }
  0xc4   : > { %8367 = vst [vmem:[#allocation4_spill] sm:$0xff] %v7159_v46 }
  0xc5   : > { %v7161_v50 = vpop.f32.mrf.mxu0 }
  0xc8   : > { %6025 = vmatmul.msk.bf16.gmra.mxu3 %vm609_vm2, %v2002_v54  ;;  %v1080_v54 = vshll.u32 %v6558_v44, 16 }
  0xc9   : > { %v7165_v57 = vpop.f32.mrf.mxu2  ;;  %v7167_v58 = vpop.f32.mrf.mxu1 }
  0xca   : > { %v1082_v8 = vrot.slane %v1080_v54, 1 }
  0xcb   : > { %v7171_v0 = vpop.f32.mrf.mxu3 }
  0xcc   : > { %8368 = vst [vmem:[#allocation5_spill] sm:$0xff] %v7171_v0  ;;  %5842 = vmatmul.msk.bf16.gmra.mxu1 %vm609_vm2, %v1067_v59  ;;  %v2504_v59 = vshll.u32 %v6612_v45, 16  ;;  %v1083_v24 = vsel %vm1007_vm4, %v1078_v7, %v1082_v8  ;;  %v6613_v45 = vld [vmem:[#allocation2 + $0x58] sm:$0xff] }
  0xcd   : > { %v7174_v1 = vpop.f32.mrf.mxu0 }
  0xce   : > { %5933 = vmatmul.msk.bf16.gmra.mxu2 %vm609_vm2, %v1567_v61  ;;  %v2005_v61 = vrot.slane %v6595_v47, 1  ;;  %v2506_v14 = vrot.slane %v2504_v59, 2 }
  0xd0   : > { %6115 = vmatmul.msk.bf16.gmra.mxu0 %vm609_vm2, %v2490_v2  ;;  %v6576_v2 = vld [vmem:[#allocation2 + $0x48] sm:$0xff]  ;;  %v2006_v15 = vsel %vm1552_vm3, %v2003_v16, %v2005_v61  ;;  %v2507_v27 = vor.u32 %v2506_v14, %v2503_v13  ;;  %v6596_v16 = vld [vmem:[#allocation2 + $0x60] sm:$0xff]  ;;  %v6577_v14 = vld [vmem:[#allocation2 + $0x50] sm:$0xff] }
  0xd1   : > { %v7179_v9 = vpop.f32.mrf.mxu2  ;;  %v7181_v12 = vpop.f32.mrf.mxu1  ;;  %v1570_v18 = vrot.slane %v6576_v2, 1  ;;  %v2513_v2 = vshll.u32 %v6613_v45, 16  ;;  %v2007_v7 = vrot.slane %v6596_v16, 1  ;;  %v1572_v44 = vrot.slane %v6577_v14, 1 }
  0xd3   : > { %v7183_v20 = vpop.f32.mrf.mxu3 }
  0xd4   : > { %8369 = vst [vmem:[#allocation6_spill] sm:$0xff] %v7183_v20 }
  0xd5   : > { %v7185_v22 = vpop.f32.mrf.mxu0 }
  0xd8   : > { %6026 = vmatmul.msk.bf16.gmra.mxu3 %vm609_vm2, %v2004_v28  ;;  %v1571_v28 = vsel %vm1552_vm3, %v1568_v29, %v1570_v18  ;;  %v2510_v29 = vshrl.u32 %v6613_v45, 16 }
  0xd9   : > { %v7189_v32 = vpop.f32.mrf.mxu2  ;;  %v7191_v33 = vpop.f32.mrf.mxu1 }
  0xda   : > { %v2512_v46 = vrot.slane %v2510_v29, 1  ;;  %v6560_v29 = vld [vmem:[#allocation2 + $0x58] sm:$0xff] }
  0xdb   : > { %v2089_v40 = vpop.f32.mrf.mxu3 }
  0xdc   : > { %5843 = vmatmul.msk.bf16.gmra.mxu1 %vm609_vm2, %v1075_v34 }
  0xdd   : > { %v7196_v41 = vpop.f32.mrf.mxu0 }
  0xde   : > { %5934 = vmatmul.msk.bf16.gmra.mxu2 %vm609_vm2, %v1569_v36  ;;  %v2508_v36 = vsel %vm2419_vm5, %v2498_v35, %v2507_v27 }
  0xe0   : > { %6116 = vmatmul.msk.bf16.gmra.mxu0 %vm609_vm2, %v2499_v43  ;;  %v6559_v43 = vld [vmem:[#allocation2 + $0x50] sm:$0xff] }
  0xe1   : > { %v7201_v52 = vpop.f32.mrf.mxu2  ;;  %v7203_v53 = vpop.f32.mrf.mxu1  ;;  %v1088_v59 = vshll.u32 %v6559_v43, 16 }
  0xe3   : > { %v2091_v6 = vpop.f32.mrf.mxu3  ;;  %v1090_v0 = vrot.slane %v1088_v59, 1 }
  0xe5   : > { %v7205_v60 = vpop.f32.mrf.mxu0 }
  0xe8   : > { %6027 = vmatmul.msk.bf16.gmra.mxu3 %vm609_vm2, %v2006_v15 }
  0xe9   : > { %v7209_v5 = vpop.f32.mrf.mxu2  ;;  %v1222_v21 = vpop.f32.mrf.mxu1 }
  0xea   : > { %v1312_v47 = vadd.f32 %v1222_v21, %v7104_v42  ;;  %v2008_v42 = vsel %vm1552_vm3, %v2005_v61, %v2007_v7 }
  0xeb   : > { %v2094_v34 = vpop.f32.mrf.mxu3 }
  0xec   : > { %5844 = vmatmul.msk.bf16.gmra.mxu1 %vm609_vm2, %v1083_v24  ;;  %v1086_v24 = vor.u32 %v1084_v51, %v1082_v8  ;;  %v1573_v8 = vsel %vm1552_vm3, %v1570_v18, %v1572_v44 }
  0xed   : > { %v2656_v23 = vpop.f32.mrf.mxu0 }
  0xee   : > { %5935 = vmatmul.msk.bf16.gmra.mxu2 %vm609_vm2, %v1571_v28  ;;  %v2515_v28 = vrot.slane %v2513_v2, 2  ;;  %v6614_v2 = vld [vmem:[#allocation2 + $0x60] sm:$0xff] }
  0xf0   : > { %6117 = vmatmul.msk.bf16.gmra.mxu0 %vm609_vm2, %v2508_v36 }
  0xf1   : > { %v1656_v54 = vpop.f32.mrf.mxu2  ;;  %v1224_v55 = vpop.f32.mrf.mxu1 }
  0xf2   : > { %v1746_v13 = vadd.f32 %v1656_v54, %v1312_v47  ;;  %v1313_v36 = vadd.f32 %v1224_v55, %v7113_v56  ;;  %v1091_v47 = vsel %vm1007_vm4, %v1086_v24, %v1090_v0  ;;  %v2516_v54 = vor.u32 %v2515_v28, %v2512_v46  ;;  %v6597_v56 = vld [vmem:[#allocation2 + $0x68] sm:$0xff] }
  0xf3   : > { %v2096_v15 = vpop.f32.mrf.mxu3  ;;  %v1092_v46 = vshrl.u32 %v6559_v43, 16  ;;  %v2522_v24 = vshll.u32 %v6614_v2, 16  ;;  %v2009_v28 = vrot.slane %v6597_v56, 1 }
  0xf4   : > { %v2179_v35 = vadd.f32 %v2089_v40, %v1746_v13 }
  0xf5   : > { %v2658_v20 = vpop.f32.mrf.mxu0 }
  0xf6   : > { %v7219_v21 = vadd.f32 %v2656_v23, %v2179_v35  ;;  %v2517_v23 = vsel %vm2419_vm5, %v2507_v27, %v2516_v54  ;;  %v2519_v35 = vshrl.u32 %v6614_v2, 16  ;;  %v6578_v27 = vld [vmem:[#allocation2 + $0x58] sm:$0xff] }
  0xf7   : > { %v1574_v43 = vrot.slane %v6578_v27, 1  ;;  %v1100_v27 = vshrl.u32 %v6560_v29, 16 }
  0xf8   : > { %6028 = vmatmul.msk.bf16.gmra.mxu3 %vm609_vm2, %v2008_v42 }
  0xf9   : > { %v1658_v45 = vpop.f32.mrf.mxu2  ;;  %v1227_v16 = vpop.f32.mrf.mxu1 }
  0xfa   : > { %v1747_v40 = vadd.f32 %v1658_v45, %v1313_v36  ;;  %v1314_v13 = vadd.f32 %v1227_v16, %v7126_v4  ;;  %v2010_v4 = vsel %vm1552_vm3, %v2007_v7, %v2009_v28 }
  0xfb   : > { %v2099_v51 = vpop.f32.mrf.mxu3 }
  0xfc   : > { %v2180_v59 = vadd.f32 %v2091_v6, %v1747_v40  ;;  %5845 = vmatmul.msk.bf16.gmra.mxu1 %vm609_vm2, %v1091_v47  ;;  %v1096_v6 = vshll.u32 %v6560_v29, 16  ;;  %v1094_v47 = vor.u32 %v1092_v46, %v1090_v0  ;;  %v1575_v0 = vsel %vm1552_vm3, %v1572_v44, %v1574_v43 }
  0xfd   : > { %v2661_v61 = vpop.f32.mrf.mxu0 }
  0xfe   : > { %5936 = vmatmul.msk.bf16.gmra.mxu2 %vm609_vm2, %v1573_v8  ;;  %v7228_v55 = vadd.f32 %v2658_v20, %v2180_v59  ;;  %v1098_v8 = vrot.slane %v1096_v6, 1  ;;  %v2521_v20 = vrot.slane %v2519_v35, 1  ;;  %v2524_v59 = vrot.slane %v2522_v24, 2  ;;  %v6561_v35 = vld [vmem:[#allocation2 + $0x60] sm:$0xff]  ;;  %v6615_v24 = vld [vmem:[#allocation2 + $0x68] sm:$0xff] }
 0x100   : > { %6118 = vmatmul.msk.bf16.gmra.mxu0 %vm609_vm2, %v2517_v23 }
 0x101   : > { %v1661_v18 = vpop.f32.mrf.mxu2  ;;  %v1229_v14 = vpop.f32.mrf.mxu1 }
 0x102   : > { %v1748_v42 = vadd.f32 %v1661_v18, %v1314_v13  ;;  %v1315_v23 = vadd.f32 %v1229_v14, %v7137_v19  ;;  %v1099_v13 = vsel %vm1007_vm4, %v1094_v47, %v1098_v8  ;;  %v2525_v18 = vor.u32 %v2524_v59, %v2521_v20  ;;  %v6598_v19 = vld [vmem:[#allocation2 + $0x70] sm:$0xff] }
 0x103   : > { %v2101_v36 = vpop.f32.mrf.mxu3  ;;  %v2528_v47 = vshrl.u32 %v6615_v24, 16  ;;  %v2531_v20 = vshll.u32 %v6615_v24, 16  ;;  %v2011_v59 = vrot.slane %v6598_v19, 1 }
 0x104   : > { %v2181_v45 = vadd.f32 %v2094_v34, %v1748_v42 }
 0x105   : > { %v2663_v40 = vpop.f32.mrf.mxu0 }
 0x106   : > { %v7233_v16 = vadd.f32 %v2661_v61, %v2181_v45  ;;  %v2526_v61 = vsel %vm2419_vm5, %v2516_v54, %v2525_v18  ;;  %v6579_v54 = vld [vmem:[#allocation2 + $0x60] sm:$0xff] }
 0x107   : > { %v1576_v29 = vrot.slane %v6579_v54, 1  ;;  %v1108_v54 = vshrl.u32 %v6561_v35, 16 }
 0x108   : > { %6029 = vmatmul.msk.bf16.gmra.mxu3 %vm609_vm2, %v2010_v4 }
 0x109   : > { %v1663_v2 = vpop.f32.mrf.mxu2  ;;  %v1232_v56 = vpop.f32.mrf.mxu1 }
 0x10a   : > { %v1749_v34 = vadd.f32 %v1663_v2, %v1315_v23  ;;  %v1316_v42 = vadd.f32 %v1232_v56, %v7150_v31  ;;  %v2012_v31 = vsel %vm1552_vm3, %v2009_v28, %v2011_v59 }
 0x10b   : > { %v2104_v46 = vpop.f32.mrf.mxu3 }
 0x10c   : > { %v2182_v6 = vadd.f32 %v2096_v15, %v1749_v34  ;;  %5846 = vmatmul.msk.bf16.gmra.mxu1 %vm609_vm2, %v1099_v13  ;;  %v1104_v15 = vshll.u32 %v6561_v35, 16  ;;  %v1102_v13 = vor.u32 %v1100_v27, %v1098_v8  ;;  %v1577_v8 = vsel %vm1552_vm3, %v1574_v43, %v1576_v29 }
 0x10d   : > { %v2666_v7 = vpop.f32.mrf.mxu0 }
 0x10e   : > { %5937 = vmatmul.msk.bf16.gmra.mxu2 %vm609_vm2, %v1575_v0  ;;  %v7242_v14 = vadd.f32 %v2663_v40, %v2182_v6  ;;  %v1106_v0 = vrot.slane %v1104_v15, 1  ;;  %v2530_v40 = vrot.slane %v2528_v47, 1  ;;  %v2533_v6 = vrot.slane %v2531_v20, 2  ;;  %v6562_v47 = vld [vmem:[#allocation2 + $0x68] sm:$0xff]  ;;  %v6616_v20 = vld [vmem:[#allocation2 + $0x70] sm:$0xff] }
 0x110   : > { %6119 = vmatmul.msk.bf16.gmra.mxu0 %vm609_vm2, %v2526_v61 }
 0x111   : > { %v1666_v44 = vpop.f32.mrf.mxu2  ;;  %v1234_v45 = vpop.f32.mrf.mxu1 }
 0x112   : > { %v1750_v4 = vadd.f32 %v1666_v44, %v1316_v42  ;;  %v1317_v61 = vadd.f32 %v1234_v45, %v7161_v50  ;;  %v1107_v42 = vsel %vm1007_vm4, %v1102_v13, %v1106_v0  ;;  %v2534_v44 = vor.u32 %v2533_v6, %v2530_v40  ;;  %v6599_v50 = vld [vmem:[#allocation2 + $0x78] sm:$0xff] }
 0x113   : > { %v2106_v23 = vpop.f32.mrf.mxu3  ;;  %v2537_v13 = vshrl.u32 %v6616_v20, 16  ;;  %v2540_v40 = vshll.u32 %v6616_v20, 16  ;;  %v2013_v6 = vrot.slane %v6599_v50, 1 }
 0x114   : > { %v2183_v2 = vadd.f32 %v2099_v51, %v1750_v4 }
 0x115   : > { %v2668_v34 = vpop.f32.mrf.mxu0 }
 0x116   : > { %v7247_v56 = vadd.f32 %v2666_v7, %v2183_v2  ;;  %v2535_v7 = vsel %vm2419_vm5, %v2525_v18, %v2534_v44  ;;  %v6580_v18 = vld [vmem:[#allocation2 + $0x68] sm:$0xff] }
 0x117   : > { %v1578_v35 = vrot.slane %v6580_v18, 1 }
 0x118   : > { %6030 = vmatmul.msk.bf16.gmra.mxu3 %vm609_vm2, %v2012_v31 }
 0x119   : > { %v1668_v24 = vpop.f32.mrf.mxu2  ;;  %v1237_v19 = vpop.f32.mrf.mxu1 }
 0x11a   : > { %v1751_v51 = vadd.f32 %v1668_v24, %v1317_v61  ;;  %v1318_v4 = vadd.f32 %v1237_v19, %v7174_v1  ;;  %v2014_v1 = vsel %vm1552_vm3, %v2011_v59, %v2013_v6 }
 0x11b   : > { %v2109_v27 = vpop.f32.mrf.mxu3 }
 0x11c   : > { %v2184_v15 = vadd.f32 %v2101_v36, %v1751_v51  ;;  %5847 = vmatmul.msk.bf16.gmra.mxu1 %vm609_vm2, %v1107_v42  ;;  %v1112_v36 = vshll.u32 %v6562_v47, 16  ;;  %v1110_v42 = vor.u32 %v1108_v54, %v1106_v0  ;;  %v1579_v0 = vsel %vm1552_vm3, %v1576_v29, %v1578_v35 }
 0x11d   : > { %v2671_v28 = vpop.f32.mrf.mxu0  ;;  %v1116_v29 = vshrl.u32 %v6562_v47, 16 }
 0x11e   : > { %5938 = vmatmul.msk.bf16.gmra.mxu2 %vm609_vm2, %v1577_v8  ;;  %v7256_v45 = vadd.f32 %v2668_v34, %v2184_v15  ;;  %v1114_v8 = vrot.slane %v1112_v36, 1  ;;  %v2539_v34 = vrot.slane %v2537_v13, 1  ;;  %v2542_v15 = vrot.slane %v2540_v40, 2  ;;  %v7271_v13 = vld [vmem:[#allocation2 + $0x70] sm:$0xff] }
 0x120   : > { %6120 = vmatmul.msk.bf16.gmra.mxu0 %vm609_vm2, %v2535_v7 }
 0x121   : > { %v1671_v43 = vpop.f32.mrf.mxu2  ;;  %v1239_v2 = vpop.f32.mrf.mxu1 }
 0x122   : > { %v1752_v31 = vadd.f32 %v1671_v43, %v1318_v4  ;;  %v1319_v7 = vadd.f32 %v1239_v2, %v7185_v22  ;;  %v1115_v4 = vsel %vm1007_vm4, %v1110_v42, %v1114_v8  ;;  %v2543_v43 = vor.u32 %v2542_v15, %v2539_v34  ;;  %v6617_v22 = vld [vmem:[#allocation2 + $0x78] sm:$0xff]  ;;  %v7273_v2 = vld [vmem:[#allocation2 + $0x80] sm:$0xff] }
 0x123   : > { %v2111_v61 = vpop.f32.mrf.mxu3  ;;  %v2549_v42 = vshll.u32 %v6617_v22, 16  ;;  %v2015_v34 = vrot.slane %v7273_v2, 1 }
 0x124   : > { %v2185_v24 = vadd.f32 %v2104_v46, %v1752_v31 }
 0x125   : > { %v2673_v51 = vpop.f32.mrf.mxu0  ;;  %v2551_v47 = vrot.slane %v2549_v42, 2  ;;  %v6618_v42 = vld [vmem:[#allocation2 + $0x80] sm:$0xff] }
 0x126   : > { %v7261_v19 = vadd.f32 %v2671_v28, %v2185_v24  ;;  %v2544_v28 = vsel %vm2419_vm5, %v2534_v44, %v2543_v43  ;;  %v1120_v24 = vshll.u32 %v7271_v13, 16  ;;  %v2546_v44 = vshrl.u32 %v6617_v22, 16 }
 0x128   : > { %6031 = vmatmul.msk.bf16.gmra.mxu3 %vm609_vm2, %v2014_v1  ;;  %v7282_v1 = vld [vmem:[#allocation2 + $0x70] sm:$0xff] }
 0x129   : > { %v1673_v20 = vpop.f32.mrf.mxu2  ;;  %v1242_v50 = vpop.f32.mrf.mxu1 }
 0x12a   : > { %v1753_v46 = vadd.f32 %v1673_v20, %v1319_v7  ;;  %v1320_v31 = vadd.f32 %v1242_v50, %v7196_v41  ;;  %v1118_v20 = vor.u32 %v1116_v29, %v1114_v8  ;;  %v1122_v50 = vrot.slane %v1120_v24, 1 }
 0x12b   : > { %v7267_v54 = vpop.f32.mrf.mxu3 }
 0x12c   : > { %v2186_v36 = vadd.f32 %v2106_v23, %v1753_v46  ;;  %5848 = vmatmul.msk.bf16.gmra.mxu1 %vm609_vm2, %v1115_v4  ;;  %v2548_v4 = vrot.slane %v2546_v44, 1  ;;  %v2016_v46 = vsel %vm1552_vm3, %v2013_v6, %v2015_v34  ;;  %v1123_v6 = vsel %vm1007_vm4, %v1118_v20, %v1122_v50  ;;  %v6564_v44 = vld [vmem:[#allocation2 + $0x78] sm:$0xff] }
 0x12d   : > { %v2676_v59 = vpop.f32.mrf.mxu0 }
 0x12e   : > { %5939 = vmatmul.msk.bf16.gmra.mxu2 %vm609_vm2, %v1579_v0  ;;  %v7276_v40 = vadd.f32 %v2673_v51, %v2186_v36  ;;  %v1580_v36 = vrot.slane %v7282_v1, 1  ;;  %v2552_v22 = vor.u32 %v2551_v47, %v2548_v4  ;;  %v1124_v1 = vshrl.u32 %v7271_v13, 16 }
 0x12f   : > { %v1128_v4 = vshll.u32 %v6564_v44, 16  ;;  %v2558_v47 = vshll.u32 %v6618_v42, 16 }
 0x130   : > { %6121 = vmatmul.msk.bf16.gmra.mxu0 %vm609_vm2, %v2544_v28  ;;  %v1581_v2 = vsel %vm1552_vm3, %v1578_v35, %v1580_v36  ;;  %v2553_v24 = vsel %vm2419_vm5, %v2543_v43, %v2552_v22  ;;  %v2555_v43 = vshrl.u32 %v6618_v42, 16  ;;  %v402_v42 = vld [vmem:[%s7296_s21 + $0x8] sm:$0xf] }
 0x131   : > { %v1676_v23 = vpop.f32.mrf.mxu2  ;;  %v1244_v18 = vpop.f32.mrf.mxu1  ;;  %v2560_v13 = vrot.slane %v2558_v47, 2  ;;  %407 = vst.msk [vmem:[#allocation2 + $0x98] sm:$0xf] %vm363_vm1, %v402_v42 }
 0x132   : > { %v1754_v15 = vadd.f32 %v1676_v23, %v1320_v31  ;;  %v1321_v28 = vadd.f32 %v1244_v18, %v7205_v60  ;;  %v400_v60 = vld [vmem:[%s7296_s21] sm:$0xf]  ;;  %v401_v23 = vld [vmem:[%s7296_s21 + $0x4] sm:$0xf] }
 0x133   : > { %v7284_v7 = vpop.f32.mrf.mxu3  ;;  %405 = vst.msk [vmem:[#allocation2 + $0x90] sm:$0xf] %vm363_vm1, %v400_v60 }
 0x134   : > { %v2187_v51 = vadd.f32 %v2109_v27, %v1754_v15  ;;  %v7307_v15 = vld [vmem:[#allocation2 + $0x88] sm:$0xff]  ;;  %406 = vst.msk [vmem:[#allocation2 + $0x94] sm:$0xf] %vm363_vm1, %v401_v23 }
 0x135   : > { %v2678_v41 = vpop.f32.mrf.mxu0 }
 0x136   : > { %v7288_v0 = vadd.f32 %v2676_v59, %v2187_v51 }
 0x138   : > { %6032 = vmatmul.msk.bf16.gmra.mxu3 %vm609_vm2, %v2016_v46  ;;  %v2017_v46 = vrot.slane %v7307_v15, 1 }
 0x139   : > { %v1678_v27 = vpop.f32.mrf.mxu2  ;;  %v1247_v8 = vpop.f32.mrf.mxu1 }
 0x13a   : > { %v1755_v59 = vadd.f32 %v1678_v27, %v1321_v28  ;;  %v7317_v27 = vld [vmem:[#allocation2 + $0x78] sm:$0xff]  ;;  %v2018_v60 = vsel %vm1552_vm3, %v2015_v34, %v2017_v46 }
 0x13b   : > { %v7300_v31 = vpop.f32.mrf.mxu3  ;;  %v1582_v23 = vrot.slane %v7317_v27, 1  ;;  %v7337_v47 = vld [vmem:[#allocation2 + $0x90] sm:$0xff] }
 0x13c   : > { %v2188_v29 = vadd.f32 %v2111_v61, %v1755_v59  ;;  %5849 = vmatmul.msk.bf16.gmra.mxu1 %vm609_vm2, %v1123_v6  ;;  %v1322_v61 = vadd.f32 %v1247_v8, %v7099_v38  ;;  %v1126_v38 = vor.u32 %v1124_v1, %v1122_v50  ;;  %v1130_v59 = vrot.slane %v1128_v4, 1  ;;  %v6565_v4 = vld [vmem:[#allocation2 + $0x80] sm:$0xff] }
 0x13d   : > { %v2681_v18 = vpop.f32.mrf.mxu0 }
 0x13e   : > { %5940 = vmatmul.msk.bf16.gmra.mxu2 %vm609_vm2, %v1581_v2  ;;  %v7311_v35 = vadd.f32 %v2678_v41, %v2188_v29  ;;  %v2557_v2 = vrot.slane %v2555_v43, 1  ;;  %v6619_v43 = vld [vmem:[#allocation2 + $0x88] sm:$0xff] }
 0x140   : > { %6122 = vmatmul.msk.bf16.gmra.mxu0 %vm609_vm2, %v2553_v24  ;;  %v2561_v50 = vor.u32 %v2560_v13, %v2557_v2  ;;  %v2564_v2 = vshrl.u32 %v6619_v43, 16  ;;  %v2567_v13 = vshll.u32 %v6619_v43, 16 }
 0x141   : > { %v1681_v51 = vpop.f32.mrf.mxu2  ;;  %v1249_v20 = vpop.f32.mrf.mxu1 }
 0x142   : > { %v1756_v28 = vadd.f32 %v1681_v51, %v1322_v61  ;;  %v1323_v24 = vadd.f32 %v1249_v20, %v7111_v49  ;;  %v1583_v51 = vsel %vm1552_vm3, %v1580_v36, %v1582_v23  ;;  %v2562_v20 = vsel %vm2419_vm5, %v2552_v22, %v2561_v50 }
 0x143   : > { %v7319_v6 = vpop.f32.mrf.mxu3  ;;  %v1132_v36 = vshrl.u32 %v6564_v44, 16  ;;  %v2019_v22 = vrot.slane %v7337_v47, 1 }
 0x144   : > { %v2189_v41 = vadd.f32 %v7267_v54, %v1756_v28  ;;  %v1131_v54 = vsel %vm1007_vm4, %v1126_v38, %v1130_v59  ;;  %v1136_v38 = vshll.u32 %v6565_v4, 16 }
 0x145   : > { %v2683_v8 = vpop.f32.mrf.mxu0  ;;  %v2020_v44 = vsel %vm1552_vm3, %v2017_v46, %v2019_v22  ;;  %v7360_v46 = vld [vmem:[#allocation2 + $0x88] sm:$0xff] }
 0x146   : > { %v7323_v29 = vadd.f32 %v2681_v18, %v2189_v41 }
 0x148   : > { %6033 = vmatmul.msk.bf16.gmra.mxu3 %vm609_vm2, %v2018_v60 }
 0x149   : > { %v1683_v15 = vpop.f32.mrf.mxu2  ;;  %v1252_v61 = vpop.f32.mrf.mxu1 }
 0x14a   : > { %v1757_v1 = vadd.f32 %v1683_v15, %v1323_v24  ;;  %v1324_v27 = vadd.f32 %v1252_v61, %v7119_v63  ;;  %v7345_v24 = vld [vmem:[#allocation2 + $0x80] sm:$0xff]  ;;  %v1134_v15 = vor.u32 %v1132_v36, %v1130_v59  ;;  %v1138_v63 = vrot.slane %v1136_v38, 1 }
 0x14b   : > { %v7332_v34 = vpop.f32.mrf.mxu3  ;;  %v2566_v61 = vrot.slane %v2564_v2, 1 }
 0x14c   : > { %v2190_v18 = vadd.f32 %v7284_v7, %v1757_v1  ;;  %5850 = vmatmul.msk.bf16.gmra.mxu1 %vm609_vm2, %v1131_v54  ;;  %v2569_v1 = vrot.slane %v2567_v13, 2 }
 0x14d   : > { %v2686_v49 = vpop.f32.mrf.mxu0 }
 0x14e   : > { %5941 = vmatmul.msk.bf16.gmra.mxu2 %vm609_vm2, %v1583_v51  ;;  %v7340_v28 = vadd.f32 %v2683_v8, %v2190_v18  ;;  %v1890_v51 = vld [vmem:[#allocation2 + $0x98] sm:$0x1]  ;;  %v2570_v59 = vor.u32 %v2569_v1, %v2566_v61 }
 0x14f   : > { %v1966_v36 = vunpack.c.l.b16 %v1890_v51 }
 0x150   : > { %6123 = vmatmul.msk.bf16.gmra.mxu0 %vm609_vm2, %v2562_v20  ;;  %v1584_v20 = vrot.slane %v7345_v24, 1  ;;  %v2571_v13 = vsel %vm2419_vm5, %v2561_v50, %v2570_v59  ;;  %v6657_v50 = vld [vmem:[#allocation2 + $0x10] sm:$0xf0] }
 0x151   : > { %v1686_v41 = vpop.f32.mrf.mxu2  ;;  %v1254_v7 = vpop.f32.mrf.mxu1 }
 0x152   : > { %v1758_v60 = vadd.f32 %v1686_v41, %v1324_v27  ;;  %v1325_v43 = vadd.f32 %v1254_v7, %v7133_v11  ;;  %v1585_v38 = vsel %vm1552_vm3, %v1582_v23, %v1584_v20  ;;  %v6620_v11 = vld [vmem:[#allocation2 + $0x90] sm:$0xff]  ;;  %v1144_v23 = vshll.u32 %v7360_v46, 16 }
 0x153   : > { %v7347_v42 = vpop.f32.mrf.mxu3  ;;  %v2573_v61 = vshrl.u32 %v6620_v11, 16 }
 0x154   : > { %v2191_v8 = vadd.f32 %v7300_v31, %v1758_v60  ;;  %v1139_v31 = vsel %vm1007_vm4, %v1134_v15, %v1138_v63  ;;  %v1985_v60 = vpack.c.b16 %v1966_v36, %v1966_v36  ;;  %v1146_v36 = vrot.slane %v1144_v23, 1 }
 0x155   : > { %v2688_v54 = vpop.f32.mrf.mxu0 }
 0x156   : > { %v7351_v18 = vadd.f32 %v2686_v49, %v2191_v8  ;;  %v1140_v8 = vshrl.u32 %v6565_v4, 16  ;;  %v2021_v51 = vrot.slane %v1985_v60, 1 }
 0x158   : > { %8370 = vst [vmem:[#allocation7_spill] sm:$0xff] %v7351_v18  ;;  %6034 = vmatmul.msk.bf16.gmra.mxu3 %vm609_vm2, %v2020_v44 }
 0x159   : > { %v1688_v47 = vpop.f32.mrf.mxu2  ;;  %v1257_v27 = vpop.f32.mrf.mxu1 }
 0x15a   : > { %v1759_v41 = vadd.f32 %v1688_v47, %v1325_v43  ;;  %v1326_v15 = vadd.f32 %v1257_v27, %v7143_v26  ;;  %v6312_v47 = vld [vmem:[#allocation2 + $0x10] sm:$0xc] }
 0x15b   : > { %v7358_v2 = vpop.f32.mrf.mxu3  ;;  %v6313_v60 = vor.u32 %v6657_v50, %v6312_v47 }
 0x15c   : > { %v2192_v49 = vadd.f32 %v7319_v6, %v1759_v41  ;;  %5851 = vmatmul.msk.bf16.gmra.mxu1 %vm609_vm2, %v1139_v31  ;;  %v2576_v6 = vshll.u32 %v6620_v11, 16  ;;  %v1142_v31 = vor.u32 %v1140_v8, %v1138_v63  ;;  %v7371_v41 = vld [vmem:[#allocation2 + $0x88] sm:$0xff]  ;;  %v911_v11 = vld [vmem:[#allocation2 + $0x90] sm:$0x1] }
 0x15d   : > { %v2691_v7 = vpop.f32.mrf.mxu0  ;;  %v8363_v8 = vrot.slane %v7371_v41, 1 }
 0x15e   : > { %5942 = vmatmul.msk.bf16.gmra.mxu2 %vm609_vm2, %v1585_v38  ;;  %v7366_v24 = vadd.f32 %v2688_v54, %v2192_v49  ;;  %v2575_v38 = vrot.slane %v2573_v61, 1  ;;  %v2578_v26 = vrot.slane %v2576_v6, 2  ;;  %v2022_v49 = vsel %vm1552_vm3, %v2019_v22, %v2021_v51 }
 0x15f   : > { %v1147_v63 = vsel %vm1007_vm4, %v1142_v31, %v1146_v36  ;;  %v3855_v51 = vshrl.u32 %v6313_v60, 16  ;;  %v1587_v50 = vsel %vm1552_vm3, %v1584_v20, %v8363_v8 }
 0x160   : > { %8371 = vst [vmem:[#allocation8_spill] sm:$0xff] %v7366_v24  ;;  %6124 = vmatmul.msk.bf16.gmra.mxu0 %vm609_vm2, %v2571_v13  ;;  %v2323_v13 = vld [vmem:[#allocation2 + $0x98] sm:$0x3] }
 0x161   : > { %v1691_v1 = vpop.f32.mrf.mxu2  ;;  %v1259_v44 = vpop.f32.mrf.mxu1  ;;  %v6658_v24 = vld [vmem:[#allocation2 + $0x18] sm:$0xff]  ;;  %v2399_v61 = vunpack.c.l.b16 %v2323_v13 }
 0x162   : > { %v1760_v43 = vadd.f32 %v1691_v1, %v1326_v15  ;;  %v1327_v23 = vadd.f32 %v1259_v44, %v7157_v39  ;;  %v7382_v1 = vor.u32 %v2578_v26, %v2575_v38  ;;  %v3863_v18 = vshrl.u32 %v6658_v24, 16  ;;  %v1456_v38 = vld [vmem:[#allocation2 + $0x90] sm:$0x1] }
 0x163   : > { %v7373_v54 = vpop.f32.mrf.mxu3  ;;  %v3866_v47 = vshll.u32 %v6658_v24, 16  ;;  %v2418_v26 = vpack.c.b16 %v2399_v61, %v2399_v61 }
 0x164   : > { %v2193_v4 = vadd.f32 %v7332_v34, %v1760_v43  ;;  %v987_v34 = vunpack.c.l.b16 %v911_v11  ;;  %v3858_v43 = vshll.u32 %v6313_v60, 16  ;;  %v2580_v44 = vsel %vm2419_vm5, %v2570_v59, %v7382_v1 }
 0x165   : > { %v2693_v27 = vpop.f32.mrf.mxu0  ;;  %v3857_v11 = vrot.slane %v3855_v51, 2  ;;  %v3865_v13 = vrot.slane %v3863_v18, 2  ;;  %v3868_v60 = vrot.slane %v3866_v47, 3  ;;  %v2582_v61 = vshrl.u32 %v2418_v26, 16 }
 0x166   : > { %v7377_v15 = vadd.f32 %v2691_v7, %v2193_v4  ;;  %v1006_v4 = vpack.c.b16 %v987_v34, %v987_v34  ;;  %v3860_v24 = vrot.slane %v3858_v43, 3 }
 0x167   : > { %v3869_v43 = vor.u32 %v3868_v60, %v3865_v13 }
 0x168   : > { %6035 = vmatmul.msk.bf16.gmra.mxu3 %vm609_vm2, %v2022_v49  ;;  %v1152_v59 = vshll.u32 %v1006_v4, 16  ;;  %v3861_v51 = vor.u32 %v3860_v24, %v3857_v11  ;;  %v6659_v4 = vld [vmem:[#allocation2 + $0x20] sm:$0xff] }
 0x169   : > { %v1693_v6 = vpop.f32.mrf.mxu2  ;;  %v1262_v22 = vpop.f32.mrf.mxu1 }
 0x16a   : > { %v1761_v7 = vadd.f32 %v1693_v6, %v1327_v23  ;;  %v1532_v23 = vunpack.c.l.b16 %v1456_v38 }
 0x16b   : > { %v7388_v31 = vpop.f32.mrf.mxu3 }
 0x16c   : > { %v2194_v39 = vadd.f32 %v7347_v42, %v1761_v7  ;;  %5852 = vmatmul.msk.bf16.gmra.mxu1 %vm609_vm2, %v1147_v63  ;;  %v1328_v42 = vadd.f32 %v1262_v22, %v7167_v58  ;;  %v1148_v63 = vshrl.u32 %v7360_v46, 16  ;;  %v2585_v7 = vshll.u32 %v2418_v26, 16 }
 0x16d   : > { %v2696_v49 = vpop.f32.mrf.mxu0  ;;  %v1551_v47 = vpack.c.b16 %v1532_v23, %v1532_v23  ;;  %v1154_v22 = vrot.slane %v1152_v59, 1  ;;  %v3870_v46 = vsel %vm3853_vm6, %v3861_v51, %v3869_v43  ;;  %v3875_v23 = vshll.u32 %v6659_v4, 16 }
 0x16e   : > { %5943 = vmatmul.msk.bf16.gmra.mxu2 %vm609_vm2, %v1587_v50  ;;  %v7395_v20 = vadd.f32 %v2693_v27, %v2194_v39  ;;  %v1150_v39 = vor.u32 %v1148_v63, %v1146_v36  ;;  %v2587_v38 = vrot.slane %v2585_v7, 2  ;;  %v3872_v36 = vshrl.u32 %v6659_v4, 16  ;;  %v6621_v7 = vld [vmem:[#allocation2 + $0x8] sm:$0xf0]  ;;  %v6403_v4 = vld [vmem:[#allocation2 + $0x10] sm:$0x8] }
 0x16f   : > { %v1588_v26 = vrot.slane %v1551_v47, 1  ;;  %v8372_v63 = vrot.slane %v7371_v41, 1 }
 0x170   : > { %6125 = vmatmul.msk.bf16.gmra.mxu0 %vm609_vm2, %v2580_v44  ;;  %v2584_v44 = vrot.slane %v2582_v61, 1  ;;  %v1155_v60 = vsel %vm1007_vm4, %v1150_v39, %v1154_v22  ;;  %v6130_v61 = vld [vmem:[#allocation2 + $0x8] sm:$0xc]  ;;  %v3874_v51 = vrot.slane %v3872_v36, 2  ;;  %v6221_v39 = vld [vmem:[#allocation2 + $0x10] sm:$0xc] }
 0x171   : > { %v1696_v34 = vpop.f32.mrf.mxu2  ;;  %v1264_v6 = vpop.f32.mrf.mxu1  ;;  %v1589_v59 = vsel %vm1552_vm3, %v8372_v63, %v1588_v26  ;;  %v6639_v22 = vld [vmem:[#allocation2 + $0x10] sm:$0xf0]  ;;  %v6676_v36 = vld [vmem:[#allocation2 + $0x18] sm:$0xff]  ;;  %v6660_v63 = vld [vmem:[#allocation2 + $0x28] sm:$0xff] }
 0x172   : > { %v1762_v18 = vadd.f32 %v1696_v34, %v1328_v42  ;;  %v1329_v11 = vadd.f32 %v1264_v6, %v7181_v12  ;;  %v6675_v26 = vld [vmem:[#allocation2 + $0x10] sm:$0xf0] }
 0x173   : > { %v7400_v50 = vpop.f32.mrf.mxu3 }
 0x174   : > { %v2195_v27 = vadd.f32 %v7358_v2, %v1762_v18  ;;  %v2588_v2 = vor.u32 %v2587_v38, %v2584_v44  ;;  %v3877_v18 = vrot.slane %v3875_v23, 3  ;;  %v6404_v23 = vor.u32 %v6675_v26, %v6403_v4 }
 0x175   : > { %v2698_v58 = vpop.f32.mrf.mxu0 }
 0x176   : > { %v7404_v8 = vadd.f32 %v2696_v49, %v2195_v27  ;;  %v2589_v6 = vsel %vm2419_vm5, %v7382_v1, %v2588_v2  ;;  %v7423_v27 = vld [vmem:[#allocation2 + $0x10] sm:$0xff]  ;;  %v3878_v1 = vor.u32 %v3877_v18, %v3874_v51  ;;  %v4421_v18 = vrot.slane %v6404_v23, 3 }
 0x178   : > { %6382 = vmatmul.msk.bf16.vlgmr.msra.gmra.mxu3 %vm609_vm2, %v3870_v46 }
 0x179   : > { %v1698_v24 = vpop.f32.mrf.mxu2  ;;  %v1267_v13 = vpop.f32.mrf.mxu1 }
 0x17a   : > { %v1763_v42 = vadd.f32 %v1698_v24, %v1329_v11  ;;  %v1330_v41 = vadd.f32 %v1267_v13, %v7191_v33  ;;  %v7425_v11 = vld [vmem:[#allocation2 + $0x18] sm:$0xff]  ;;  %v6222_v24 = vor.u32 %v6639_v22, %v6221_v39  ;;  %v2988_v13 = vrot.slane %v7423_v27, 2 }
 0x17b   : > { %v7412_v34 = vpop.f32.mrf.mxu3  ;;  %v3881_v27 = vshrl.u32 %v6660_v63, 16 }
 0x17c   : > { %v2196_v49 = vadd.f32 %v7373_v54, %v1763_v42  ;;  %5853 = vmatmul.msk.bf16.gmra.mxu1 %vm609_vm2, %v1155_v60  ;;  %v6131_v54 = vor.u32 %v6621_v7, %v6130_v61  ;;  %v3879_v42 = vsel %vm3853_vm6, %v3869_v43, %v3878_v1 }
 0x17d   : > { %v2701_v12 = vpop.f32.mrf.mxu0 }
 0x17e   : > { %5944 = vmatmul.msk.bf16.gmra.mxu2 %vm609_vm2, %v1589_v59  ;;  %v7419_v47 = vadd.f32 %v2698_v58, %v2196_v49  ;;  %v2987_v33 = vrot.slane %v6131_v54, 2  ;;  %v3420_v49 = vrot.slane %v6222_v24, 2  ;;  %v3884_v54 = vshll.u32 %v6660_v63, 16 }
 0x180   : > { %6126 = vmatmul.msk.bf16.gmra.mxu0 %vm609_vm2, %v2589_v6  ;;  %v3421_v6 = vrot.slane %v7425_v11, 2  ;;  %v2989_v7 = vsel %vm2986_vm7, %v2987_v33, %v2988_v13 }
 0x181   : > { %v1701_v44 = vpop.f32.mrf.mxu2  ;;  %v1269_v38 = vpop.f32.mrf.mxu1 }
 0x182   : > { %v1764_v46 = vadd.f32 %v1701_v44, %v1330_v41  ;;  %v1331_v61 = vadd.f32 %v1269_v38, %v7203_v53  ;;  %v4422_v41 = vrot.slane %v6676_v36, 3  ;;  %v3422_v43 = vsel %vm2986_vm7, %v3420_v49, %v3421_v6  ;;  %v6641_v36 = vld [vmem:[#allocation2 + $0x20] sm:$0xff] }
 0x183   : > { %v2141_v58 = vpop.f32.mrf.mxu3  ;;  %v3883_v38 = vrot.slane %v3881_v27, 2 }
 0x184   : > { %v2197_v60 = vadd.f32 %v7388_v31, %v1764_v46  ;;  %v4423_v44 = vsel %vm4420_vm8, %v4421_v18, %v4422_v41  ;;  %v3886_v46 = vrot.slane %v3884_v54, 3 }
 0x185   : > { %v2703_v2 = vpop.f32.mrf.mxu0 }
 0x186   : > { %v7430_v59 = vadd.f32 %v2701_v12, %v2197_v60  ;;  %v6623_v60 = vld [vmem:[#allocation2 + $0x18] sm:$0xff]  ;;  %v3887_v33 = vor.u32 %v3886_v46, %v3883_v38 }
 0x187   : > { %v2990_v49 = vrot.slane %v6623_v60, 2 }
 0x188   : > { %6383 = vmatmul.msk.bf16.gmra.mxu3 %vm609_vm2, %v3879_v42 }
 0x189   : > { %v1703_v31 = vpop.f32.mrf.mxu2  ;;  %v1272_v51 = vpop.f32.mrf.mxu1  ;;  %v2991_v54 = vsel %vm2986_vm7, %v2988_v13, %v2990_v49 }
 0x18a   : > { %v1765_v39 = vadd.f32 %v1703_v31, %v1331_v61  ;;  %v1332_v26 = vadd.f32 %v1272_v51, %v7109_v48  ;;  %v6677_v61 = vld [vmem:[#allocation2 + $0x20] sm:$0xff]  ;;  %v3423_v48 = vrot.slane %v6641_v36, 2  ;;  %v6642_v36 = vld [vmem:[#allocation2 + $0x28] sm:$0xff] }
 0x18b   : > { %v2144_v12 = vpop.f32.mrf.mxu3 }
 0x18c   : > { %v2198_v22 = vadd.f32 %v7400_v50, %v1765_v39  ;;  %6200 = vmatmul.msk.bf16.vlgmr.msra.gmra.mxu1 %vm609_vm2, %v2989_v7  ;;  %v3888_v7 = vsel %vm3853_vm6, %v3878_v1, %v3887_v33  ;;  %v4424_v39 = vrot.slane %v6677_v61, 3 }
 0x18d   : > { %v2706_v53 = vpop.f32.mrf.mxu0 }
 0x18e   : > { %6291 = vmatmul.msk.bf16.vlgmr.msra.gmra.mxu2 %vm609_vm2, %v3422_v43  ;;  %v7441_v4 = vadd.f32 %v2703_v2, %v2198_v22  ;;  %v6661_v2 = vld [vmem:[#allocation2 + $0x30] sm:$0xff]  ;;  %v4425_v46 = vsel %vm4420_vm8, %v4422_v41, %v4424_v39 }
 0x18f   : > { %v3890_v43 = vshrl.u32 %v6661_v2, 16 }
 0x190   : > { %6473 = vmatmul.msk.bf16.vlgmr.msra.gmra.mxu0 %vm609_vm2, %v4423_v44  ;;  %v3424_v44 = vsel %vm2986_vm7, %v3421_v6, %v3423_v48  ;;  %v6624_v6 = vld [vmem:[#allocation2 + $0x20] sm:$0xff] }
 0x191   : > { %v1706_v11 = vpop.f32.mrf.mxu2  ;;  %v1274_v24 = vpop.f32.mrf.mxu1  ;;  %v2992_v41 = vrot.slane %v6624_v6, 2 }
 0x192   : > { %v1766_v50 = vadd.f32 %v1706_v11, %v1332_v26  ;;  %v1333_v51 = vadd.f32 %v1274_v24, %v7117_v62  ;;  %v3892_v62 = vrot.slane %v3890_v43, 2 }
 0x193   : > { %v2146_v23 = vpop.f32.mrf.mxu3 }
 0x194   : > { %v2199_v42 = vadd.f32 %v7412_v34, %v1766_v50  ;;  %v3893_v34 = vshll.u32 %v6661_v2, 16  ;;  %v6678_v2 = vld [vmem:[#allocation2 + $0x28] sm:$0xff] }
 0x195   : > { %v2708_v63 = vpop.f32.mrf.mxu0 }
 0x196   : > { %v7447_v31 = vadd.f32 %v2706_v53, %v2199_v42  ;;  %v3895_v26 = vrot.slane %v3893_v34, 3  ;;  %v2993_v34 = vsel %vm2986_vm7, %v2990_v49, %v2992_v41 }
 0x198   : > { %6384 = vmatmul.msk.bf16.gmra.mxu3 %vm609_vm2, %v3888_v7  ;;  %v3896_v50 = vor.u32 %v3895_v26, %v3892_v62 }
 0x199   : > { %v1708_v18 = vpop.f32.mrf.mxu2  ;;  %v1277_v27 = vpop.f32.mrf.mxu1 }
 0x19a   : > { %v1767_v22 = vadd.f32 %v1708_v18, %v1333_v51  ;;  %v1334_v13 = vadd.f32 %v1277_v27, %v7131_v10  ;;  %v3897_v51 = vsel %vm3853_vm6, %v3887_v33, %v3896_v50  ;;  %v6662_v18 = vld [vmem:[#allocation2 + $0x38] sm:$0xff] }
 0x19b   : > { %v2149_v38 = vpop.f32.mrf.mxu3 }
 0x19c   : > { %v2200_v1 = vadd.f32 %v2141_v58, %v1767_v22  ;;  %6201 = vmatmul.msk.bf16.gmra.mxu1 %vm609_vm2, %v2991_v54  ;;  %v3425_v54 = vrot.slane %v6642_v36, 2  ;;  %v4426_v22 = vrot.slane %v6678_v2, 3  ;;  %v6643_v36 = vld [vmem:[#allocation2 + $0x30] sm:$0xff] }
 0x19d   : > { %v2711_v53 = vpop.f32.mrf.mxu0 }
 0x19e   : > { %6292 = vmatmul.msk.bf16.gmra.mxu2 %vm609_vm2, %v3424_v44  ;;  %v7456_v11 = vadd.f32 %v2708_v63, %v2200_v1  ;;  %v3899_v44 = vshrl.u32 %v6662_v18, 16  ;;  %v4427_v26 = vsel %vm4420_vm8, %v4424_v39, %v4426_v22 }
 0x1a0   : > { %6474 = vmatmul.msk.bf16.gmra.mxu0 %vm609_vm2, %v4425_v46  ;;  %v3426_v46 = vsel %vm2986_vm7, %v3423_v48, %v3425_v54  ;;  %v6625_v48 = vld [vmem:[#allocation2 + $0x28] sm:$0xff] }
 0x1a1   : > { %v1711_v24 = vpop.f32.mrf.mxu2  ;;  %v1279_v60 = vpop.f32.mrf.mxu1  ;;  %v2994_v39 = vrot.slane %v6625_v48, 2 }
 0x1a2   : > { %v1768_v58 = vadd.f32 %v1711_v24, %v1334_v13  ;;  %v1335_v10 = vadd.f32 %v1279_v60, %v7141_v25  ;;  %v3901_v25 = vrot.slane %v3899_v44, 2 }
 0x1a3   : > { %v2151_v42 = vpop.f32.mrf.mxu3 }
 0x1a4   : > { %v2201_v61 = vadd.f32 %v2144_v12, %v1768_v58  ;;  %v3902_v12 = vshll.u32 %v6662_v18, 16  ;;  %v6679_v18 = vld [vmem:[#allocation2 + $0x30] sm:$0xff] }
 0x1a5   : > { %v2713_v7 = vpop.f32.mrf.mxu0 }
 0x1a6   : > { %v7461_v63 = vadd.f32 %v2711_v53, %v2201_v61  ;;  %v3904_v13 = vrot.slane %v3902_v12, 3  ;;  %v2995_v12 = vsel %vm2986_vm7, %v2992_v41, %v2994_v39 }
 0x1a8   : > { %6385 = vmatmul.msk.bf16.gmra.mxu3 %vm609_vm2, %v3897_v51  ;;  %v3905_v58 = vor.u32 %v3904_v13, %v3901_v25 }
 0x1a9   : > { %v1713_v27 = vpop.f32.mrf.mxu2  ;;  %v1282_v43 = vpop.f32.mrf.mxu1 }
 0x1aa   : > { %v1769_v1 = vadd.f32 %v1713_v27, %v1335_v10  ;;  %v1336_v49 = vadd.f32 %v1282_v43, %v7155_v37  ;;  %v3906_v10 = vsel %vm3853_vm6, %v3896_v50, %v3905_v58  ;;  %v6663_v27 = vld [vmem:[#allocation2 + $0x40] sm:$0xff] }
 0x1ab   : > { %v2154_v62 = vpop.f32.mrf.mxu3 }
 0x1ac   : > { %v2202_v33 = vadd.f32 %v2146_v23, %v1769_v1  ;;  %6202 = vmatmul.msk.bf16.gmra.mxu1 %vm609_vm2, %v2993_v34  ;;  %v3427_v34 = vrot.slane %v6643_v36, 2  ;;  %v4428_v1 = vrot.slane %v6679_v18, 3  ;;  %v6644_v36 = vld [vmem:[#allocation2 + $0x38] sm:$0xff] }
 0x1ad   : > { %v2716_v53 = vpop.f32.mrf.mxu0 }
 0x1ae   : > { %6293 = vmatmul.msk.bf16.gmra.mxu2 %vm609_vm2, %v3426_v46  ;;  %v7470_v24 = vadd.f32 %v2713_v7, %v2202_v33  ;;  %v3908_v46 = vshrl.u32 %v6663_v27, 16  ;;  %v4429_v13 = vsel %vm4420_vm8, %v4426_v22, %v4428_v1 }
 0x1b0   : > { %6475 = vmatmul.msk.bf16.gmra.mxu0 %vm609_vm2, %v4427_v26  ;;  %v3428_v26 = vsel %vm2986_vm7, %v3425_v54, %v3427_v34  ;;  %v6626_v54 = vld [vmem:[#allocation2 + $0x30] sm:$0xff] }
 0x1b1   : > { %v1716_v60 = vpop.f32.mrf.mxu2  ;;  %v1284_v6 = vpop.f32.mrf.mxu1  ;;  %v2996_v22 = vrot.slane %v6626_v54, 2 }
 0x1b2   : > { %v1770_v23 = vadd.f32 %v1716_v60, %v1336_v49  ;;  %v1337_v37 = vadd.f32 %v1284_v6, %v7165_v57  ;;  %v3910_v57 = vrot.slane %v3908_v46, 2 }
 0x1b3   : > { %v2156_v61 = vpop.f32.mrf.mxu3 }
 0x1b4   : > { %v2203_v2 = vadd.f32 %v2149_v38, %v1770_v23  ;;  %v3911_v38 = vshll.u32 %v6663_v27, 16  ;;  %v6680_v27 = vld [vmem:[#allocation2 + $0x38] sm:$0xff] }
 0x1b5   : > { %v2718_v51 = vpop.f32.mrf.mxu0 }
 0x1b6   : > { %v7475_v7 = vadd.f32 %v2716_v53, %v2203_v2  ;;  %v3913_v49 = vrot.slane %v3911_v38, 3  ;;  %v2997_v38 = vsel %vm2986_vm7, %v2994_v39, %v2996_v22 }
 0x1b8   : > { %6386 = vmatmul.msk.bf16.gmra.mxu3 %vm609_vm2, %v3906_v10  ;;  %v3914_v23 = vor.u32 %v3913_v49, %v3910_v57 }
 0x1b9   : > { %v1718_v43 = vpop.f32.mrf.mxu2  ;;  %v1287_v44 = vpop.f32.mrf.mxu1 }
 0x1ba   : > { %v1771_v33 = vadd.f32 %v1718_v43, %v1337_v37  ;;  %v1338_v41 = vadd.f32 %v1287_v44, %v7179_v9  ;;  %v3915_v37 = vsel %vm3853_vm6, %v3905_v58, %v3914_v23  ;;  %v6664_v43 = vld [vmem:[#allocation2 + $0x48] sm:$0xff] }
 0x1bb   : > { %v2159_v25 = vpop.f32.mrf.mxu3 }
 0x1bc   : > { %v2204_v50 = vadd.f32 %v2151_v42, %v1771_v33  ;;  %6203 = vmatmul.msk.bf16.gmra.mxu1 %vm609_vm2, %v2995_v12  ;;  %v3429_v12 = vrot.slane %v6644_v36, 2  ;;  %v4430_v33 = vrot.slane %v6680_v27, 3  ;;  %v6645_v36 = vld [vmem:[#allocation2 + $0x40] sm:$0xff] }
 0x1bd   : > { %v2721_v53 = vpop.f32.mrf.mxu0 }
 0x1be   : > { %6294 = vmatmul.msk.bf16.gmra.mxu2 %vm609_vm2, %v3428_v26  ;;  %v7484_v60 = vadd.f32 %v2718_v51, %v2204_v50  ;;  %v3917_v26 = vshrl.u32 %v6664_v43, 16  ;;  %v4431_v49 = vsel %vm4420_vm8, %v4428_v1, %v4430_v33 }
 0x1c0   : > { %6476 = vmatmul.msk.bf16.gmra.mxu0 %vm609_vm2, %v4429_v13  ;;  %v3430_v13 = vsel %vm2986_vm7, %v3427_v34, %v3429_v12  ;;  %v6627_v34 = vld [vmem:[#allocation2 + $0x38] sm:$0xff] }
 0x1c1   : > { %v1721_v6 = vpop.f32.mrf.mxu2  ;;  %v1289_v48 = vpop.f32.mrf.mxu1  ;;  %v2998_v1 = vrot.slane %v6627_v34, 2 }
 0x1c2   : > { %v1772_v42 = vadd.f32 %v1721_v6, %v1338_v41  ;;  %v1339_v9 = vadd.f32 %v1289_v48, %v7189_v32  ;;  %v3919_v32 = vrot.slane %v3917_v26, 2 }
 0x1c3   : > { %v2161_v2 = vpop.f32.mrf.mxu3 }
 0x1c4   : > { %v2205_v18 = vadd.f32 %v2154_v62, %v1772_v42  ;;  %v3920_v62 = vshll.u32 %v6664_v43, 16  ;;  %v6681_v43 = vld [vmem:[#allocation2 + $0x40] sm:$0xff] }
 0x1c5   : > { %v2723_v10 = vpop.f32.mrf.mxu0 }
 0x1c6   : > { %v7489_v51 = vadd.f32 %v2721_v53, %v2205_v18  ;;  %v3922_v41 = vrot.slane %v3920_v62, 3  ;;  %v2999_v62 = vsel %vm2986_vm7, %v2996_v22, %v2998_v1 }
 0x1c8   : > { %6387 = vmatmul.msk.bf16.gmra.mxu3 %vm609_vm2, %v3915_v37  ;;  %v3923_v42 = vor.u32 %v3922_v41, %v3919_v32 }
 0x1c9   : > { %v1723_v44 = vpop.f32.mrf.mxu2  ;;  %v1292_v46 = vpop.f32.mrf.mxu1 }
 0x1ca   : > { %v1773_v50 = vadd.f32 %v1723_v44, %v1339_v9  ;;  %v1340_v39 = vadd.f32 %v1292_v46, %v7201_v52  ;;  %v3924_v9 = vsel %vm3853_vm6, %v3914_v23, %v3923_v42  ;;  %v6665_v44 = vld [vmem:[#allocation2 + $0x50] sm:$0xff] }
 0x1cb   : > { %v2164_v57 = vpop.f32.mrf.mxu3 }
 0x1cc   : > { %v2206_v58 = vadd.f32 %v2156_v61, %v1773_v50  ;;  %6204 = vmatmul.msk.bf16.gmra.mxu1 %vm609_vm2, %v2997_v38  ;;  %v3431_v38 = vrot.slane %v6645_v36, 2  ;;  %v4432_v50 = vrot.slane %v6681_v43, 3  ;;  %v6646_v36 = vld [vmem:[#allocation2 + $0x48] sm:$0xff] }
 0x1cd   : > { %v2726_v53 = vpop.f32.mrf.mxu0 }
 0x1ce   : > { %6295 = vmatmul.msk.bf16.gmra.mxu2 %vm609_vm2, %v3430_v13  ;;  %v7498_v6 = vadd.f32 %v2723_v10, %v2206_v58  ;;  %v3926_v13 = vshrl.u32 %v6665_v44, 16  ;;  %v4433_v41 = vsel %vm4420_vm8, %v4430_v33, %v4432_v50 }
 0x1d0   : > { %6477 = vmatmul.msk.bf16.gmra.mxu0 %vm609_vm2, %v4431_v49  ;;  %v3432_v49 = vsel %vm2986_vm7, %v3429_v12, %v3431_v38  ;;  %v6628_v12 = vld [vmem:[#allocation2 + $0x40] sm:$0xff] }
 0x1d1   : > { %v1726_v48 = vpop.f32.mrf.mxu2  ;;  %v1294_v54 = vpop.f32.mrf.mxu1  ;;  %v3000_v33 = vrot.slane %v6628_v12, 2 }
 0x1d2   : > { %v1774_v61 = vadd.f32 %v1726_v48, %v1340_v39  ;;  %v1341_v52 = vadd.f32 %v1294_v54, %v7209_v5  ;;  %v3928_v5 = vrot.slane %v3926_v13, 2 }
 0x1d3   : > { %v2166_v18 = vpop.f32.mrf.mxu3 }
 0x1d4   : > { %v2207_v27 = vadd.f32 %v2159_v25, %v1774_v61  ;;  %v3929_v25 = vshll.u32 %v6665_v44, 16  ;;  %v6682_v44 = vld [vmem:[#allocation2 + $0x48] sm:$0xff] }
 0x1d5   : > { %v2728_v37 = vpop.f32.mrf.mxu0 }
 0x1d6   : > { %v7503_v10 = vadd.f32 %v2726_v53, %v2207_v27  ;;  %v3931_v39 = vrot.slane %v3929_v25, 3  ;;  %v3001_v25 = vsel %vm2986_vm7, %v2998_v1, %v3000_v33 }
 0x1d8   : > { %6388 = vmatmul.msk.bf16.gmra.mxu3 %vm609_vm2, %v3924_v9  ;;  %v3932_v61 = vor.u32 %v3931_v39, %v3928_v5 }
 0x1d9   : > { %v1728_v46 = vpop.f32.mrf.mxu2  ;;  %v1297_v26 = vpop.f32.mrf.mxu1 }
 0x1da   : > { %v1775_v58 = vadd.f32 %v1728_v46, %v1341_v52  ;;  %v1342_v22 = vadd.f32 %v1297_v26, %v7123_v3  ;;  %v3933_v52 = vsel %vm3853_vm6, %v3923_v42, %v3932_v61  ;;  %v6666_v46 = vld [vmem:[#allocation2 + $0x58] sm:$0xff] }
 0x1db   : > { %v2169_v32 = vpop.f32.mrf.mxu3 }
 0x1dc   : > { %v2208_v23 = vadd.f32 %v2161_v2, %v1775_v58  ;;  %6205 = vmatmul.msk.bf16.gmra.mxu1 %vm609_vm2, %v2999_v62  ;;  %v3433_v62 = vrot.slane %v6646_v36, 2  ;;  %v4434_v58 = vrot.slane %v6682_v44, 3  ;;  %v6647_v36 = vld [vmem:[#allocation2 + $0x50] sm:$0xff] }
 0x1dd   : > { %v2731_v53 = vpop.f32.mrf.mxu0 }
 0x1de   : > { %6296 = vmatmul.msk.bf16.gmra.mxu2 %vm609_vm2, %v3432_v49  ;;  %v7512_v48 = vadd.f32 %v2728_v37, %v2208_v23  ;;  %v3935_v49 = vshrl.u32 %v6666_v46, 16  ;;  %v4435_v39 = vsel %vm4420_vm8, %v4432_v50, %v4434_v58 }
 0x1e0   : > { %6478 = vmatmul.msk.bf16.gmra.mxu0 %vm609_vm2, %v4433_v41  ;;  %v3434_v41 = vsel %vm2986_vm7, %v3431_v38, %v3433_v62  ;;  %v6629_v38 = vld [vmem:[#allocation2 + $0x48] sm:$0xff] }
 0x1e1   : > { %v1731_v54 = vpop.f32.mrf.mxu2  ;;  %v1299_v34 = vpop.f32.mrf.mxu1  ;;  %v3002_v50 = vrot.slane %v6629_v38, 2 }
 0x1e2   : > { %v1776_v2 = vadd.f32 %v1731_v54, %v1342_v22  ;;  %v1343_v3 = vadd.f32 %v1299_v34, %v7135_v17  ;;  %v3937_v17 = vrot.slane %v3935_v49, 2 }
 0x1e3   : > { %v2171_v27 = vpop.f32.mrf.mxu3 }
 0x1e4   : > { %v2209_v43 = vadd.f32 %v2164_v57, %v1776_v2  ;;  %v3938_v57 = vshll.u32 %v6666_v46, 16  ;;  %v6683_v46 = vld [vmem:[#allocation2 + $0x50] sm:$0xff] }
 0x1e5   : > { %v2733_v9 = vpop.f32.mrf.mxu0 }
 0x1e6   : > { %v7517_v37 = vadd.f32 %v2731_v53, %v2209_v43  ;;  %v3940_v22 = vrot.slane %v3938_v57, 3 }
 0x1e8   : > { %6389 = vmatmul.msk.bf16.gmra.mxu3 %vm609_vm2, %v3933_v52  ;;  %v3941_v2 = vor.u32 %v3940_v22, %v3937_v17 }
 0x1e9   : > { %v1733_v26 = vpop.f32.mrf.mxu2  ;;  %v1302_v13 = vpop.f32.mrf.mxu1 }
 0x1ea   : > { %v1777_v23 = vadd.f32 %v1733_v26, %v1343_v3  ;;  %v1344_v1 = vadd.f32 %v1302_v13, %v7147_v30  ;;  %v3942_v3 = vsel %vm3853_vm6, %v3932_v61, %v3941_v2  ;;  %v6667_v26 = vld [vmem:[#allocation2 + $0x60] sm:$0xff] }
 0x1eb   : > { %v2174_v5 = vpop.f32.mrf.mxu3  ;;  %v8373_v30 = vld [vmem:[#allocation4_spill] sm:$0xff] }
 0x1ec   : > { %v2210_v42 = vadd.f32 %v2166_v18, %v1777_v23  ;;  %6206 = vmatmul.msk.bf16.gmra.mxu1 %vm609_vm2, %v3001_v25  ;;  %v3435_v25 = vrot.slane %v6647_v36, 2  ;;  %v3003_v23 = vsel %vm2986_vm7, %v3000_v33, %v3002_v50  ;;  %v8375_v33 = vld [vmem:[#allocation5_spill] sm:$0xff] }
 0x1ed   : > { %v2736_v53 = vpop.f32.mrf.mxu0 }
 0x1ee   : > { %6297 = vmatmul.msk.bf16.gmra.mxu2 %vm609_vm2, %v3434_v41  ;;  %v7526_v54 = vadd.f32 %v2733_v9, %v2210_v42  ;;  %v4436_v41 = vrot.slane %v6683_v46, 3  ;;  %v3944_v42 = vshrl.u32 %v6667_v26, 16  ;;  %v3436_v17 = vsel %vm2986_vm7, %v3433_v62, %v3435_v25  ;;  %v6630_v62 = vld [vmem:[#allocation2 + $0x50] sm:$0xff] }
 0x1f0   : > { %6479 = vmatmul.msk.bf16.gmra.mxu0 %vm609_vm2, %v4435_v39 }
 0x1f1   : > { %v1736_v34 = vpop.f32.mrf.mxu2  ;;  %v1304_v12 = vpop.f32.mrf.mxu1 }
 0x1f2   : > { %v1778_v18 = vadd.f32 %v1736_v34, %v1344_v1  ;;  %v1345_v13 = vadd.f32 %v1304_v12, %v8373_v30  ;;  %v4437_v1 = vsel %vm4420_vm8, %v4434_v58, %v4436_v41  ;;  %v3946_v34 = vrot.slane %v3944_v42, 2  ;;  %v6668_v42 = vld [vmem:[#allocation2 + $0x68] sm:$0xff] }
 0x1f3   : > { %v2176_v43 = vpop.f32.mrf.mxu3  ;;  %v3004_v58 = vrot.slane %v6630_v62, 2 }
 0x1f4   : > { %v2211_v44 = vadd.f32 %v2169_v32, %v1778_v18  ;;  %v3947_v32 = vshll.u32 %v6667_v26, 16 }
 0x1f5   : > { %v2738_v52 = vpop.f32.mrf.mxu0 }
 0x1f6   : > { %v7531_v9 = vadd.f32 %v2736_v53, %v2211_v44  ;;  %v3949_v12 = vrot.slane %v3947_v32, 3 }
 0x1f8   : > { %6390 = vmatmul.msk.bf16.gmra.mxu3 %vm609_vm2, %v3942_v3  ;;  %v3950_v46 = vor.u32 %v3949_v12, %v3946_v34  ;;  %v6648_v3 = vld [vmem:[#allocation2 + $0x58] sm:$0xff]  ;;  %v3953_v12 = vshrl.u32 %v6668_v42, 16 }
 0x1f9   : > { %v1738_v49 = vpop.f32.mrf.mxu2  ;;  %v1307_v57 = vpop.f32.mrf.mxu1  ;;  %v3437_v32 = vrot.slane %v6648_v3, 2 }
 0x1fa   : > { %v1779_v39 = vadd.f32 %v1738_v49, %v1345_v13  ;;  %v1346_v18 = vadd.f32 %v1307_v57, %v8375_v33  ;;  %v6684_v49 = vld [vmem:[#allocation2 + $0x58] sm:$0xff]  ;;  %v3955_v62 = vrot.slane %v3953_v12, 2 }
 0x1fb   : > { %v4090_v22 = vpop.f32.mrf.mxu3  ;;  %v8377_v57 = vld [vmem:[#allocation6_spill] sm:$0xff]  ;;  %v4438_v34 = vrot.slane %v6684_v49, 3 }
 0x1fc   : > { %v2212_v61 = vadd.f32 %v2171_v27, %v1779_v39  ;;  %6207 = vmatmul.msk.bf16.gmra.mxu1 %vm609_vm2, %v3003_v23  ;;  %v3951_v23 = vsel %vm3853_vm6, %v3941_v2, %v3950_v46  ;;  %v7560_v49 = vld [vmem:[#allocation2 + $0x58] sm:$0xff] }
 0x1fd   : > { %v2741_v53 = vpop.f32.mrf.mxu0 }
 0x1fe   : > { %6298 = vmatmul.msk.bf16.gmra.mxu2 %vm609_vm2, %v3436_v17  ;;  %v7540_v38 = vadd.f32 %v2738_v52, %v2212_v61 }
 0x200   : > { %8374 = vst [vmem:[#allocation4_spill] sm:$0xff] %v7540_v38  ;;  %6480 = vmatmul.msk.bf16.gmra.mxu0 %vm609_vm2, %v4437_v1  ;;  %v3005_v1 = vsel %vm2986_vm7, %v3002_v50, %v3004_v58 }
 0x201   : > { %v1741_v36 = vpop.f32.mrf.mxu2  ;;  %v1309_v44 = vpop.f32.mrf.mxu1 }
 0x202   : > { %v1780_v27 = vadd.f32 %v1741_v36, %v1346_v18  ;;  %v1347_v39 = vadd.f32 %v1309_v44, %v8377_v57  ;;  %v3438_v18 = vsel %vm2986_vm7, %v3435_v25, %v3437_v32  ;;  %v4439_v44 = vsel %vm4420_vm8, %v4436_v41, %v4438_v34 }
 0x203   : > { %v4092_v26 = vpop.f32.mrf.mxu3 }
 0x204   : > { %v2213_v30 = vadd.f32 %v2174_v5, %v1780_v27  ;;  %v3956_v5 = vshll.u32 %v6668_v42, 16  ;;  %v7562_v42 = vld [vmem:[#allocation2 + $0x60] sm:$0xff] }
 0x205   : > { %v2743_v13 = vpop.f32.mrf.mxu0 }
 0x206   : > { %v7545_v52 = vadd.f32 %v2741_v53, %v2213_v30  ;;  %v3958_v27 = vrot.slane %v3956_v5, 3  ;;  %v3439_v5 = vrot.slane %v7562_v42, 2 }
 0x208   : > { %8376 = vst [vmem:[#allocation5_spill] sm:$0xff] %v7545_v52  ;;  %6391 = vmatmul.msk.bf16.gmra.mxu3 %vm609_vm2, %v3951_v23 }
 0x209   : > { %v1743_v17 = vpop.f32.mrf.mxu2  ;;  %v3090_v61 = vpop.f32.mrf.mxu1 }
 0x20a   : > { %v1781_v33 = vadd.f32 %v1743_v17, %v1347_v39  ;;  %v3180_v50 = vadd.f32 %v3090_v61, %v7219_v21  ;;  %v3006_v21 = vrot.slane %v7560_v49, 2  ;;  %v7572_v17 = vld [vmem:[#allocation2 + $0x60] sm:$0xff] }
 0x20b   : > { %v7551_v36 = vpop.f32.mrf.mxu3 }
 0x20c   : > { %v2214_v2 = vadd.f32 %v2176_v43, %v1781_v33  ;;  %6208 = vmatmul.msk.bf16.gmra.mxu1 %vm609_vm2, %v3005_v1  ;;  %v3959_v43 = vor.u32 %v3958_v27, %v3955_v62  ;;  %v6669_v1 = vld [vmem:[#allocation2 + $0x70] sm:$0xff]  ;;  %v4440_v62 = vrot.slane %v7572_v17, 3 }
 0x20d   : > { %v4524_v53 = vpop.f32.mrf.mxu0  ;;  %v3962_v27 = vshrl.u32 %v6669_v1, 16 }
 0x20e   : > { %6299 = vmatmul.msk.bf16.gmra.mxu2 %vm609_vm2, %v3438_v18  ;;  %v7556_v3 = vadd.f32 %v2743_v13, %v2214_v2  ;;  %v7569_v13 = vld [vmem:[%s8361_s3] ss:$0 sm:$0xff]  ;;  %v3960_v61 = vsel %vm3853_vm6, %v3950_v46, %v3959_v43 }
 0x20f   : > { %v3964_v42 = vrot.slane %v3962_v27, 2 }
 0x210   : > { %8378 = vst [vmem:[#allocation6_spill] sm:$0xff] %v7556_v3  ;;  %6481 = vmatmul.msk.bf16.gmra.mxu0 %vm609_vm2, %v4439_v44  ;;  %v3007_v44 = vsel %vm2986_vm7, %v3004_v58, %v3006_v21 }
 0x211   : > { %v3523_v30 = vpop.f32.mrf.mxu2  ;;  %v3092_v25 = vpop.f32.mrf.mxu1 }
 0x212   : > { %v3613_v23 = vadd.f32 %v3523_v30, %v3180_v50  ;;  %v3965_v50 = vshll.u32 %v6669_v1, 16  ;;  %v3440_v30 = vsel %vm2986_vm7, %v3437_v32, %v3439_v5 }
 0x213   : > { %v7564_v57 = vpop.f32.mrf.mxu3 }
 0x214   : > { %v4180_v41 = vadd.f32 %v4090_v22, %v3613_v23  ;;  %v3181_v22 = vadd.f32 %v3092_v25, %v7228_v55  ;;  %v4441_v25 = vsel %vm4420_vm8, %v4438_v34, %v4440_v62  ;;  %v3967_v58 = vrot.slane %v3965_v50, 3 }
 0x215   : > { %v4526_v39 = vpop.f32.mrf.mxu0 }
 0x216   : > { %v4614_v12 = vadd.f32 %v4524_v53, %v4180_v41 }
 0x218   : > { %v7577_v33 = vadd.f32 %v7569_v13, %v4614_v12  ;;  %6392 = vmatmul.msk.bf16.gmra.mxu3 %vm609_vm2, %v3960_v61  ;;  %v7597_v12 = vor.u32 %v3967_v58, %v3964_v42 }
 0x219   : > { %v3525_v18 = vpop.f32.mrf.mxu2  ;;  %v3095_v2 = vpop.f32.mrf.mxu1 }
 0x21a   : > { %v6491_v46 = vmul.f32 -1.442695, %v7577_v33  ;;  %v3614_v53 = vadd.f32 %v3525_v18, %v3181_v22  ;;  %v3182_v61 = vadd.f32 %v3095_v2, %v7233_v16 }
 0x21b   : > { %v7585_v49 = vpop.f32.mrf.mxu3 }
 0x21c   : > { %6724 = vpow2.f32 %v6491_v46  ;;  %v4181_v23 = vadd.f32 %v4092_v26, %v3614_v53  ;;  %6209 = vmatmul.msk.bf16.gmra.mxu1 %vm609_vm2, %v3007_v44  ;;  %v7595_v26 = vld [vmem:[#allocation2 + $0x60] sm:$0xff]  ;;  %v7602_v44 = vld [vmem:[#allocation2 + $0x68] sm:$0xff]  ;;  %v3969_v53 = vsel %vm3853_vm6, %v3959_v43, %v7597_v12 }
 0x21d   : > { %v4529_v55 = vpop.f32.mrf.mxu0  ;;  %v8364_v50 = vrot.slane %v7595_v26, 2  ;;  %v7609_v46 = vld [vmem:[#allocation2 + $0x68] sm:$0xff] }
 0x21e   : > { %v4615_v41 = vadd.f32 %v4526_v39, %v4181_v23  ;;  %6300 = vmatmul.msk.bf16.gmra.mxu2 %vm609_vm2, %v3440_v30  ;;  %v6670_v30 = vld [vmem:[#allocation2 + $0x78] sm:$0xff] }
 0x21f   : > { %v3971_v43 = vshrl.u32 %v6670_v30, 16 }
 0x220   : > { %v7591_v17 = vadd.f32 %v7569_v13, %v4615_v41  ;;  %6482 = vmatmul.msk.bf16.gmra.mxu0 %vm609_vm2, %v4441_v25  ;;  %v8365_v25 = vrot.slane %v7602_v44, 2 }
 0x221   : > { %v3528_v32 = vpop.f32.mrf.mxu2  ;;  %v3097_v1 = vpop.f32.mrf.mxu1 }
 0x222   : > { %v6725_v22 = vpop.eup %6724  ;;  %v6492_v34 = vmul.f32 -1.442695, %v7591_v17  ;;  %v3615_v18 = vadd.f32 %v3528_v32, %v3182_v61  ;;  %v3183_v58 = vadd.f32 %v3097_v1, %v7242_v14  ;;  %v3009_v61 = vsel %vm2986_vm7, %v3006_v21, %v8364_v50 }
 0x223   : > { %v7600_v39 = vadd.f32 1.0, %v6725_v22  ;;  %v7604_v27 = vpop.f32.mrf.mxu3  ;;  %v8366_v32 = vrot.slane %v7609_v46, 3  ;;  %v3974_v22 = vshll.u32 %v6670_v30, 16  ;;  %v3442_v14 = vsel %vm2986_vm7, %v3439_v5, %v8365_v25 }
 0x224   : > { %6726 = vpow2.f32 %v6492_v34  ;;  %v4182_v16 = vadd.f32 %v7551_v36, %v3615_v18 }
 0x225   : > { %6728 = vrcp.f32 %v7600_v39  ;;  %v4531_v2 = vpop.f32.mrf.mxu0  ;;  %v4915_v25 = vand.u32 2147483647, %v7600_v39  ;;  %vm4911_vm10 = vweird.f32 %v7600_v39 }
 0x226   : > { %v4616_v23 = vadd.f32 %v4529_v55, %v4182_v16 }
 0x227   : > { %vm4916_vm12 = vcmp.eq.f32.partialorder %v4915_v25, 8.507059e+37  ;;  %v6671_v25 = vld [vmem:[#allocation2 + $0x80] sm:$0xff] }
 0x228   : > { %v7615_v42 = vadd.f32 %v7569_v13, %v4616_v23  ;;  %6393 = vmatmul.msk.bf16.gmra.mxu3 %vm609_vm2, %v3969_v53 }
 0x229   : > { %v3530_v36 = vpop.f32.mrf.mxu2  ;;  %v3100_v41 = vpop.f32.mrf.mxu1 }
 0x22a   : > { %v6727_v55 = vpop.eup %6726  ;;  %v6493_v34 = vmul.f32 -1.442695, %v7615_v42  ;;  %v3616_v18 = vadd.f32 %v3530_v36, %v3183_v58  ;;  %v4443_v58 = vsel %vm4420_vm8, %v4440_v62, %v8366_v32  ;;  %v3973_v36 = vrot.slane %v3971_v43, 2 }
 0x22b   : > { %v6729_v16 = vpop.eup %6728  ;;  %v7624_v23 = vadd.f32 1.0, %v6727_v55  ;;  %v7629_v1 = vpop.f32.mrf.mxu3  ;;  %v3976_v55 = vrot.slane %v3974_v22, 3  ;;  %v7646_v22 = vld [vmem:[#allocation2 + $0x68] sm:$0xff] }
 0x22c   : > { %v4907_v53 = vmul.f32 %v6729_v16, %v7600_v39  ;;  %6730 = vpow2.f32 %v6493_v34  ;;  %v4183_v21 = vadd.f32 %v7564_v57, %v3616_v18  ;;  %6210 = vmatmul.msk.bf16.gmra.mxu1 %vm609_vm2, %v3009_v61  ;;  %v4917_v34 = vand.u32 2147483648, %v7600_v39 }
 0x22d   : > { %6732 = vrcp.f32 %v7624_v23  ;;  %v4534_v30 = vpop.f32.mrf.mxu0  ;;  %vm4912_vm9 = vweird.f32 %v6729_v16  ;;  %v3184_v18 = vadd.f32 %v3100_v41, %v7247_v56  ;;  %v4932_v3 = vand.u32 2147483648, %v7624_v23 }
 0x22e   : > { %v4908_v50 = vsub.f32 1.0, %v4907_v53  ;;  %v4617_v5 = vadd.f32 %v4531_v2, %v4183_v21  ;;  %6301 = vmatmul.msk.bf16.gmra.mxu2 %vm609_vm2, %v3442_v14  ;;  %v7648_v2 = vor.u32 %v3976_v55, %v3973_v36  ;;  %vm4913_vm11 = vmor %vm4911_vm10, %vm4912_vm9  ;;  %v4918_v56 = vor.u32 1.1754944e-38, %v4917_v34 }
 0x22f   : > { %vm4926_vm14 = vweird.f32 %v7624_v23 }
 0x230   : > { %v4909_v57 = vmul.f32 %v6729_v16, %v4908_v50  ;;  %v7642_v61 = vadd.f32 %v7569_v13, %v4617_v5  ;;  %6483 = vmatmul.msk.bf16.gmra.mxu0 %vm609_vm2, %v4443_v58  ;;  %v7652_v5 = vld [vmem:[#allocation2 + $0x70] sm:$0xff] }
 0x231   : > { %v3533_v62 = vpop.f32.mrf.mxu2  ;;  %v3102_v43 = vpop.f32.mrf.mxu1  ;;  %v7657_v58 = vld [vmem:[#allocation2 + $0x70] sm:$0xff] }
 0x232   : > { %v6731_v14 = vpop.eup %6730  ;;  %v4910_v53 = vadd.f32 %v6729_v16, %v4909_v57  ;;  %v6494_v50 = vmul.f32 -1.442695, %v7642_v61  ;;  %v3617_v21 = vadd.f32 %v3533_v62, %v3184_v18  ;;  %v4930_v18 = vand.u32 2147483647, %v7624_v23 }
 0x233   : > { %v6733_v32 = vpop.eup %6732  ;;  %v7655_v41 = vadd.f32 1.0, %v6731_v14  ;;  %v7659_v36 = vpop.f32.mrf.mxu3 }
 0x234   : > { %v4914_v55 = vsel %vm4913_vm11, %v6729_v16, %v4910_v53  ;;  %v4922_v57 = vmul.f32 %v6733_v32, %v7624_v23  ;;  %6734 = vpow2.f32 %v6494_v50  ;;  %v3978_v16 = vsel %vm3853_vm6, %v7597_v12, %v7648_v2 }
 0x235   : > { %v4919_v39 = vsel %vm4916_vm12, %v4918_v56, %v4914_v55  ;;  %6736 = vrcp.f32 %v7655_v41  ;;  %v4536_v34 = vpop.f32.mrf.mxu0  ;;  %v4184_v53 = vadd.f32 %v7585_v49, %v3617_v21  ;;  %vm4927_vm13 = vweird.f32 %v6733_v32 }
 0x236   : > { %v5446_v62 = vmul.f32 %v4919_v39, %v7577_v33  ;;  %v4923_v14 = vsub.f32 1.0, %v4922_v57  ;;  %v3185_v12 = vadd.f32 %v3102_v43, %v7256_v45  ;;  %v8379_v49 = vrot.slane %v7646_v22, 2  ;;  %vm4928_vm15 = vmor %vm4926_vm14, %vm4927_vm13 }
 0x237   : > { %v4618_v52 = vadd.f32 %v4534_v30, %v4184_v53  ;;  %v8380_v21 = vrot.slane %v7595_v26, 2  ;;  %v3980_v50 = vshrl.u32 %v6671_v25, 16  ;;  %v3983_v56 = vshll.u32 %v6671_v25, 16 }
 0x238   : > { %5482 = vst [vmem:[%s7666_s26] sm:$0xff] %v5446_v62  ;;  %v4924_v55 = vmul.f32 %v6733_v32, %v4923_v14  ;;  %6394 = vmatmul.msk.bf16.gmra.mxu3 %vm609_vm2, %v3978_v16  ;;  %v8381_v16 = vrot.slane %v7652_v5, 2  ;;  %v8382_v45 = vrot.slane %v7602_v44, 2  ;;  %v4933_v26 = vor.u32 1.1754944e-38, %v4932_v3 }
 0x239   : > { %v3535_v33 = vpop.f32.mrf.mxu2  ;;  %v3105_v57 = vpop.f32.mrf.mxu1  ;;  %v3011_v39 = vsel %vm2986_vm7, %v8380_v21, %v8379_v49  ;;  %v7689_v30 = vadd.f32 %v7569_v13, %v4618_v52  ;;  %v8384_v23 = vrot.slane %v7609_v46, 3  ;;  %vm4931_vm0 = vcmp.eq.f32.partialorder %v4930_v18, 8.507059e+37 }
 0x23a   : > { %v6735_v62 = vpop.eup %6734  ;;  %v4925_v14 = vadd.f32 %v6733_v32, %v4924_v55  ;;  %v3444_v43 = vsel %vm2986_vm7, %v8382_v45, %v8381_v16  ;;  %v3618_v25 = vadd.f32 %v3535_v33, %v3185_v12  ;;  %v8383_v55 = vrot.slane %v7657_v58, 3 }
 0x23b   : > { %v6737_v53 = vpop.eup %6736  ;;  %v7697_v49 = vadd.f32 1.0, %v6735_v62  ;;  %v7704_v21 = vpop.f32.mrf.mxu3  ;;  %v6495_v16 = vmul.f32 -1.442695, %v7689_v30  ;;  %v3982_v33 = vrot.slane %v3980_v50, 2  ;;  %v3985_v62 = vrot.slane %v3983_v56, 3 }
 0x23c   : > { %v4445_v52 = vsel %vm4420_vm8, %v8384_v23, %v8383_v55  ;;  %v4929_v38 = vsel %vm4928_vm15, %v6733_v32, %v4925_v14  ;;  %v4937_v44 = vmul.f32 %v6737_v53, %v7655_v41  ;;  %6211 = vmatmul.msk.bf16.gmra.mxu1 %vm609_vm2, %v3011_v39  ;;  %v4947_v32 = vand.u32 2147483648, %v7655_v41  ;;  %v7714_v14 = vld [vmem:[#allocation2 + $0x70] sm:$0xff] }
 0x23d   : > { %v4934_v3 = vsel %vm4931_vm0, %v4933_v26, %v4929_v38  ;;  %6738 = vrcp.f32 %v7697_v49  ;;  %v4539_v12 = vpop.f32.mrf.mxu0  ;;  %v4185_v18 = vadd.f32 %v7604_v27, %v3618_v25  ;;  %vm4942_vm3 = vweird.f32 %v6737_v53  ;;  %v7723_v25 = vld [vmem:[#allocation2 + $0x78] sm:$0xff] }
 0x23e   : > { %v5447_v46 = vmul.f32 %v4934_v3, %v7591_v17  ;;  %v4938_v45 = vsub.f32 1.0, %v4937_v44  ;;  %6740 = vpow2.f32 %v6495_v16  ;;  %6302 = vmatmul.msk.bf16.gmra.mxu2 %vm609_vm2, %v3444_v43  ;;  %v4945_v38 = vand.u32 2147483647, %v7655_v41 }
 0x23f   : > { %v3186_v50 = vadd.f32 %v3105_v57, %v7261_v19  ;;  %v4619_v17 = vadd.f32 %v4536_v34, %v4185_v18  ;;  %v7720_v55 = vor.u32 %v3985_v62, %v3982_v33  ;;  %vm4941_vm4 = vweird.f32 %v7655_v41 }
 0x240   : > { %5483 = vst [vmem:[%s7666_s26 + $0x8] sm:$0xff] %v5447_v46  ;;  %v4939_v39 = vmul.f32 %v6737_v53, %v4938_v45  ;;  %6484 = vmatmul.msk.bf16.gmra.mxu0 %vm609_vm2, %v4445_v52  ;;  %vm4943_vm5 = vmor %vm4941_vm4, %vm4942_vm3  ;;  %v4948_v44 = vor.u32 1.1754944e-38, %v4947_v32  ;;  %v3012_v19 = vrot.slane %v7714_v14, 2  ;;  %vm4946_vm9 = vcmp.eq.f32.partialorder %v4945_v38, 8.507059e+37  ;;  %v7736_v32 = vld [vmem:[#allocation2 + $0x78] sm:$0xff] }
 0x241   : > { %v3538_v56 = vpop.f32.mrf.mxu2  ;;  %v3107_v26 = vpop.f32.mrf.mxu1  ;;  %v7726_v16 = vadd.f32 %v7569_v13, %v4619_v17  ;;  %v3987_v18 = vsel %vm3853_vm6, %v7648_v2, %v7720_v55  ;;  %v4960_v17 = vand.u32 2147483647, %v7697_v49  ;;  %vm4956_vm11 = vweird.f32 %v7697_v49 }
 0x242   : > { %v4940_v43 = vadd.f32 %v6737_v53, %v4939_v39  ;;  %v3619_v27 = vadd.f32 %v3538_v56, %v3186_v50  ;;  %v6672_v39 = vld [vmem:[#allocation2 + $0x88] sm:$0xff]  ;;  %v4962_v56 = vand.u32 2147483648, %v7697_v49 }
 0x243   : > { %v6739_v23 = vpop.eup %6738  ;;  %v7729_v57 = vpop.f32.mrf.mxu3  ;;  %v6496_v46 = vmul.f32 -1.442695, %v7726_v16  ;;  %vm4961_vm13 = vcmp.eq.f32.partialorder %v4960_v17, 8.507059e+37 }
 0x244   : > { %v6741_v34 = vpop.eup %6740  ;;  %v4944_v52 = vsel %vm4943_vm5, %v6737_v53, %v4940_v43  ;;  %v4952_v3 = vmul.f32 %v6739_v23, %v7697_v49  ;;  %v4186_v41 = vadd.f32 %v7629_v1, %v3619_v27  ;;  %v3445_v1 = vrot.slane %v7723_v25, 2 }
 0x245   : > { %v4949_v33 = vsel %vm4946_vm9, %v4948_v44, %v4944_v52  ;;  %v7733_v62 = vadd.f32 1.0, %v6741_v34  ;;  %v4541_v45 = vpop.f32.mrf.mxu0  ;;  %v3187_v43 = vadd.f32 %v3107_v26, %v7276_v40  ;;  %vm4957_vm10 = vweird.f32 %v6739_v23 }
 0x246   : > { %v5448_v53 = vmul.f32 %v4949_v33, %v7615_v42  ;;  %v4953_v38 = vsub.f32 1.0, %v4952_v3  ;;  %v4620_v50 = vadd.f32 %v4539_v12, %v4186_v41  ;;  %v8385_v44 = vrot.slane %v7646_v22, 2  ;;  %vm4958_vm12 = vmor %vm4956_vm11, %vm4957_vm10 }
 0x247   : > { %6742 = vrcp.f32 %v7733_v62  ;;  %v4446_v52 = vrot.slane %v7736_v32, 3  ;;  %v3989_v40 = vshrl.u32 %v6672_v39, 16  ;;  %v3992_v26 = vshll.u32 %v6672_v39, 16 }
 0x248   : > { %5484 = vst [vmem:[%s7666_s26 + $0x10] sm:$0xff] %v5448_v53  ;;  %v4954_v27 = vmul.f32 %v6739_v23, %v4953_v38  ;;  %6744 = vpow2.f32 %v6496_v46  ;;  %v7749_v2 = vadd.f32 %v7569_v13, %v4620_v50  ;;  %6395 = vmatmul.msk.bf16.gmra.mxu3 %vm609_vm2, %v3987_v18  ;;  %v3013_v34 = vsel %vm2986_vm7, %v8385_v44, %v3012_v19 }
 0x249   : > { %v3540_v42 = vpop.f32.mrf.mxu2  ;;  %v3110_v12 = vpop.f32.mrf.mxu1  ;;  %v4963_v46 = vor.u32 1.1754944e-38, %v4962_v56  ;;  %v8386_v18 = vrot.slane %v7652_v5, 2  ;;  %v8387_v56 = vrot.slane %v7657_v58, 3  ;;  %vm4971_vm15 = vweird.f32 %v7733_v62 }
 0x24a   : > { %v4955_v3 = vadd.f32 %v6739_v23, %v4954_v27  ;;  %v6497_v41 = vmul.f32 -1.442695, %v7749_v2  ;;  %v3620_v33 = vadd.f32 %v3540_v42, %v3187_v43  ;;  %v3991_v27 = vrot.slane %v3989_v40, 2 }
 0x24b   : > { %v3446_v22 = vsel %vm2986_vm7, %v8386_v18, %v3445_v1  ;;  %v7765_v53 = vpop.f32.mrf.mxu3  ;;  %v4447_v5 = vsel %vm4420_vm8, %v8387_v56, %v4446_v52  ;;  %v3994_v42 = vrot.slane %v3992_v26, 3  ;;  %v3188_v58 = vadd.f32 %v3110_v12, %v7288_v0 }
 0x24c   : > { %v4959_v38 = vsel %vm4958_vm12, %v6739_v23, %v4955_v3  ;;  %6746 = vpow2.f32 %v6497_v41  ;;  %v4187_v39 = vadd.f32 %v7659_v36, %v3620_v33  ;;  %6212 = vmatmul.msk.bf16.gmra.mxu1 %vm609_vm2, %v3013_v34  ;;  %v4975_v40 = vand.u32 2147483647, %v7733_v62  ;;  %v7788_v33 = vld [vmem:[#allocation2 + $0x78] sm:$0xff] }
 0x24d   : > { %v6743_v49 = vpop.eup %6742  ;;  %v4964_v50 = vsel %vm4961_vm13, %v4963_v46, %v4959_v38  ;;  %v4544_v43 = vpop.f32.mrf.mxu0  ;;  %v7790_v46 = vor.u32 %v3994_v42, %v3991_v27 }
 0x24e   : > { %v6745_v44 = vpop.eup %6744  ;;  %v5449_v23 = vmul.f32 %v4964_v50, %v7642_v61  ;;  %v4967_v17 = vmul.f32 %v6743_v49, %v7733_v62  ;;  %v4621_v3 = vadd.f32 %v4541_v45, %v4187_v39  ;;  %6303 = vmatmul.msk.bf16.gmra.mxu2 %vm609_vm2, %v3446_v22  ;;  %v4977_v61 = vand.u32 2147483648, %v7733_v62  ;;  %v7795_v39 = vld [vmem:[#allocation2 + $0x80] sm:$0xff] }
 0x24f   : > { %v7777_v36 = vadd.f32 1.0, %v6745_v44  ;;  %vm4972_vm14 = vweird.f32 %v6743_v49  ;;  %v3014_v44 = vrot.slane %v7788_v33, 2  ;;  %vm4976_vm3 = vcmp.eq.f32.partialorder %v4975_v40, 8.507059e+37 }
 0x250   : > { %5485 = vst [vmem:[%s7666_s26 + $0x18] sm:$0xff] %v5449_v23  ;;  %v4968_v34 = vsub.f32 1.0, %v4967_v17  ;;  %v7781_v41 = vadd.f32 %v7569_v13, %v4621_v3  ;;  %6485 = vmatmul.msk.bf16.gmra.mxu0 %vm609_vm2, %v4447_v5  ;;  %vm4973_vm0 = vmor %vm4971_vm15, %vm4972_vm14  ;;  %v4978_v27 = vor.u32 1.1754944e-38, %v4977_v61  ;;  %v7803_v23 = vld [vmem:[#allocation2 + $0x80] sm:$0xff]  ;;  %v3996_v17 = vsel %vm3853_vm6, %v7720_v55, %v7790_v46  ;;  %v6673_v3 = vld [vmem:[#allocation2 + $0x90] sm:$0xff] }
 0x251   : > { %6748 = vrcp.f32 %v7777_v36  ;;  %v3543_v45 = vpop.f32.mrf.mxu2  ;;  %v3112_v26 = vpop.f32.mrf.mxu1  ;;  %v3447_v61 = vrot.slane %v7795_v39, 2  ;;  %v3998_v40 = vshrl.u32 %v6673_v3, 16  ;;  %vm4986_vm5 = vweird.f32 %v7777_v36 }
 0x252   : > { %v6747_v18 = vpop.eup %6746  ;;  %v4969_v22 = vmul.f32 %v6743_v49, %v4968_v34  ;;  %v6498_v38 = vmul.f32 -1.442695, %v7781_v41  ;;  %v3621_v0 = vadd.f32 %v3543_v45, %v3188_v58 }
 0x253   : > { %v7793_v12 = vadd.f32 1.0, %v6747_v18  ;;  %v7797_v50 = vpop.f32.mrf.mxu3  ;;  %v3448_v14 = vsel %vm2986_vm7, %v3445_v1, %v3447_v61  ;;  %v4000_v1 = vrot.slane %v3998_v40, 2 }
 0x254   : > { %v4970_v56 = vadd.f32 %v6743_v49, %v4969_v22  ;;  %6750 = vpow2.f32 %v6498_v38  ;;  %v4188_v5 = vadd.f32 %v7704_v21, %v3621_v0  ;;  %v3189_v38 = vadd.f32 %v3112_v26, %v7311_v35 }
 0x255   : > { %6752 = vrcp.f32 %v7793_v12  ;;  %v4546_v42 = vpop.f32.mrf.mxu0  ;;  %v4001_v0 = vshll.u32 %v6673_v3, 16  ;;  %v403_v3 = vld [vmem:[%s7296_s21 + $0xc] sm:$0xf]  ;;  %v5007_v32 = vand.u32 2147483648, %v7793_v12  ;;  %vm5001_vm12 = vweird.f32 %v7793_v12 }
 0x256   : > { %v4974_v34 = vsel %vm4973_vm0, %v6743_v49, %v4970_v56  ;;  %v4622_v62 = vadd.f32 %v4544_v43, %v4188_v5  ;;  %v3015_v43 = vsel %vm2986_vm7, %v3012_v19, %v3014_v44  ;;  %408 = vst.msk [vmem:[#allocation2 + $0x9c] sm:$0xf] %vm363_vm1, %v403_v3 }
 0x257   : > { %v6749_v58 = vpop.eup %6748  ;;  %v4979_v21 = vsel %vm4976_vm3, %v4978_v27, %v4974_v34  ;;  %v4992_v34 = vand.u32 2147483648, %v7777_v36 }
 0x258   : > { %v5450_v45 = vmul.f32 %v4979_v21, %v7689_v30  ;;  %v4982_v18 = vmul.f32 %v6749_v58, %v7777_v36  ;;  %v7812_v22 = vadd.f32 %v7569_v13, %v4622_v62  ;;  %6396 = vmatmul.msk.bf16.gmra.mxu3 %vm609_vm2, %v3996_v17  ;;  %v4448_v30 = vrot.slane %v7803_v23, 3 }
 0x259   : > { %v3545_v55 = vpop.f32.mrf.mxu2  ;;  %v3115_v49 = vpop.f32.mrf.mxu1  ;;  %v4990_v17 = vand.u32 2147483647, %v7777_v36  ;;  %vm4987_vm4 = vweird.f32 %v6749_v58 }
 0x25a   : > { %v6751_v56 = vpop.eup %6750  ;;  %5486 = vst [vmem:[%s7666_s26 + $0x20] sm:$0xff] %v5450_v45  ;;  %v4983_v5 = vsub.f32 1.0, %v4982_v18  ;;  %v6499_v35 = vmul.f32 -1.442695, %v7812_v22  ;;  %v3622_v26 = vadd.f32 %v3545_v55, %v3189_v38  ;;  %v4449_v25 = vsel %vm4420_vm8, %v4446_v52, %v4448_v30  ;;  %vm4988_vm9 = vmor %vm4986_vm5, %vm4987_vm4 }
 0x25b   : > { %v6753_v27 = vpop.eup %6752  ;;  %v7826_v62 = vadd.f32 1.0, %v6751_v56  ;;  %v7833_v19 = vpop.f32.mrf.mxu3  ;;  %v4003_v38 = vrot.slane %v4001_v0, 3  ;;  %vm4991_vm10 = vcmp.eq.f32.partialorder %v4990_v17, 8.507059e+37  ;;  %v3190_v0 = vadd.f32 %v3115_v49, %v7323_v29 }
 0x25c   : > { %v4984_v21 = vmul.f32 %v6749_v58, %v4983_v5  ;;  %v4997_v45 = vmul.f32 %v6753_v27, %v7793_v12  ;;  %6754 = vpow2.f32 %v6499_v35  ;;  %6213 = vmatmul.msk.bf16.gmra.mxu1 %vm609_vm2, %v3015_v43  ;;  %v4189_v43 = vadd.f32 %v7729_v57, %v3622_v26 }
 0x25d   : > { %6756 = vrcp.f32 %v7826_v62  ;;  %v7840_v18 = vpop.f32.mrf.mxu0  ;;  %v4993_v5 = vor.u32 1.1754944e-38, %v4992_v34  ;;  %v5005_v35 = vand.u32 2147483647, %v7793_v12  ;;  %vm5002_vm11 = vweird.f32 %v6753_v27 }
 0x25e   : > { %v4985_v55 = vadd.f32 %v6749_v58, %v4984_v21  ;;  %v4998_v56 = vsub.f32 1.0, %v4997_v45  ;;  %6304 = vmatmul.msk.bf16.gmra.mxu2 %vm609_vm2, %v3448_v14  ;;  %v4623_v40 = vadd.f32 %v4546_v42, %v4189_v43  ;;  %v7855_v14 = vld [vmem:[#allocation2 + $0x80] sm:$0xff]  ;;  %v7857_v17 = vor.u32 %v4003_v38, %v4000_v1  ;;  %vm5003_vm13 = vmor %vm5001_vm12, %vm5002_vm11  ;;  %v7869_v1 = vld [vmem:[#allocation2 + $0x88] sm:$0xff] }
 0x25f   : > { %v5008_v29 = vor.u32 1.1754944e-38, %v5007_v32  ;;  %vm5006_vm14 = vcmp.eq.f32.partialorder %v5005_v35, 8.507059e+37  ;;  %v6674_v43 = vld [vmem:[#allocation2 + $0x98] sm:$0xff]  ;;  %vm5016_vm0 = vweird.f32 %v7826_v62 }
 0x260   : > { %v4989_v3 = vsel %vm4988_vm9, %v6749_v58, %v4985_v55  ;;  %v4999_v52 = vmul.f32 %v6753_v27, %v4998_v56  ;;  %6486 = vmatmul.msk.bf16.gmra.mxu0 %vm609_vm2, %v4449_v25  ;;  %v7862_v42 = vadd.f32 %v7569_v13, %v4623_v40  ;;  %v7864_v58 = vld [vmem:[#allocation2 + $0x88] sm:$0xff] }
 0x261   : > { %v4994_v36 = vsel %vm4991_vm10, %v4993_v5, %v4989_v3  ;;  %v3548_v57 = vpop.f32.mrf.mxu2  ;;  %v3117_v26 = vpop.f32.mrf.mxu1  ;;  %v3016_v3 = vrot.slane %v7855_v14, 2  ;;  %v3449_v40 = vrot.slane %v7864_v58, 2 }
 0x262   : > { %v6755_v34 = vpop.eup %6754  ;;  %v5451_v21 = vmul.f32 %v4994_v36, %v7726_v16  ;;  %v5000_v45 = vadd.f32 %v6753_v27, %v4999_v52  ;;  %v3623_v55 = vadd.f32 %v3548_v57, %v3190_v0  ;;  %v6500_v56 = vmul.f32 -1.442695, %v7862_v42 }
 0x263   : > { %v6757_v25 = vpop.eup %6756  ;;  %v7867_v49 = vadd.f32 1.0, %v6755_v34  ;;  %v7871_v38 = vpop.f32.mrf.mxu3  ;;  %v4005_v52 = vsel %vm3853_vm6, %v7790_v46, %v7857_v17  ;;  %v5020_v36 = vand.u32 2147483647, %v7826_v62  ;;  %v5022_v0 = vand.u32 2147483648, %v7826_v62  ;;  %v404_v46 = vld [vmem:[%s7296_s21 + $0x10] sm:$0xf] }
 0x264   : > { %5487 = vst [vmem:[%s7666_s26 + $0x28] sm:$0xff] %v5451_v21  ;;  %v5004_v16 = vsel %vm5003_vm13, %v6753_v27, %v5000_v45  ;;  %v5012_v12 = vmul.f32 %v6757_v25, %v7826_v62  ;;  %v4190_v57 = vadd.f32 %v7765_v53, %v3623_v55  ;;  %v4450_v34 = vrot.slane %v7869_v1, 3 }
 0x265   : > { %v5009_v5 = vsel %vm5006_vm14, %v5008_v29, %v5004_v16  ;;  %6758 = vrcp.f32 %v7867_v49  ;;  %v4551_v32 = vpop.f32.mrf.mxu0  ;;  %vm5017_vm15 = vweird.f32 %v6757_v25  ;;  %v3191_v45 = vadd.f32 %v3117_v26, %v7340_v28  ;;  %409 = vst.msk [vmem:[#allocation2 + $0xa0] sm:$0xf] %vm363_vm1, %v404_v46 }
 0x266   : > { %v5452_v27 = vmul.f32 %v5009_v5, %v7749_v2  ;;  %v5013_v35 = vsub.f32 1.0, %v5012_v12  ;;  %6760 = vpow2.f32 %v6500_v56  ;;  %v4007_v2 = vshrl.u32 %v6674_v43, 16  ;;  %vm5018_vm3 = vmor %vm5016_vm0, %vm5017_vm15 }
 0x267   : > { %v4624_v29 = vadd.f32 %v7840_v18, %v4190_v57  ;;  %v3017_v53 = vsel %vm2986_vm7, %v3014_v44, %v3016_v3  ;;  %v4010_v55 = vshll.u32 %v6674_v43, 16  ;;  %v3450_v18 = vsel %vm2986_vm7, %v3447_v61, %v3449_v40 }
 0x268   : > { %5488 = vst [vmem:[%s7666_s26 + $0x30] sm:$0xff] %v5452_v27  ;;  %v5014_v21 = vmul.f32 %v6757_v25, %v5013_v35  ;;  %6397 = vmatmul.msk.bf16.gmra.mxu3 %vm609_vm2, %v4005_v52  ;;  %vm5021_vm4 = vcmp.eq.f32.partialorder %v5020_v36, 8.507059e+37  ;;  %v5023_v33 = vor.u32 1.1754944e-38, %v5022_v0  ;;  %v4451_v62 = vsel %vm4420_vm8, %v4448_v30, %v4450_v34 }
 0x269   : > { %v3550_v16 = vpop.f32.mrf.mxu2  ;;  %v3120_v12 = vpop.f32.mrf.mxu1  ;;  %v7906_v44 = vadd.f32 %v7569_v13, %v4624_v29  ;;  %v4009_v27 = vrot.slane %v4007_v2, 2  ;;  %v4012_v57 = vrot.slane %v4010_v55, 3  ;;  %v8388_v2 = vld [vmem:[#allocation7_spill] sm:$0xff]  ;;  %v7927_v29 = vld [vmem:[#allocation2 + $0x88] sm:$0xff]  ;;  %vm5031_vm5 = vweird.f32 %v7867_v49 }
 0x26a   : > { %v5015_v56 = vadd.f32 %v6757_v25, %v5014_v21  ;;  %v3624_v28 = vadd.f32 %v3550_v16, %v3191_v45  ;;  %v3192_v46 = vadd.f32 %v3120_v12, %v8388_v2 }
 0x26b   : > { %v6759_v26 = vpop.eup %6758  ;;  %v7913_v43 = vpop.f32.mrf.mxu3  ;;  %v6501_v0 = vmul.f32 -1.442695, %v7906_v44 }
 0x26c   : > { %v6761_v5 = vpop.eup %6760  ;;  %v5019_v39 = vsel %vm5018_vm3, %v6757_v25, %v5015_v56  ;;  %v5027_v61 = vmul.f32 %v6759_v26, %v7867_v49  ;;  %v4191_v52 = vadd.f32 %v7797_v50, %v3624_v28  ;;  %6214 = vmatmul.msk.bf16.gmra.mxu1 %vm609_vm2, %v3017_v53  ;;  %v5035_v25 = vand.u32 2147483647, %v7867_v49 }
 0x26d   : > { %v5024_v35 = vsel %vm5021_vm4, %v5023_v33, %v5019_v39  ;;  %v7918_v36 = vadd.f32 1.0, %v6761_v5  ;;  %v4554_v23 = vpop.f32.mrf.mxu0  ;;  %v5037_v50 = vand.u32 2147483648, %v7867_v49  ;;  %vm5032_vm1 = vweird.f32 %v6759_v26  ;;  %v7939_v39 = vld [vmem:[#allocation2 + $0x90] sm:$0xff] }
 0x26e   : > { %v5453_v30 = vmul.f32 %v5024_v35, %v7781_v41  ;;  %v5028_v21 = vsub.f32 1.0, %v5027_v61  ;;  %v4625_v45 = vadd.f32 %v4551_v32, %v4191_v52  ;;  %6305 = vmatmul.msk.bf16.gmra.mxu2 %vm609_vm2, %v3450_v18  ;;  %v3757_v32 = vld [vmem:[#allocation2 + $0xa0] sm:$0x7]  ;;  %v7934_v56 = vor.u32 %v4012_v57, %v4009_v27  ;;  %vm5033_vm9 = vmor %vm5031_vm5, %vm5032_vm1  ;;  %v7941_v61 = vld [vmem:[#allocation2 + $0x90] sm:$0xff] }
 0x26f   : > { %6762 = vrcp.f32 %v7918_v36  ;;  %v5038_v33 = vor.u32 1.1754944e-38, %v5037_v50  ;;  %v3018_v5 = vrot.slane %v7927_v29, 2  ;;  %v3833_v52 = vunpack.c.l.b16 %v3757_v32 }
 0x270   : > { %5489 = vst [vmem:[%s7666_s26 + $0x38] sm:$0xff] %v5453_v30  ;;  %v5029_v16 = vmul.f32 %v6759_v26, %v5028_v21  ;;  %6764 = vpow2.f32 %v6501_v0  ;;  %v7931_v41 = vadd.f32 %v7569_v13, %v4625_v45  ;;  %6487 = vmatmul.msk.bf16.gmra.mxu0 %vm609_vm2, %v4451_v62  ;;  %vm5036_vm10 = vcmp.eq.f32.partialorder %v5035_v25, 8.507059e+37 }
 0x271   : > { %v3553_v53 = vpop.f32.mrf.mxu2  ;;  %v3122_v55 = vpop.f32.mrf.mxu1  ;;  %v4014_v30 = vsel %vm3853_vm6, %v7857_v17, %v7934_v56  ;;  %v3852_v21 = vpack.c.b16 %v3833_v52, %v3833_v52  ;;  %v3451_v25 = vrot.slane %v7939_v39, 2  ;;  %v5050_v32 = vand.u32 2147483647, %v7918_v36 }
 0x272   : > { %v5030_v28 = vadd.f32 %v6759_v26, %v5029_v16  ;;  %v6502_v12 = vmul.f32 -1.442695, %v7931_v41  ;;  %v3625_v18 = vadd.f32 %v3553_v53, %v3192_v46  ;;  %v4452_v16 = vrot.slane %v7941_v61, 3 }
 0x273   : > { %v7943_v62 = vpop.f32.mrf.mxu3  ;;  %vm5046_vm12 = vweird.f32 %v7918_v36  ;;  %vm5051_vm14 = vcmp.eq.f32.partialorder %v5050_v32, 8.507059e+37  ;;  %v7998_v32 = vld [vmem:[#allocation2 + $0x98] sm:$0xff] }
 0x274   : > { %v5034_v35 = vsel %vm5033_vm9, %v6759_v26, %v5030_v28  ;;  %6766 = vpow2.f32 %v6502_v12  ;;  %v4192_v49 = vadd.f32 %v7833_v19, %v3625_v18  ;;  %v3019_v19 = vsel %vm2986_vm7, %v3016_v3, %v3018_v5 }
 0x275   : > { %v6763_v27 = vpop.eup %6762  ;;  %v5039_v0 = vsel %vm5036_vm10, %v5038_v33, %v5034_v35  ;;  %v4556_v57 = vpop.f32.mrf.mxu0  ;;  %v5052_v28 = vand.u32 2147483648, %v7918_v36  ;;  %v4016_v12 = vshrl.u32 %v3852_v21, 16  ;;  %v4019_v18 = vshll.u32 %v3852_v21, 16 }
 0x276   : > { %v6765_v45 = vpop.eup %6764  ;;  %v5454_v50 = vmul.f32 %v5039_v0, %v7812_v22  ;;  %v5042_v2 = vmul.f32 %v6763_v27, %v7918_v36  ;;  %v4626_v46 = vadd.f32 %v4554_v23, %v4192_v49  ;;  %v8389_v23 = vld [vmem:[#allocation8_spill] sm:$0xff]  ;;  %vm5047_vm11 = vweird.f32 %v6763_v27 }
 0x277   : > { %v7951_v26 = vadd.f32 1.0, %v6765_v45  ;;  %v3193_v53 = vadd.f32 %v3122_v55, %v8389_v23  ;;  %v3452_v55 = vsel %vm2986_vm7, %v3449_v40, %v3451_v25  ;;  %vm5048_vm13 = vmor %vm5046_vm12, %vm5047_vm11  ;;  %v5053_v58 = vor.u32 1.1754944e-38, %v5052_v28  ;;  %v7989_v23 = vld [vmem:[#allocation2 + $0x90] sm:$0xff] }
 0x278   : > { %5490 = vst [vmem:[%s7666_s26 + $0x40] sm:$0xff] %v5454_v50  ;;  %v5043_v17 = vsub.f32 1.0, %v5042_v2  ;;  %v7963_v22 = vadd.f32 %v7569_v13, %v4626_v46  ;;  %6398 = vmatmul.msk.bf16.gmra.mxu3 %vm609_vm2, %v4014_v30  ;;  %v4453_v30 = vsel %vm4420_vm8, %v4450_v34, %v4452_v16  ;;  %v4018_v2 = vrot.slane %v4016_v12, 2 }
 0x279   : > { %6768 = vrcp.f32 %v7951_v26  ;;  %v3555_v14 = vpop.f32.mrf.mxu2  ;;  %v3125_v3 = vpop.f32.mrf.mxu1  ;;  %v4021_v46 = vrot.slane %v4019_v18, 3  ;;  %vm5061_vm0 = vweird.f32 %v7951_v26 }
 0x27a   : > { %v6767_v33 = vpop.eup %6766  ;;  %v5044_v52 = vmul.f32 %v6763_v27, %v5043_v17  ;;  %v6503_v35 = vmul.f32 -1.442695, %v7963_v22  ;;  %v3626_v49 = vadd.f32 %v3555_v14, %v3193_v53  ;;  %v3194_v28 = vadd.f32 %v3125_v3, %v7377_v15  ;;  %v8000_v14 = vld [vmem:[#allocation2 + $0x98] sm:$0xff] }
 0x27b   : > { %v7970_v0 = vadd.f32 1.0, %v6767_v33  ;;  %v7982_v21 = vpop.f32.mrf.mxu3  ;;  %v4022_v12 = vor.u32 %v4021_v46, %v4018_v2  ;;  %v5067_v15 = vand.u32 2147483648, %v7951_v26  ;;  %v4454_v2 = vrot.slane %v8000_v14, 3 }
 0x27c   : > { %v5045_v45 = vadd.f32 %v6763_v27, %v5044_v52  ;;  %6770 = vpow2.f32 %v6503_v35  ;;  %v4193_v50 = vadd.f32 %v7871_v38, %v3626_v49  ;;  %6215 = vmatmul.msk.bf16.gmra.mxu1 %vm609_vm2, %v3019_v19  ;;  %v3020_v49 = vrot.slane %v7989_v23, 2 }
 0x27d   : > { %6772 = vrcp.f32 %v7970_v0  ;;  %v4559_v40 = vpop.f32.mrf.mxu0  ;;  %v4023_v46 = vsel %vm3853_vm6, %v7934_v56, %v4022_v12  ;;  %v2890_v56 = vld [vmem:[#allocation2 + $0x98] sm:$0x3]  ;;  %vm5076_vm6 = vweird.f32 %v7970_v0 }
 0x27e   : > { %v5049_v1 = vsel %vm5048_vm13, %v6763_v27, %v5045_v45  ;;  %v4627_v34 = vadd.f32 %v4556_v57, %v4193_v50  ;;  %6306 = vmatmul.msk.bf16.gmra.mxu2 %vm609_vm2, %v3452_v55 }
 0x27f   : > { %v6769_v17 = vpop.eup %6768  ;;  %v5054_v36 = vsel %vm5051_vm14, %v5053_v58, %v5049_v1  ;;  %v3453_v58 = vrot.slane %v7998_v32, 2 }
 0x280   : > { %v5455_v38 = vmul.f32 %v5054_v36, %v7862_v42  ;;  %v5057_v19 = vmul.f32 %v6769_v17, %v7951_v26  ;;  %v7994_v53 = vadd.f32 %v7569_v13, %v4627_v34  ;;  %6488 = vmatmul.msk.bf16.gmra.mxu0 %vm609_vm2, %v4453_v30  ;;  %v5065_v13 = vand.u32 2147483647, %v7951_v26 }
 0x281   : > { %v3558_v27 = vpop.f32.mrf.mxu2  ;;  %v3127_v57 = vpop.f32.mrf.mxu1  ;;  %vm5062_vm15 = vweird.f32 %v6769_v17 }
 0x282   : > { %v6771_v18 = vpop.eup %6770  ;;  %5491 = vst [vmem:[%s7666_s26 + $0x48] sm:$0xff] %v5455_v38  ;;  %v5058_v33 = vsub.f32 1.0, %v5057_v19  ;;  %v6504_v42 = vmul.f32 -1.442695, %v7994_v53  ;;  %v3627_v52 = vadd.f32 %v3558_v27, %v3194_v28  ;;  %vm5063_vm3 = vmor %vm5061_vm0, %vm5062_vm15  ;;  %vm5066_vm4 = vcmp.eq.f32.partialorder %v5065_v13, 8.507059e+37 }
 0x283   : > { %v6773_v35 = vpop.eup %6772  ;;  %v8006_v3 = vadd.f32 1.0, %v6771_v18  ;;  %v8009_v55 = vpop.f32.mrf.mxu3  ;;  %v5068_v38 = vor.u32 1.1754944e-38, %v5067_v15  ;;  %v5080_v19 = vand.u32 2147483647, %v7970_v0  ;;  %v5082_v28 = vand.u32 2147483648, %v7970_v0 }
 0x284   : > { %v5059_v30 = vmul.f32 %v6769_v17, %v5058_v33  ;;  %v5072_v45 = vmul.f32 %v6773_v35, %v7970_v0  ;;  %6774 = vpow2.f32 %v6504_v42  ;;  %v4194_v36 = vadd.f32 %v7913_v43, %v3627_v52 }
 0x285   : > { %6776 = vrcp.f32 %v8006_v3  ;;  %v8013_v50 = vpop.f32.mrf.mxu0  ;;  %vm5077_vm1 = vweird.f32 %v6773_v35  ;;  %v3195_v26 = vadd.f32 %v3127_v57, %v7395_v20  ;;  %v3021_v43 = vsel %vm2986_vm7, %v3018_v5, %v3020_v49  ;;  %v8040_v20 = vld [vmem:[%s8361_s3] ss:$0 sm:$0xff] }
 0x286   : > { %v5060_v1 = vadd.f32 %v6769_v17, %v5059_v30  ;;  %v5073_v34 = vsub.f32 1.0, %v5072_v45  ;;  %v4628_v33 = vadd.f32 %v4559_v40, %v4194_v36  ;;  %v3454_v40 = vsel %vm2986_vm7, %v3451_v25, %v3453_v58  ;;  %vm5078_vm5 = vmor %vm5076_vm6, %vm5077_vm1  ;;  %v3324_v45 = vld [vmem:[#allocation2 + $0xa0] sm:$0x3] }
 0x287   : > { %v5083_v39 = vor.u32 1.1754944e-38, %v5082_v28  ;;  %vm5081_vm9 = vcmp.eq.f32.partialorder %v5080_v19, 8.507059e+37  ;;  %v3400_v28 = vunpack.c.l.b16 %v3324_v45  ;;  %v5095_v61 = vand.u32 2147483647, %v8006_v3 }
 0x288   : > { %v5064_v27 = vsel %vm5063_vm3, %v6769_v17, %v5060_v1  ;;  %v5074_v18 = vmul.f32 %v6773_v35, %v5073_v34  ;;  %6399 = vmatmul.msk.bf16.gmra.mxu3 %vm609_vm2, %v4023_v46  ;;  %v8043_v29 = vadd.f32 %v8040_v20, %v4628_v33  ;;  %vm5091_vm11 = vweird.f32 %v8006_v3 }
 0x289   : > { %v5069_v12 = vsel %vm5066_vm4, %v5068_v38, %v5064_v27  ;;  %v3560_v42 = vpop.f32.mrf.mxu2  ;;  %v3130_v30 = vpop.f32.mrf.mxu1  ;;  %v4455_v38 = vsel %vm4420_vm8, %v4452_v16, %v4454_v2  ;;  %v4324_v27 = vld [vmem:[#allocation2 + $0xa0] sm:$0x7]  ;;  %vm5096_vm13 = vcmp.eq.f32.partialorder %v5095_v61, 8.507059e+37 }
 0x28a   : > { %v6775_v17 = vpop.eup %6774  ;;  %v5456_v52 = vmul.f32 %v5069_v12, %v7906_v44  ;;  %v5075_v13 = vadd.f32 %v6773_v35, %v5074_v18  ;;  %v3628_v25 = vadd.f32 %v3560_v42, %v3195_v26  ;;  %v2966_v44 = vunpack.c.l.b16 %v2890_v56 }
 0x28b   : > { %v6777_v5 = vpop.eup %6776  ;;  %v8046_v57 = vadd.f32 1.0, %v6775_v17  ;;  %v8048_v15 = vpop.f32.mrf.mxu3  ;;  %v6505_v1 = vmul.f32 -1.442695, %v8043_v29  ;;  %v5097_v18 = vand.u32 2147483648, %v8006_v3  ;;  %v3196_v16 = vadd.f32 %v3130_v30, %v7404_v8 }
 0x28c   : > { %5492 = vst [vmem:[%s7666_s26 + $0x50] sm:$0xff] %v5456_v52  ;;  %v5079_v0 = vsel %vm5078_vm5, %v6773_v35, %v5075_v13  ;;  %v5087_v46 = vmul.f32 %v6777_v5, %v8006_v3  ;;  %6216 = vmatmul.msk.bf16.gmra.mxu1 %vm609_vm2, %v3021_v43  ;;  %v4195_v33 = vadd.f32 %v7943_v62, %v3628_v25  ;;  %vm5092_vm10 = vweird.f32 %v6777_v5 }
 0x28d   : > { %v5084_v34 = vsel %vm5081_vm9, %v5083_v39, %v5079_v0  ;;  %6778 = vrcp.f32 %v8046_v57  ;;  %v4564_v36 = vpop.f32.mrf.mxu0  ;;  %v2985_v56 = vpack.c.b16 %v2966_v44, %v2966_v44  ;;  %v4400_v43 = vunpack.c.l.b16 %v4324_v27  ;;  %vm5093_vm12 = vmor %vm5091_vm11, %vm5092_vm10 }
 0x28e   : > { %v5457_v35 = vmul.f32 %v5084_v34, %v7931_v41  ;;  %v5088_v19 = vsub.f32 1.0, %v5087_v46  ;;  %6780 = vpow2.f32 %v6505_v1  ;;  %6307 = vmatmul.msk.bf16.gmra.mxu2 %vm609_vm2, %v3454_v40  ;;  %v4629_v41 = vadd.f32 %v8013_v50, %v4195_v33 }
 0x28f   : > { %v3419_v62 = vpack.c.b16 %v3400_v28, %v3400_v28  ;;  %v5098_v13 = vor.u32 1.1754944e-38, %v5097_v18  ;;  %v3022_v25 = vrot.slane %v2985_v56, 2  ;;  %v4419_v34 = vpack.c.b16 %v4400_v43, %v4400_v43 }
 0x290   : > { %5493 = vst [vmem:[%s7666_s26 + $0x58] sm:$0xff] %v5457_v35  ;;  %v5089_v12 = vmul.f32 %v6777_v5, %v5088_v19  ;;  %6489 = vmatmul.msk.bf16.gmra.mxu0 %vm609_vm2, %v4455_v38  ;;  %v8071_v39 = vadd.f32 %v8040_v20, %v4629_v41  ;;  %v5112_v27 = vand.u32 2147483648, %v8046_v57  ;;  %vm5106_vm15 = vweird.f32 %v8046_v57 }
 0x291   : > { %v3563_v26 = vpop.f32.mrf.mxu2  ;;  %v3132_v42 = vpop.f32.mrf.mxu1  ;;  %v3455_v28 = vrot.slane %v3419_v62, 2 }
 0x292   : > { %v5090_v40 = vadd.f32 %v6777_v5, %v5089_v12  ;;  %v3629_v17 = vadd.f32 %v3563_v26, %v3196_v16  ;;  %v6506_v46 = vmul.f32 -1.442695, %v8071_v39  ;;  %v4456_v12 = vrot.slane %v4419_v34, 3 }
 0x293   : > { %v6779_v52 = vpop.eup %6778  ;;  %v8073_v8 = vpop.f32.mrf.mxu3  ;;  %v5113_v41 = vor.u32 1.1754944e-38, %v5112_v27  ;;  %v3456_v26 = vsel %vm2986_vm7, %v3453_v58, %v3455_v28 }
 0x294   : > { %v6781_v30 = vpop.eup %6780  ;;  %v5094_v44 = vsel %vm5093_vm12, %v6777_v5, %v5090_v40  ;;  %v5102_v50 = vmul.f32 %v6779_v52, %v8046_v57  ;;  %v4196_v45 = vadd.f32 %v7982_v21, %v3629_v17  ;;  %v5110_v5 = vand.u32 2147483647, %v8046_v57 }
 0x295   : > { %v5099_v3 = vsel %vm5096_vm13, %v5098_v13, %v5094_v44  ;;  %v8077_v0 = vadd.f32 1.0, %v6781_v30  ;;  %v4566_v1 = vpop.f32.mrf.mxu0  ;;  %v3197_v21 = vadd.f32 %v3132_v42, %v7419_v47  ;;  %vm5107_vm14 = vweird.f32 %v6779_v52 }
 0x296   : > { %v5458_v38 = vmul.f32 %v5099_v3, %v7963_v22  ;;  %v5103_v35 = vsub.f32 1.0, %v5102_v50  ;;  %v4630_v19 = vadd.f32 %v4564_v36, %v4196_v45  ;;  %v3023_v36 = vsel %vm2986_vm7, %v3020_v49, %v3022_v25  ;;  %vm5108_vm0 = vmor %vm5106_vm15, %vm5107_vm14 }
 0x297   : > { %6782 = vrcp.f32 %v8077_v0  ;;  %vm5111_vm3 = vcmp.eq.f32.partialorder %v5110_v5, 8.507059e+37  ;;  %v4457_v17 = vsel %vm4420_vm8, %v4454_v2, %v4456_v12  ;;  %v5125_v14 = vand.u32 2147483647, %v8077_v0 }
 0x298   : > { %5494 = vst [vmem:[%s7666_s26 + $0x60] sm:$0xff] %v5458_v38  ;;  %v5104_v18 = vmul.f32 %v6779_v52, %v5103_v35  ;;  %6784 = vpow2.f32 %v6506_v46  ;;  %v8087_v33 = vadd.f32 %v8040_v20, %v4630_v19  ;;  %v5127_v2 = vand.u32 2147483648, %v8077_v0 }
 0x299   : > { %v3565_v56 = vpop.f32.mrf.mxu2  ;;  %v3135_v22 = vpop.f32.mrf.mxu1  ;;  %vm5126_vm4 = vcmp.eq.f32.partialorder %v5125_v14, 8.507059e+37 }
 0x29a   : > { %v5105_v61 = vadd.f32 %v6779_v52, %v5104_v18  ;;  %v6507_v16 = vmul.f32 -1.442695, %v8087_v33  ;;  %v3630_v47 = vadd.f32 %v3565_v56, %v3197_v21  ;;  %v3198_v30 = vadd.f32 %v3135_v22, %v7430_v59 }
 0x29b   : > { %v8097_v42 = vpop.f32.mrf.mxu3  ;;  %v5128_v35 = vor.u32 1.1754944e-38, %v5127_v2 }
 0x29c   : > { %v5109_v43 = vsel %vm5108_vm0, %v6779_v52, %v5105_v61  ;;  %6786 = vpow2.f32 %v6507_v16  ;;  %v4197_v23 = vadd.f32 %v8009_v55, %v3630_v47  ;;  %6217 = vmatmul.msk.bf16.gmra.mxu1 %vm609_vm2, %v3023_v36 }
 0x29d   : > { %v6783_v49 = vpop.eup %6782  ;;  %v5114_v57 = vsel %vm5111_vm3, %v5113_v41, %v5109_v43  ;;  %v4569_v40 = vpop.f32.mrf.mxu0 }
 0x29e   : > { %v6785_v32 = vpop.eup %6784  ;;  %v5459_v58 = vmul.f32 %v5114_v57, %v7994_v53  ;;  %v5117_v62 = vmul.f32 %v6783_v49, %v8077_v0  ;;  %v4631_v13 = vadd.f32 %v4566_v1, %v4197_v23  ;;  %6308 = vmatmul.msk.bf16.gmra.mxu2 %vm609_vm2, %v3456_v26  ;;  %vm5122_vm7 = vweird.f32 %v6783_v49 }
 0x29f   : > { %v4885_v52 = vadd.f32 1.0, %v6785_v32 }
 0x2a0   : > { %5495 = vst [vmem:[%s7666_s26 + $0x68] sm:$0xff] %v5459_v58  ;;  %v5118_v55 = vsub.f32 1.0, %v5117_v62  ;;  %v8109_v25 = vadd.f32 %v8040_v20, %v4631_v13  ;;  %6490 = vmatmul.msk.bf16.gmra.mxu0 %vm609_vm2, %v4457_v17  ;;  %vm5121_vm2 = vweird.f32 %v8077_v0 }
 0x2a1   : > { %6788 = vrcp.f32 %v4885_v52  ;;  %v3568_v53 = vpop.f32.mrf.mxu2  ;;  %v3137_v44 = vpop.f32.mrf.mxu1  ;;  %vm5123_vm8 = vmor %vm5121_vm2, %vm5122_vm7  ;;  %v5140_v26 = vand.u32 2147483647, %v4885_v52  ;;  %v5142_v43 = vand.u32 2147483648, %v4885_v52  ;;  %vm5136_vm6 = vweird.f32 %v4885_v52 }
 0x2a2   : > { %v6787_v50 = vpop.eup %6786  ;;  %v5119_v45 = vmul.f32 %v6783_v49, %v5118_v55  ;;  %v6508_v3 = vmul.f32 -1.442695, %v8109_v25  ;;  %v3631_v46 = vadd.f32 %v3568_v53, %v3198_v30  ;;  %v3199_v0 = vadd.f32 %v3137_v44, %v7441_v4 }
 0x2a3   : > { %v8116_v1 = vadd.f32 1.0, %v6787_v50  ;;  %v8118_v34 = vpop.f32.mrf.mxu3  ;;  %vm5141_vm9 = vcmp.eq.f32.partialorder %v5140_v26, 8.507059e+37  ;;  %v5143_v58 = vor.u32 1.1754944e-38, %v5142_v43 }
 0x2a4   : > { %v5120_v59 = vadd.f32 %v6783_v49, %v5119_v45  ;;  %6790 = vpow2.f32 %v6508_v3  ;;  %v4198_v38 = vadd.f32 %v8048_v15, %v3631_v46 }
 0x2a5   : > { %6792 = vrcp.f32 %v8116_v1  ;;  %v4571_v19 = vpop.f32.mrf.mxu0  ;;  %v5155_v62 = vand.u32 2147483647, %v8116_v1  ;;  %v5157_v13 = vand.u32 2147483648, %v8116_v1  ;;  %vm5151_vm11 = vweird.f32 %v8116_v1 }
 0x2a6   : > { %v5124_v28 = vsel %vm5123_vm8, %v6783_v49, %v5120_v59  ;;  %v4632_v5 = vadd.f32 %v4569_v40, %v4198_v38 }
 0x2a7   : > { %v6789_v27 = vpop.eup %6788  ;;  %v5129_v21 = vsel %vm5126_vm4, %v5128_v35, %v5124_v28  ;;  %v5158_v59 = vor.u32 1.1754944e-38, %v5157_v13  ;;  %vm5156_vm13 = vcmp.eq.f32.partialorder %v5155_v62, 8.507059e+37 }
 0x2a8   : > { %v5460_v18 = vmul.f32 %v5129_v21, %v8043_v29  ;;  %v5132_v56 = vmul.f32 %v6789_v27, %v4885_v52  ;;  %v8125_v22 = vadd.f32 %v8040_v20, %v4632_v5  ;;  %vm5137_vm1 = vweird.f32 %v6789_v27 }
 0x2a9   : > { %v3570_v15 = vpop.f32.mrf.mxu2  ;;  %v3140_v36 = vpop.f32.mrf.mxu1  ;;  %vm5138_vm5 = vmor %vm5136_vm6, %vm5137_vm1 }
 0x2aa   : > { %v6791_v12 = vpop.eup %6790  ;;  %5496 = vst [vmem:[%s7666_s26 + $0x70] sm:$0xff] %v5460_v18  ;;  %v5133_v61 = vsub.f32 1.0, %v5132_v56  ;;  %v6509_v16 = vmul.f32 -1.442695, %v8125_v22  ;;  %v3632_v47 = vadd.f32 %v3570_v15, %v3199_v0  ;;  %v3200_v53 = vadd.f32 %v3140_v36, %v7447_v31 }
 0x2ab   : > { %v6793_v41 = vpop.eup %6792  ;;  %v8130_v23 = vadd.f32 1.0, %v6791_v12  ;;  %v8133_v57 = vpop.f32.mrf.mxu3 }
 0x2ac   : > { %v5134_v29 = vmul.f32 %v6789_v27, %v5133_v61  ;;  %v5147_v49 = vmul.f32 %v6793_v41, %v8116_v1  ;;  %6794 = vpow2.f32 %v6509_v16  ;;  %v4199_v32 = vadd.f32 %v8073_v8, %v3632_v47 }
 0x2ad   : > { %6796 = vrcp.f32 %v8130_v23  ;;  %v4574_v4 = vpop.f32.mrf.mxu0  ;;  %vm5152_vm10 = vweird.f32 %v6793_v41  ;;  %v5172_v18 = vand.u32 2147483648, %v8130_v23  ;;  %v5170_v15 = vand.u32 2147483647, %v8130_v23 }
 0x2ae   : > { %v5135_v40 = vadd.f32 %v6789_v27, %v5134_v29  ;;  %v5148_v17 = vsub.f32 1.0, %v5147_v49  ;;  %v4633_v14 = vadd.f32 %v4571_v19, %v4199_v32  ;;  %vm5153_vm12 = vmor %vm5151_vm11, %vm5152_vm10  ;;  %vm5166_vm15 = vweird.f32 %v8130_v23 }
 0x2af   : > { %v5173_v26 = vor.u32 1.1754944e-38, %v5172_v18  ;;  %vm5171_vm3 = vcmp.eq.f32.partialorder %v5170_v15, 8.507059e+37 }
 0x2b0   : > { %v5139_v55 = vsel %vm5138_vm5, %v6789_v27, %v5135_v40  ;;  %v5149_v30 = vmul.f32 %v6793_v41, %v5148_v17  ;;  %v8143_v3 = vadd.f32 %v8040_v20, %v4633_v14 }
 0x2b1   : > { %v5144_v2 = vsel %vm5141_vm9, %v5143_v58, %v5139_v55  ;;  %v3573_v44 = vpop.f32.mrf.mxu2  ;;  %v3142_v52 = vpop.f32.mrf.mxu1 }
 0x2b2   : > { %v6795_v50 = vpop.eup %6794  ;;  %v5461_v8 = vmul.f32 %v5144_v2, %v8071_v39  ;;  %v5150_v45 = vadd.f32 %v6793_v41, %v5149_v30  ;;  %v3633_v35 = vadd.f32 %v3573_v44, %v3200_v53  ;;  %v6510_v39 = vmul.f32 -1.442695, %v8143_v3 }
 0x2b3   : > { %v6797_v46 = vpop.eup %6796  ;;  %v8145_v38 = vadd.f32 1.0, %v6795_v50  ;;  %v8152_v21 = vpop.f32.mrf.mxu3  ;;  %v3201_v36 = vadd.f32 %v3142_v52, %v7456_v11 }
 0x2b4   : > { %5497 = vst [vmem:[%s7666_s26 + $0x78] sm:$0xff] %v5461_v8  ;;  %v5154_v31 = vsel %vm5153_vm12, %v6793_v41, %v5150_v45  ;;  %v5162_v19 = vmul.f32 %v6797_v46, %v8130_v23  ;;  %v4200_v56 = vadd.f32 %v8097_v42, %v3633_v35  ;;  %vm5167_vm14 = vweird.f32 %v6797_v46 }
 0x2b5   : > { %v5159_v28 = vsel %vm5156_vm13, %v5158_v59, %v5154_v31  ;;  %6798 = vrcp.f32 %v8145_v38  ;;  %v4576_v1 = vpop.f32.mrf.mxu0  ;;  %vm5168_vm0 = vmor %vm5166_vm15, %vm5167_vm14  ;;  %v5185_v13 = vand.u32 2147483647, %v8145_v38  ;;  %v5187_v55 = vand.u32 2147483648, %v8145_v38 }
 0x2b6   : > { %v5462_v5 = vmul.f32 %v5159_v28, %v8087_v33  ;;  %v5163_v27 = vsub.f32 1.0, %v5162_v19  ;;  %6800 = vpow2.f32 %v6510_v39  ;;  %v4634_v12 = vadd.f32 %v4574_v4, %v4200_v56 }
 0x2b7   : > { %vm5181_vm2 = vweird.f32 %v8145_v38  ;;  %vm5186_vm4 = vcmp.eq.f32.partialorder %v5185_v13, 8.507059e+37 }
 0x2b8   : > { %5498 = vst [vmem:[%s7666_s26 + $0x80] sm:$0xff] %v5462_v5  ;;  %v5164_v0 = vmul.f32 %v6797_v46, %v5163_v27  ;;  %v8161_v43 = vadd.f32 %v8040_v20, %v4634_v12 }
 0x2b9   : > { %v3575_v61 = vpop.f32.mrf.mxu2  ;;  %v3145_v16 = vpop.f32.mrf.mxu1 }
 0x2ba   : > { %v5165_v47 = vadd.f32 %v6797_v46, %v5164_v0  ;;  %v3634_v33 = vadd.f32 %v3575_v61, %v3201_v36  ;;  %v6511_v17 = vmul.f32 -1.442695, %v8161_v43  ;;  %v3202_v30 = vadd.f32 %v3145_v16, %v7461_v63 }
 0x2bb   : > { %v6799_v41 = vpop.eup %6798  ;;  %v8174_v2 = vpop.f32.mrf.mxu3  ;;  %v5188_v63 = vor.u32 1.1754944e-38, %v5187_v55 }
 0x2bc   : > { %v6801_v42 = vpop.eup %6800  ;;  %v5169_v29 = vsel %vm5168_vm0, %v6797_v46, %v5165_v47  ;;  %v5177_v49 = vmul.f32 %v6799_v41, %v8145_v38  ;;  %v4201_v11 = vadd.f32 %v8118_v34, %v3634_v33  ;;  %vm5182_vm7 = vweird.f32 %v6799_v41 }
 0x2bd   : > { %v5174_v4 = vsel %vm5171_vm3, %v5173_v26, %v5169_v29  ;;  %v4889_v40 = vadd.f32 1.0, %v6801_v42  ;;  %v4579_v23 = vpop.f32.mrf.mxu0  ;;  %vm5183_vm8 = vmor %vm5181_vm2, %vm5182_vm7 }
 0x2be   : > { %v5463_v32 = vmul.f32 %v5174_v4, %v8109_v25  ;;  %v5178_v58 = vsub.f32 1.0, %v5177_v49  ;;  %v4635_v62 = vadd.f32 %v4576_v1, %v4201_v11 }
 0x2bf   : > { %6802 = vrcp.f32 %v4889_v40  ;;  %v5200_v18 = vand.u32 2147483647, %v4889_v40  ;;  %v5202_v56 = vand.u32 2147483648, %v4889_v40  ;;  %vm5196_vm6 = vweird.f32 %v4889_v40 }
 0x2c0   : > { %5499 = vst [vmem:[%s7666_s26 + $0x88] sm:$0xff] %v5463_v32  ;;  %v5179_v14 = vmul.f32 %v6799_v41, %v5178_v58  ;;  %6804 = vpow2.f32 %v6511_v17  ;;  %v8172_v34 = vadd.f32 %v8040_v20, %v4635_v62 }
 0x2c1   : > { %v3578_v53 = vpop.f32.mrf.mxu2  ;;  %v3147_v25 = vpop.f32.mrf.mxu1  ;;  %v5203_v33 = vor.u32 1.1754944e-38, %v5202_v56  ;;  %vm5201_vm9 = vcmp.eq.f32.partialorder %v5200_v18, 8.507059e+37 }
 0x2c2   : > { %v5180_v44 = vadd.f32 %v6799_v41, %v5179_v14  ;;  %v6512_v52 = vmul.f32 -1.442695, %v8172_v34  ;;  %v3635_v50 = vadd.f32 %v3578_v53, %v3202_v30  ;;  %v3203_v27 = vadd.f32 %v3147_v25, %v7470_v24 }
 0x2c3   : > { %v8186_v61 = vpop.f32.mrf.mxu3 }
 0x2c4   : > { %v5184_v8 = vsel %vm5183_vm8, %v6799_v41, %v5180_v44  ;;  %6806 = vpow2.f32 %v6512_v52  ;;  %v4202_v45 = vadd.f32 %v8133_v57, %v3635_v50 }
 0x2c5   : > { %v6803_v46 = vpop.eup %6802  ;;  %v5189_v59 = vsel %vm5186_vm4, %v5188_v63, %v5184_v8  ;;  %v4581_v35 = vpop.f32.mrf.mxu0 }
 0x2c6   : > { %v6805_v31 = vpop.eup %6804  ;;  %v5464_v19 = vmul.f32 %v5189_v59, %v8125_v22  ;;  %v5192_v39 = vmul.f32 %v6803_v46, %v4889_v40  ;;  %v4636_v28 = vadd.f32 %v4579_v23, %v4202_v45  ;;  %vm5197_vm1 = vweird.f32 %v6803_v46 }
 0x2c7   : > { %v4890_v38 = vadd.f32 1.0, %v6805_v31  ;;  %vm5198_vm5 = vmor %vm5196_vm6, %vm5197_vm1 }
 0x2c8   : > { %5500 = vst [vmem:[%s7666_s26 + $0x90] sm:$0xff] %v5464_v19  ;;  %v5193_v1 = vsub.f32 1.0, %v5192_v39  ;;  %v8182_v5 = vadd.f32 %v8040_v20, %v4636_v28 }
 0x2c9   : > { %6808 = vrcp.f32 %v4890_v38  ;;  %v3580_v57 = vpop.f32.mrf.mxu2  ;;  %v3150_v0 = vpop.f32.mrf.mxu1  ;;  %v5215_v30 = vand.u32 2147483647, %v4890_v38  ;;  %v5217_v14 = vand.u32 2147483648, %v4890_v38  ;;  %vm5211_vm11 = vweird.f32 %v4890_v38 }
 0x2ca   : > { %v6807_v15 = vpop.eup %6806  ;;  %v5194_v36 = vmul.f32 %v6803_v46, %v5193_v1  ;;  %v6513_v22 = vmul.f32 -1.442695, %v8182_v5  ;;  %v3636_v12 = vadd.f32 %v3580_v57, %v3203_v27  ;;  %v3204_v40 = vadd.f32 %v3150_v0, %v7475_v7 }
 0x2cb   : > { %v8188_v16 = vadd.f32 1.0, %v6807_v15  ;;  %v8202_v44 = vpop.f32.mrf.mxu3  ;;  %vm5216_vm13 = vcmp.eq.f32.partialorder %v5215_v30, 8.507059e+37  ;;  %v5218_v8 = vor.u32 1.1754944e-38, %v5217_v14 }
 0x2cc   : > { %v5195_v47 = vadd.f32 %v6803_v46, %v5194_v36  ;;  %6810 = vpow2.f32 %v6513_v22  ;;  %v4203_v24 = vadd.f32 %v8152_v21, %v3636_v12 }
 0x2cd   : > { %6812 = vrcp.f32 %v8188_v16  ;;  %v4584_v41 = vpop.f32.mrf.mxu0  ;;  %v5230_v45 = vand.u32 2147483647, %v8188_v16  ;;  %vm5226_vm15 = vweird.f32 %v8188_v16 }
 0x2ce   : > { %v5199_v26 = vsel %vm5198_vm5, %v6803_v46, %v5195_v47  ;;  %v4637_v42 = vadd.f32 %v4581_v35, %v4203_v24  ;;  %v5232_v46 = vand.u32 2147483648, %v8188_v16 }
 0x2cf   : > { %v6809_v29 = vpop.eup %6808  ;;  %v5204_v49 = vsel %vm5201_vm9, %v5203_v33, %v5199_v26  ;;  %vm5231_vm3 = vcmp.eq.f32.partialorder %v5230_v45, 8.507059e+37 }
 0x2d0   : > { %v5465_v11 = vmul.f32 %v5204_v49, %v8143_v3  ;;  %v5207_v4 = vmul.f32 %v6809_v29, %v4890_v38  ;;  %v8194_v17 = vadd.f32 %v8040_v20, %v4637_v42  ;;  %vm5212_vm10 = vweird.f32 %v6809_v29 }
 0x2d1   : > { %v3583_v21 = vpop.f32.mrf.mxu2  ;;  %v3152_v23 = vpop.f32.mrf.mxu1  ;;  %vm5213_vm12 = vmor %vm5211_vm11, %vm5212_vm10  ;;  %v5233_v57 = vor.u32 1.1754944e-38, %v5232_v46 }
 0x2d2   : > { %v6811_v32 = vpop.eup %6810  ;;  %5501 = vst [vmem:[%s7666_s26 + $0x98] sm:$0xff] %v5465_v11  ;;  %v5208_v58 = vsub.f32 1.0, %v5207_v4  ;;  %v6514_v62 = vmul.f32 -1.442695, %v8194_v17  ;;  %v3637_v13 = vadd.f32 %v3583_v21, %v3204_v40  ;;  %v3205_v39 = vadd.f32 %v3152_v23, %v7484_v60 }
 0x2d3   : > { %v6813_v55 = vpop.eup %6812  ;;  %v8199_v53 = vadd.f32 1.0, %v6811_v32  ;;  %v4157_v24 = vpop.f32.mrf.mxu3 }
 0x2d4   : > { %v5209_v3 = vmul.f32 %v6809_v29, %v5208_v58  ;;  %v5222_v25 = vmul.f32 %v6813_v55, %v8188_v16  ;;  %6814 = vpow2.f32 %v6514_v62  ;;  %v4204_v63 = vadd.f32 %v8174_v2, %v3637_v13 }
 0x2d5   : > { %6816 = vrcp.f32 %v8199_v53  ;;  %v4586_v7 = vpop.f32.mrf.mxu0  ;;  %vm5227_vm14 = vweird.f32 %v6813_v55  ;;  %v5247_v33 = vand.u32 2147483648, %v8199_v53  ;;  %v5245_v42 = vand.u32 2147483647, %v8199_v53 }
 0x2d6   : > { %v5210_v52 = vadd.f32 %v6809_v29, %v5209_v3  ;;  %v5223_v50 = vsub.f32 1.0, %v5222_v25  ;;  %v4638_v31 = vadd.f32 %v4584_v41, %v4204_v63  ;;  %vm5228_vm0 = vmor %vm5226_vm15, %vm5227_vm14  ;;  %vm5241_vm2 = vweird.f32 %v8199_v53 }
 0x2d7   : > { %v5248_v23 = vor.u32 1.1754944e-38, %v5247_v33  ;;  %vm5246_vm4 = vcmp.eq.f32.partialorder %v5245_v42, 8.507059e+37 }
 0x2d8   : > { %v5214_v59 = vsel %vm5213_vm12, %v6809_v29, %v5210_v52  ;;  %v5224_v35 = vmul.f32 %v6813_v55, %v5223_v50  ;;  %v8212_v18 = vadd.f32 %v8040_v20, %v4638_v31 }
 0x2d9   : > { %v5219_v19 = vsel %vm5216_vm13, %v5218_v8, %v5214_v59  ;;  %v3585_v28 = vpop.f32.mrf.mxu2  ;;  %v3155_v38 = vpop.f32.mrf.mxu1 }
 0x2da   : > { %v6815_v1 = vpop.eup %6814  ;;  %v5466_v2 = vmul.f32 %v5219_v19, %v8161_v43  ;;  %v5225_v27 = vadd.f32 %v6813_v55, %v5224_v35  ;;  %v3638_v15 = vadd.f32 %v3585_v28, %v3205_v39  ;;  %v6515_v43 = vmul.f32 -1.442695, %v8212_v18 }
 0x2db   : > { %v6817_v56 = vpop.eup %6816  ;;  %v8214_v0 = vadd.f32 1.0, %v6815_v1  ;;  %v3206_v29 = vadd.f32 %v3155_v38, %v7489_v51  ;;  %v4160_v8 = vpop.f32.mrf.mxu3 }
 0x2dc   : > { %5502 = vst [vmem:[%s7666_s26 + $0xa0] sm:$0xff] %v5466_v2  ;;  %v5229_v60 = vsel %vm5228_vm0, %v6813_v55, %v5225_v27  ;;  %v5237_v36 = vmul.f32 %v6817_v56, %v8199_v53  ;;  %v4205_v41 = vadd.f32 %v8186_v61, %v3638_v15  ;;  %vm5242_vm7 = vweird.f32 %v6817_v56 }
 0x2dd   : > { %v5234_v22 = vsel %vm5231_vm3, %v5233_v57, %v5229_v60  ;;  %6818 = vrcp.f32 %v8214_v0  ;;  %v4589_v12 = vpop.f32.mrf.mxu0  ;;  %vm5243_vm8 = vmor %vm5241_vm2, %vm5242_vm7  ;;  %v5262_v52 = vand.u32 2147483648, %v8214_v0  ;;  %vm5256_vm6 = vweird.f32 %v8214_v0 }
 0x2de   : > { %v5467_v16 = vmul.f32 %v5234_v22, %v8172_v34  ;;  %v5238_v47 = vsub.f32 1.0, %v5237_v36  ;;  %6820 = vpow2.f32 %v6515_v43  ;;  %v4639_v49 = vadd.f32 %v4586_v7, %v4205_v41 }
 0x2df   : > { %v5260_v7 = vand.u32 2147483647, %v8214_v0  ;;  %v5263_v31 = vor.u32 1.1754944e-38, %v5262_v52 }
 0x2e0   : > { %5503 = vst [vmem:[%s7666_s26 + $0xa8] sm:$0xff] %v5467_v16  ;;  %v5239_v26 = vmul.f32 %v6817_v56, %v5238_v47  ;;  %v8228_v32 = vadd.f32 %v8040_v20, %v4639_v49 }
 0x2e1   : > { %v3588_v11 = vpop.f32.mrf.mxu2  ;;  %v3157_v4 = vpop.f32.mrf.mxu1  ;;  %vm5261_vm9 = vcmp.eq.f32.partialorder %v5260_v7, 8.507059e+37 }
 0x2e2   : > { %v5240_v40 = vadd.f32 %v6817_v56, %v5239_v26  ;;  %v3639_v34 = vadd.f32 %v3588_v11, %v3206_v29  ;;  %v6516_v30 = vmul.f32 -1.442695, %v8228_v32  ;;  %v3207_v50 = vadd.f32 %v3157_v4, %v7498_v6 }
 0x2e3   : > { %v6819_v21 = vpop.eup %6818  ;;  %v4162_v33 = vpop.f32.mrf.mxu3 }
 0x2e4   : > { %v6821_v61 = vpop.eup %6820  ;;  %v5244_v58 = vsel %vm5243_vm8, %v6817_v56, %v5240_v40  ;;  %v5252_v62 = vmul.f32 %v6819_v21, %v8214_v0  ;;  %v4206_v51 = vadd.f32 %v8202_v44, %v3639_v34  ;;  %vm5257_vm1 = vweird.f32 %v6819_v21 }
 0x2e5   : > { %v5249_v13 = vsel %vm5246_vm4, %v5248_v23, %v5244_v58  ;;  %v4894_v55 = vadd.f32 1.0, %v6821_v61  ;;  %v4591_v14 = vpop.f32.mrf.mxu0  ;;  %vm5258_vm5 = vmor %vm5256_vm6, %vm5257_vm1 }
 0x2e6   : > { %v5468_v53 = vmul.f32 %v5249_v13, %v8182_v5  ;;  %v5253_v3 = vsub.f32 1.0, %v5252_v62  ;;  %v4640_v25 = vadd.f32 %v4589_v12, %v4206_v51 }
 0x2e7   : > { %6822 = vrcp.f32 %v4894_v55  ;;  %v5275_v36 = vand.u32 2147483647, %v4894_v55  ;;  %v5277_v43 = vand.u32 2147483648, %v4894_v55  ;;  %vm5271_vm11 = vweird.f32 %v4894_v55 }
 0x2e8   : > { %5504 = vst [vmem:[%s7666_s26 + $0xb0] sm:$0xff] %v5468_v53  ;;  %v5254_v63 = vmul.f32 %v6819_v21, %v5253_v3  ;;  %6824 = vpow2.f32 %v6516_v30  ;;  %v8239_v44 = vadd.f32 %v8040_v20, %v4640_v25 }
 0x2e9   : > { %v3590_v45 = vpop.f32.mrf.mxu2  ;;  %v3160_v46 = vpop.f32.mrf.mxu1  ;;  %vm5276_vm13 = vcmp.eq.f32.partialorder %v5275_v36, 8.507059e+37 }
 0x2ea   : > { %v5255_v5 = vadd.f32 %v6819_v21, %v5254_v63  ;;  %v6517_v59 = vmul.f32 -1.442695, %v8239_v44  ;;  %v3640_v35 = vadd.f32 %v3590_v45, %v3207_v50  ;;  %v3208_v60 = vadd.f32 %v3160_v46, %v7503_v10 }
 0x2eb   : > { %v5278_v10 = vor.u32 1.1754944e-38, %v5277_v43  ;;  %v4165_v52 = vpop.f32.mrf.mxu3 }
 0x2ec   : > { %v5259_v6 = vsel %vm5258_vm5, %v6819_v21, %v5255_v5  ;;  %6826 = vpow2.f32 %v6517_v59  ;;  %v4207_v19 = vadd.f32 %v4157_v24, %v3640_v35 }
 0x2ed   : > { %v6823_v39 = vpop.eup %6822  ;;  %v5264_v28 = vsel %vm5261_vm9, %v5263_v31, %v5259_v6  ;;  %v4594_v38 = vpop.f32.mrf.mxu0 }
 0x2ee   : > { %v6825_v1 = vpop.eup %6824  ;;  %v5469_v2 = vmul.f32 %v5264_v28, %v8194_v17  ;;  %v5267_v27 = vmul.f32 %v6823_v39, %v4894_v55  ;;  %v4641_v56 = vadd.f32 %v4591_v14, %v4207_v19  ;;  %vm5272_vm10 = vweird.f32 %v6823_v39 }
 0x2ef   : > { %v4895_v57 = vadd.f32 1.0, %v6825_v1  ;;  %vm5273_vm12 = vmor %vm5271_vm11, %vm5272_vm10 }
 0x2f0   : > { %5505 = vst [vmem:[%s7666_s26 + $0xb8] sm:$0xff] %v5469_v2  ;;  %v5268_v0 = vsub.f32 1.0, %v5267_v27  ;;  %v8246_v15 = vadd.f32 %v8040_v20, %v4641_v56 }
 0x2f1   : > { %6828 = vrcp.f32 %v4895_v57  ;;  %v3593_v22 = vpop.f32.mrf.mxu2  ;;  %v3162_v12 = vpop.f32.mrf.mxu1  ;;  %v5290_v53 = vand.u32 2147483647, %v4895_v57  ;;  %v5292_v3 = vand.u32 2147483648, %v4895_v57  ;;  %vm5286_vm15 = vweird.f32 %v4895_v57 }
 0x2f2   : > { %v6827_v16 = vpop.eup %6826  ;;  %v5269_v47 = vmul.f32 %v6823_v39, %v5268_v0  ;;  %v6518_v17 = vmul.f32 -1.442695, %v8246_v15  ;;  %v3641_v24 = vadd.f32 %v3593_v22, %v3208_v60  ;;  %v3209_v61 = vadd.f32 %v3162_v12, %v7512_v48 }
 0x2f3   : > { %v8250_v41 = vadd.f32 1.0, %v6827_v16  ;;  %vm5291_vm3 = vcmp.eq.f32.partialorder %v5290_v53, 8.507059e+37  ;;  %v5293_v45 = vor.u32 1.1754944e-38, %v5292_v3  ;;  %v4167_v16 = vpop.f32.mrf.mxu3 }
 0x2f4   : > { %v5270_v26 = vadd.f32 %v6823_v39, %v5269_v47  ;;  %6830 = vpow2.f32 %v6518_v17  ;;  %v4208_v42 = vadd.f32 %v4160_v8, %v3641_v24 }
 0x2f5   : > { %6832 = vrcp.f32 %v8250_v41  ;;  %v4596_v29 = vpop.f32.mrf.mxu0  ;;  %v5305_v46 = vand.u32 2147483647, %v8250_v41  ;;  %v5307_v5 = vand.u32 2147483648, %v8250_v41  ;;  %vm5301_vm2 = vweird.f32 %v8250_v41 }
 0x2f6   : > { %v5274_v49 = vsel %vm5273_vm12, %v6823_v39, %v5270_v26  ;;  %v4642_v11 = vadd.f32 %v4594_v38, %v4208_v42 }
 0x2f7   : > { %v6829_v4 = vpop.eup %6828  ;;  %v5279_v40 = vsel %vm5276_vm13, %v5278_v10, %v5274_v49  ;;  %vm5306_vm4 = vcmp.eq.f32.partialorder %v5305_v46, 8.507059e+37 }
 0x2f8   : > { %v5470_v34 = vmul.f32 %v5279_v40, %v8212_v18  ;;  %v5282_v21 = vmul.f32 %v6829_v4, %v4895_v57  ;;  %v8255_v23 = vadd.f32 %v8040_v20, %v4642_v11  ;;  %vm5287_vm14 = vweird.f32 %v6829_v4 }
 0x2f9   : > { %v3595_v58 = vpop.f32.mrf.mxu2  ;;  %v3165_v62 = vpop.f32.mrf.mxu1  ;;  %vm5288_vm0 = vmor %vm5286_vm15, %vm5287_vm14  ;;  %v5308_v57 = vor.u32 1.1754944e-38, %v5307_v5 }
 0x2fa   : > { %v6831_v51 = vpop.eup %6830  ;;  %5506 = vst [vmem:[%s7666_s26 + $0xc0] sm:$0xff] %v5470_v34  ;;  %v5283_v13 = vsub.f32 1.0, %v5282_v21  ;;  %v6519_v55 = vmul.f32 -1.442695, %v8255_v23  ;;  %v3642_v30 = vadd.f32 %v3595_v58, %v3209_v61  ;;  %v3210_v19 = vadd.f32 %v3165_v62, %v7517_v37 }
 0x2fb   : > { %v6833_v14 = vpop.eup %6832  ;;  %v8260_v25 = vadd.f32 1.0, %v6831_v51 }
 0x2fc   : > { %v5284_v18 = vmul.f32 %v6829_v4, %v5283_v13  ;;  %v5297_v7 = vmul.f32 %v6833_v14, %v8250_v41  ;;  %6834 = vpow2.f32 %v6519_v55  ;;  %v4209_v63 = vadd.f32 %v4162_v33, %v3642_v30 }
 0x2fd   : > { %6836 = vrcp.f32 %v8260_v25  ;;  %v4599_v8 = vpop.f32.mrf.mxu0  ;;  %vm5302_vm7 = vweird.f32 %v6833_v14  ;;  %v5322_v47 = vand.u32 2147483648, %v8260_v25  ;;  %v5320_v33 = vand.u32 2147483647, %v8260_v25 }
 0x2fe   : > { %v5285_v48 = vadd.f32 %v6829_v4, %v5284_v18  ;;  %v5298_v50 = vsub.f32 1.0, %v5297_v7  ;;  %v4643_v31 = vadd.f32 %v4596_v29, %v4209_v63  ;;  %vm5303_vm8 = vmor %vm5301_vm2, %vm5302_vm7  ;;  %vm5316_vm6 = vweird.f32 %v8260_v25  ;;  %v4170_v18 = vpop.f32.mrf.mxu3 }
 0x2ff   : > { %vm5321_vm9 = vcmp.eq.f32.partialorder %v5320_v33, 8.507059e+37 }
 0x300   : > { %v5289_v59 = vsel %vm5288_vm0, %v6829_v4, %v5285_v48  ;;  %v5299_v35 = vmul.f32 %v6833_v14, %v5298_v50  ;;  %v8270_v27 = vadd.f32 %v8040_v20, %v4643_v31  ;;  %v5323_v4 = vor.u32 1.1754944e-38, %v5322_v47 }
 0x301   : > { %v5294_v6 = vsel %vm5291_vm3, %v5293_v45, %v5289_v59  ;;  %v3598_v39 = vpop.f32.mrf.mxu2  ;;  %v3167_v28 = vpop.f32.mrf.mxu1 }
 0x302   : > { %v6835_v38 = vpop.eup %6834  ;;  %v5471_v1 = vmul.f32 %v5294_v6, %v8228_v32  ;;  %v5300_v2 = vadd.f32 %v6833_v14, %v5299_v35  ;;  %v3643_v60 = vadd.f32 %v3598_v39, %v3210_v19  ;;  %v6520_v32 = vmul.f32 -1.442695, %v8270_v27 }
 0x303   : > { %v6837_v56 = vpop.eup %6836  ;;  %v8272_v0 = vadd.f32 1.0, %v6835_v38  ;;  %v3211_v41 = vadd.f32 %v3167_v28, %v7526_v54 }
 0x304   : > { %5507 = vst [vmem:[%s7666_s26 + $0xc8] sm:$0xff] %v5471_v1  ;;  %v5304_v37 = vsel %vm5303_vm8, %v6833_v14, %v5300_v2  ;;  %v5312_v36 = vmul.f32 %v6837_v56, %v8260_v25  ;;  %v4210_v17 = vadd.f32 %v4165_v52, %v3643_v60  ;;  %vm5317_vm1 = vweird.f32 %v6837_v56  ;;  %v8297_v25 = vld [vmem:[%s8361_s3] ss:$0 sm:$0xff]  ;;  %v8390_v1 = vld [vmem:[#allocation4_spill] sm:$0xff] }
 0x305   : > { %v5309_v43 = vsel %vm5306_vm4, %v5308_v57, %v5304_v37  ;;  %6838 = vrcp.f32 %v8272_v0  ;;  %v4601_v26 = vpop.f32.mrf.mxu0  ;;  %vm5318_vm5 = vmor %vm5316_vm6, %vm5317_vm1  ;;  %v5335_v14 = vand.u32 2147483647, %v8272_v0  ;;  %vm5331_vm11 = vweird.f32 %v8272_v0 }
 0x306   : > { %v5472_v22 = vmul.f32 %v5309_v43, %v8239_v44  ;;  %v5313_v12 = vsub.f32 1.0, %v5312_v36  ;;  %6840 = vpow2.f32 %v6520_v32  ;;  %v4644_v42 = vadd.f32 %v4599_v8, %v4210_v17 }
 0x307   : > { %vm5336_vm13 = vcmp.eq.f32.partialorder %v5335_v14, 8.507059e+37 }
 0x308   : > { %5508 = vst [vmem:[%s7666_s26 + $0xd0] sm:$0xff] %v5472_v22  ;;  %v5314_v24 = vmul.f32 %v6837_v56, %v5313_v12  ;;  %v8285_v40 = vadd.f32 %v8040_v20, %v4644_v42  ;;  %v5337_v20 = vand.u32 2147483648, %v8272_v0 }
 0x309   : > { %v3600_v10 = vpop.f32.mrf.mxu2  ;;  %v3170_v29 = vpop.f32.mrf.mxu1 }
 0x30a   : > { %v5315_v49 = vadd.f32 %v6837_v56, %v5314_v24  ;;  %v3644_v44 = vadd.f32 %v3600_v10, %v3211_v41  ;;  %v6521_v51 = vmul.f32 -1.442695, %v8285_v40  ;;  %v3212_v53 = vadd.f32 %v3170_v29, %v7531_v9 }
 0x30b   : > { %v6839_v11 = vpop.eup %6838  ;;  %v5338_v8 = vor.u32 1.1754944e-38, %v5337_v20 }
 0x30c   : > { %v6841_v34 = vpop.eup %6840  ;;  %v5319_v21 = vsel %vm5318_vm5, %v6837_v56, %v5315_v49  ;;  %v5327_v54 = vmul.f32 %v6839_v11, %v8272_v0  ;;  %v4211_v61 = vadd.f32 %v4167_v16, %v3644_v44  ;;  %vm5332_vm10 = vweird.f32 %v6839_v11  ;;  %v8391_v49 = vld [vmem:[#allocation5_spill] sm:$0xff] }
 0x30d   : > { %v5324_v58 = vsel %vm5321_vm9, %v5323_v4, %v5319_v21  ;;  %v4899_v62 = vadd.f32 1.0, %v6841_v34  ;;  %v4604_v9 = vpop.f32.mrf.mxu0  ;;  %vm5333_vm12 = vmor %vm5331_vm11, %vm5332_vm10 }
 0x30e   : > { %v5473_v13 = vmul.f32 %v5324_v58, %v8246_v15  ;;  %v5328_v55 = vsub.f32 1.0, %v5327_v54  ;;  %v4645_v30 = vadd.f32 %v4601_v26, %v4211_v61 }
 0x30f   : > { %6842 = vrcp.f32 %v4899_v62  ;;  %v5350_v56 = vand.u32 2147483647, %v4899_v62  ;;  %v5352_v57 = vand.u32 2147483648, %v4899_v62  ;;  %vm5346_vm15 = vweird.f32 %v4899_v62 }
 0x310   : > { %5509 = vst [vmem:[%s7666_s26 + $0xd8] sm:$0xff] %v5473_v13  ;;  %v5329_v3 = vmul.f32 %v6839_v11, %v5328_v55  ;;  %6844 = vpow2.f32 %v6521_v51  ;;  %v8300_v15 = vadd.f32 %v8297_v25, %v4645_v30 }
 0x311   : > { %v3603_v7 = vpop.f32.mrf.mxu2  ;;  %v3172_v63 = vpop.f32.mrf.mxu1  ;;  %v5353_v17 = vor.u32 1.1754944e-38, %v5352_v57  ;;  %vm5351_vm3 = vcmp.eq.f32.partialorder %v5350_v56, 8.507059e+37 }
 0x312   : > { %v5330_v52 = vadd.f32 %v6839_v11, %v5329_v3  ;;  %v6522_v48 = vmul.f32 -1.442695, %v8300_v15  ;;  %v3645_v50 = vadd.f32 %v3603_v7, %v3212_v53  ;;  %v3213_v2 = vadd.f32 %v3172_v63, %v8390_v1 }
 0x314   : > { %v5334_v45 = vsel %vm5333_vm12, %v6839_v11, %v5330_v52  ;;  %6846 = vpow2.f32 %v6522_v48  ;;  %v4212_v46 = vadd.f32 %v4170_v18, %v3645_v50 }
 0x315   : > { %v6843_v5 = vpop.eup %6842  ;;  %v5339_v59 = vsel %vm5336_vm13, %v5338_v8, %v5334_v45  ;;  %v4606_v12 = vpop.f32.mrf.mxu0  ;;  %v8392_v8 = vld [vmem:[#allocation6_spill] sm:$0xff] }
 0x316   : > { %v6845_v35 = vpop.eup %6844  ;;  %v5474_v31 = vmul.f32 %v5339_v59, %v8255_v23  ;;  %v5342_v6 = vmul.f32 %v6843_v5, %v4899_v62  ;;  %v4646_v19 = vadd.f32 %v4604_v9, %v4212_v46  ;;  %vm5347_vm14 = vweird.f32 %v6843_v5  ;;  %v4172_v23 = vpop.f32.mrf.mxu3 }
 0x317   : > { %v4900_v39 = vadd.f32 1.0, %v6845_v35  ;;  %vm5348_vm0 = vmor %vm5346_vm15, %vm5347_vm14 }
 0x318   : > { %5510 = vst [vmem:[%s7666_s26 + $0xe0] sm:$0xff] %v5474_v31  ;;  %v5343_v28 = vsub.f32 1.0, %v5342_v6  ;;  %v8307_v38 = vadd.f32 %v8297_v25, %v4646_v19 }
 0x319   : > { %6848 = vrcp.f32 %v4900_v39  ;;  %v3605_v0 = vpop.f32.mrf.mxu2  ;;  %v3175_v47 = vpop.f32.mrf.mxu1  ;;  %v5365_v58 = vand.u32 2147483647, %v4900_v39  ;;  %v5367_v62 = vand.u32 2147483648, %v4900_v39  ;;  %vm5361_vm2 = vweird.f32 %v4900_v39 }
 0x31a   : > { %v6847_v60 = vpop.eup %6846  ;;  %v5344_v37 = vmul.f32 %v6843_v5, %v5343_v28  ;;  %v6523_v36 = vmul.f32 -1.442695, %v8307_v38  ;;  %v3646_v32 = vadd.f32 %v3605_v0, %v3213_v2  ;;  %v3214_v44 = vadd.f32 %v3175_v47, %v8391_v49 }
 0x31b   : > { %v8311_v43 = vadd.f32 1.0, %v6847_v60  ;;  %vm5366_vm4 = vcmp.eq.f32.partialorder %v5365_v58, 8.507059e+37  ;;  %v5368_v18 = vor.u32 1.1754944e-38, %v5367_v62 }
 0x31c   : > { %v5345_v22 = vadd.f32 %v6843_v5, %v5344_v37  ;;  %6850 = vpow2.f32 %v6523_v36  ;;  %v4213_v16 = vadd.f32 %v4172_v23, %v3646_v32 }
 0x31d   : > { %6852 = vrcp.f32 %v8311_v43  ;;  %v4609_v20 = vpop.f32.mrf.mxu0  ;;  %v5380_v7 = vand.u32 2147483647, %v8311_v43  ;;  %v5382_v52 = vand.u32 2147483648, %v8311_v43  ;;  %vm5376_vm6 = vweird.f32 %v8311_v43 }
 0x31e   : > { %v5349_v24 = vsel %vm5348_vm0, %v6843_v5, %v5345_v22  ;;  %v4647_v33 = vadd.f32 %v4606_v12, %v4213_v16  ;;  %v4175_v55 = vpop.f32.mrf.mxu3 }
 0x31f   : > { %v6849_v41 = vpop.eup %6848  ;;  %v5354_v26 = vsel %vm5351_vm3, %v5353_v17, %v5349_v24  ;;  %v5383_v19 = vor.u32 1.1754944e-38, %v5382_v52  ;;  %vm5381_vm9 = vcmp.eq.f32.partialorder %v5380_v7, 8.507059e+37 }
 0x320   : > { %v5475_v42 = vmul.f32 %v5354_v26, %v8270_v27  ;;  %v5357_v10 = vmul.f32 %v6849_v41, %v4900_v39  ;;  %v8316_v29 = vadd.f32 %v8297_v25, %v4647_v33  ;;  %vm5362_vm7 = vweird.f32 %v6849_v41 }
 0x321   : > { %v3608_v11 = vpop.f32.mrf.mxu2  ;;  %v3177_v3 = vpop.f32.mrf.mxu1  ;;  %vm5363_vm8 = vmor %vm5361_vm2, %vm5362_vm7 }
 0x322   : > { %v6851_v4 = vpop.eup %6850  ;;  %5511 = vst [vmem:[%s7666_s26 + $0xe8] sm:$0xff] %v5475_v42  ;;  %v5358_v34 = vsub.f32 1.0, %v5357_v10  ;;  %v6524_v21 = vmul.f32 -1.442695, %v8316_v29  ;;  %v3647_v54 = vadd.f32 %v3608_v11, %v3214_v44  ;;  %v3215_v45 = vadd.f32 %v3177_v3, %v8392_v8 }
 0x323   : > { %v6853_v61 = vpop.eup %6852  ;;  %v8321_v51 = vadd.f32 1.0, %v6851_v4 }
 0x324   : > { %v5359_v13 = vmul.f32 %v6849_v41, %v5358_v34  ;;  %v5372_v27 = vmul.f32 %v6853_v61, %v8311_v43  ;;  %6854 = vpow2.f32 %v6524_v21  ;;  %v4214_v53 = vadd.f32 %v4175_v55, %v3647_v54 }
 0x325   : > { %6856 = vrcp.f32 %v8321_v51  ;;  %vm5377_vm1 = vweird.f32 %v6853_v61  ;;  %v5397_v37 = vand.u32 2147483648, %v8321_v51  ;;  %v5395_v32 = vand.u32 2147483647, %v8321_v51  ;;  %v4611_v43 = vpop.f32.mrf.mxu0 }
 0x326   : > { %v5360_v30 = vadd.f32 %v6849_v41, %v5359_v13  ;;  %v5373_v14 = vsub.f32 1.0, %v5372_v27  ;;  %v4648_v50 = vadd.f32 %v4609_v20, %v4214_v53  ;;  %vm5378_vm5 = vmor %vm5376_vm6, %vm5377_vm1  ;;  %v4177_v60 = vpop.f32.mrf.mxu3  ;;  %vm5391_vm11 = vweird.f32 %v8321_v51 }
 0x327   : > { %vm5396_vm13 = vcmp.eq.f32.partialorder %v5395_v32, 8.507059e+37 }
 0x328   : > { %v5364_v48 = vsel %vm5363_vm8, %v6849_v41, %v5360_v30  ;;  %v5374_v9 = vmul.f32 %v6853_v61, %v5373_v14  ;;  %v8331_v31 = vadd.f32 %v8297_v25, %v4648_v50 }
 0x329   : > { %v5369_v63 = vsel %vm5366_vm4, %v5368_v18, %v5364_v48  ;;  %v3610_v46 = vpop.f32.mrf.mxu2 }
 0x32a   : > { %v6855_v5 = vpop.eup %6854  ;;  %v5476_v59 = vmul.f32 %v5369_v63, %v8285_v40  ;;  %v5375_v35 = vadd.f32 %v6853_v61, %v5374_v9  ;;  %v3648_v28 = vadd.f32 %v3610_v46, %v3215_v45  ;;  %v6525_v56 = vmul.f32 -1.442695, %v8331_v31 }
 0x32b   : > { %v6857_v6 = vpop.eup %6856  ;;  %v4903_v39 = vadd.f32 1.0, %v6855_v5 }
 0x32c   : > { %5512 = vst [vmem:[%s7666_s26 + $0xf0] sm:$0xff] %v5476_v59  ;;  %v5379_v1 = vsel %vm5378_vm5, %v6853_v61, %v5375_v35  ;;  %v5387_v2 = vmul.f32 %v6857_v6, %v8321_v51  ;;  %v4215_v36 = vadd.f32 %v4177_v60, %v3648_v28  ;;  %vm5392_vm10 = vweird.f32 %v6857_v6 }
 0x32d   : > { %v5384_v40 = vsel %vm5381_vm9, %v5383_v19, %v5379_v1  ;;  %6858 = vrcp.f32 %v4903_v39  ;;  %vm5393_vm12 = vmor %vm5391_vm11, %vm5392_vm10  ;;  %v5412_v44 = vand.u32 2147483648, %v4903_v39  ;;  %v5410_v4 = vand.u32 2147483647, %v4903_v39 }
 0x32e   : > { %v5477_v57 = vmul.f32 %v5384_v40, %v8300_v15  ;;  %v5388_v0 = vsub.f32 1.0, %v5387_v2  ;;  %6860 = vpow2.f32 %v6525_v56  ;;  %v4649_v22 = vadd.f32 %v4611_v43, %v4215_v36 }
 0x32f   : > { %v5398_v15 = vor.u32 1.1754944e-38, %v5397_v37  ;;  %vm5406_vm15 = vweird.f32 %v4903_v39  ;;  %vm5411_vm3 = vcmp.eq.f32.partialorder %v5410_v4, 8.507059e+37 }
 0x330   : > { %5513 = vst [vmem:[%s7666_s26 + $0xf8] sm:$0xff] %v5477_v57  ;;  %v5389_v23 = vmul.f32 %v6857_v6, %v5388_v0  ;;  %v4761_v47 = vadd.f32 %v8297_v25, %v4649_v22  ;;  %v5413_v25 = vor.u32 1.1754944e-38, %v5412_v44 }
 0x332   : > { %v5390_v12 = vadd.f32 %v6857_v6, %v5389_v23  ;;  %v6526_v42 = vmul.f32 -1.442695, %v4761_v47 }
 0x333   : > { %v6859_v16 = vpop.eup %6858 }
 0x334   : > { %v6861_v17 = vpop.eup %6860  ;;  %v5394_v24 = vsel %vm5393_vm12, %v6857_v6, %v5390_v12  ;;  %v5402_v33 = vmul.f32 %v6859_v16, %v4903_v39  ;;  %vm5407_vm14 = vweird.f32 %v6859_v16 }
 0x335   : > { %v5399_v41 = vsel %vm5396_vm13, %v5398_v15, %v5394_v24  ;;  %v4904_v26 = vadd.f32 1.0, %v6861_v17  ;;  %vm5408_vm0 = vmor %vm5406_vm15, %vm5407_vm14 }
 0x336   : > { %v5478_v10 = vmul.f32 %v5399_v41, %v8307_v38  ;;  %v5403_v49 = vsub.f32 1.0, %v5402_v33 }
 0x337   : > { %6862 = vrcp.f32 %v4904_v26  ;;  %v5427_v27 = vand.u32 2147483648, %v4904_v26  ;;  %v5425_v30 = vand.u32 2147483647, %v4904_v26  ;;  %vm5421_vm2 = vweird.f32 %v4904_v26 }
 0x338   : > { %5514 = vst [vmem:[%s7666_s26 + $0x100] sm:$0xff] %v5478_v10  ;;  %v5404_v11 = vmul.f32 %v6859_v16, %v5403_v49  ;;  %6864 = vpow2.f32 %v6526_v42 }
 0x339   : > { %v5428_v20 = vor.u32 1.1754944e-38, %v5427_v27  ;;  %vm5426_vm4 = vcmp.eq.f32.partialorder %v5425_v30, 8.507059e+37 }
 0x33a   : > { %v5405_v34 = vadd.f32 %v6859_v16, %v5404_v11 }
 0x33c   : > { %v5409_v21 = vsel %vm5408_vm0, %v6859_v16, %v5405_v34 }
 0x33d   : > { %v6863_v54 = vpop.eup %6862  ;;  %v5414_v61 = vsel %vm5411_vm3, %v5413_v25, %v5409_v21 }
 0x33e   : > { %v6865_v58 = vpop.eup %6864  ;;  %v5479_v38 = vmul.f32 %v5414_v61, %v8316_v29  ;;  %v5417_v62 = vmul.f32 %v6863_v54, %v4904_v26  ;;  %vm5422_vm7 = vweird.f32 %v6863_v54 }
 0x33f   : > { %v4905_v51 = vadd.f32 1.0, %v6865_v58  ;;  %vm5423_vm8 = vmor %vm5421_vm2, %vm5422_vm7 }
 0x340   : > { %5515 = vst [vmem:[%s7666_s26 + $0x108] sm:$0xff] %v5479_v38  ;;  %v5418_v13 = vsub.f32 1.0, %v5417_v62 }
 0x341   : > { %6866 = vrcp.f32 %v4905_v51  ;;  %v5442_v48 = vand.u32 2147483648, %v4905_v51  ;;  %v5440_v50 = vand.u32 2147483647, %v4905_v51  ;;  %vm5436_vm6 = vweird.f32 %v4905_v51 }
 0x342   : > { %v5419_v55 = vmul.f32 %v6863_v54, %v5418_v13 }
 0x343   : > { %v5443_v8 = vor.u32 1.1754944e-38, %v5442_v48  ;;  %vm5441_vm9 = vcmp.eq.f32.partialorder %v5440_v50, 8.507059e+37 }
 0x344   : > { %v5420_v14 = vadd.f32 %v6863_v54, %v5419_v55 }
 0x346   : > { %v5424_v53 = vsel %vm5423_vm8, %v6863_v54, %v5420_v14 }
 0x347   : > { %v6867_v3 = vpop.eup %6866  ;;  %v5429_v18 = vsel %vm5426_vm4, %v5428_v20, %v5424_v53 }
 0x348   : > { %v5480_v29 = vmul.f32 %v5429_v18, %v8331_v31  ;;  %v5432_v7 = vmul.f32 %v6867_v3, %v4905_v51  ;;  %vm5437_vm1 = vweird.f32 %v6867_v3 }
 0x349   : > { %vm5438_vm5 = vmor %vm5436_vm6, %vm5437_vm1 }
 0x34a   : > { %5516 = vst [vmem:[%s7666_s26 + $0x110] sm:$0xff] %v5480_v29  ;;  %v5433_v52 = vsub.f32 1.0, %v5432_v7 }
 0x34c   : > { %v5434_v9 = vmul.f32 %v6867_v3, %v5433_v52 }
 0x34e   : > { %v5435_v63 = vadd.f32 %v6867_v3, %v5434_v9 }
 0x350   : > { %v5439_v45 = vsel %vm5438_vm5, %v6867_v3, %v5435_v63 }
 0x351   : > { %v5444_v46 = vsel %vm5441_vm9, %v5443_v8, %v5439_v45 }
 0x352   : > { %v5481_v5 = vmul.f32 %v5444_v46, %v4761_v47 }
 0x354   : > { %5517 = vst [vmem:[%s7666_s26 + $0x118] sm:$0xff] %v5481_v5 }
 0x355 PF: > { %s14_s17 = sadd.s32 1, %s6892_s17   ;;  %s8393_s15 = smov %s6888_s16 }
 0x356   : > { %p11_p5 = scmp.ge.s32.totalorder %s14_s17, 4   ;;  %s8394_s16 = smov %s8396_s18 }
 0x358   :  { %13 = sbr.rel (!%p11_p5) target bundleno = 2 (0x2), region = 83 }

</bundles_post_ra>
